<compile_context>
chip_gen: v7x
topology: tpu7x:2x2x1
jax: 0.10.0
libtpu: 0.0.40
codegen_flags: <defaults>
</compile_context>

<pallas_src>
import jax
import jax.numpy as jnp
import numpy as np
from jax.experimental import pallas as pl
from jax.experimental.pallas import tpu as pltpu


# Largest batch tile (multiple of 8) that keeps the per-step working set well
# under the default scoped-VMEM limit on every generation (v5e 16 MiB / v6e and
# v7x 32 MiB).  Raise together with CompilerParams(vmem_limit_bytes=...) for
# very large batches.
_MAX_BATCH_TILE = 64


# ----------------------------------------------------------------------------
# Fused kernel: conv1 + ReLU + pool + conv2 + ReLU + pool + flatten + linear
# ----------------------------------------------------------------------------
def _fused_fwd_kernel(x_ref, w1_ref, b1_ref, w2_ref, b2_ref, wf_ref, bf_ref,
                      o_ref, xp_ref, hp_ref):
    nb = x_ref.shape[0]
    f32 = jnp.float32

    # ------------- conv1 (1 -> 16, 3x3, pad 1) + ReLU + 2x2 max-pool --------
    # In-kernel zero padding along H (W padding is folded into the banded
    # weights, so only the two border rows are needed).
    xp_ref[...] = jnp.zeros_like(xp_ref)
    xp_ref[:, 1:29, :] = x_ref[...]

    acc1 = None
    for kh in range(3):
        rows = xp_ref[:, kh:kh + 28, :].reshape(nb * 28, 28)
        part = jnp.dot(rows, w1_ref[kh], preferred_element_type=f32)
        acc1 = part if acc1 is None else acc1 + part
    acc1 = jnp.maximum(acc1 + b1_ref[...], 0.0)              # (nb*28, 448)

    # Output lanes are (w_parity, w//2, cout)-ordered: W-pool = max of lane
    # halves, H-pool = max over an outer axis (lane layout untouched).
    h1 = jnp.maximum(acc1[:, :224], acc1[:, 224:])           # (nb*28, 224)
    h1 = jnp.max(h1.reshape(nb, 14, 2, 224), axis=2)         # (nb, 14, 224)

    # ------------- conv2 (16 -> 16, 3x3, pad 1) + ReLU + 2x2 max-pool -------
    hp_ref[...] = jnp.zeros_like(hp_ref)
    hp_ref[:, 1:15, :] = h1

    acc2 = None
    for kh in range(3):
        rows = hp_ref[:, kh:kh + 14, :].reshape(nb * 14, 224)
        part = jnp.dot(rows, w2_ref[kh], preferred_element_type=f32)
        acc2 = part if acc2 is None else acc2 + part
    acc2 = jnp.maximum(acc2 + b2_ref[...], 0.0)              # (nb*14, 224)

    h2 = jnp.maximum(acc2[:, :112], acc2[:, 112:])            # (nb*14, 112)
    h2 = jnp.max(h2.reshape(nb, 7, 2, 112), axis=2)           # (nb, 7, 112)

    # ------------- flatten + linear (784 -> 10) -----------------------------
    # Torch's (C,H,W) flatten order is pre-baked into wf, so we contract the
    # (h, w, c)-ordered pooled activations row by row (7 matmuls, K = 112).
    logits = bf_ref[...]                                      # (1, 10)
    for h in range(7):
        logits = logits + jnp.dot(h2[:, h, :], wf_ref[h],
                                  preferred_element_type=f32)
    o_ref[...] = logits


# ----------------------------------------------------------------------------
# Wrapper: one pallas_call, batch grid, weights resident in VMEM.
# ----------------------------------------------------------------------------
@jax.jit
def target_network_forward(x_nchw, params):
    """Forward pass.  x_nchw: (N, 1, 28, 28) float32, params from pack_params."""
    n = x_nchw.shape[0]
    x = x_nchw.astype(jnp.float32).reshape(n, 28, 28)         # C == 1: free
    nb = n if n <= _MAX_BATCH_TILE else _MAX_BATCH_TILE
    grid = (pl.cdiv(n, nb),)

    return pl.pallas_call(
        _fused_fwd_kernel,
        out_shape=jax.ShapeDtypeStruct((n, 10), jnp.float32),
        grid_spec=pltpu.PrefetchScalarGridSpec(
            num_scalar_prefetch=0,
            grid=grid,
            in_specs=[
                pl.BlockSpec((nb, 28, 28), lambda i: (i, 0, 0)),    # x
                pl.BlockSpec((3, 28, 448), lambda i: (0, 0, 0)),    # w1 banded
                pl.BlockSpec((1, 448), lambda i: (0, 0)),           # b1 tiled
                pl.BlockSpec((3, 224, 224), lambda i: (0, 0, 0)),   # w2 banded
                pl.BlockSpec((1, 224), lambda i: (0, 0)),           # b2 tiled
                pl.BlockSpec((7, 112, 10), lambda i: (0, 0, 0)),    # wf permuted
                pl.BlockSpec((1, 10), lambda i: (0, 0)),            # bf
            ],
            out_specs=pl.BlockSpec((nb, 10), lambda i: (i, 0)),
            scratch_shapes=[
                pltpu.VMEM((nb, 30, 28), jnp.float32),   # H-padded conv1 input
                pltpu.VMEM((nb, 16, 224), jnp.float32),  # H-padded pooled h1
            ],
        ),
        compiler_params=pltpu.CompilerParams(
            dimension_semantics=("parallel",)),
    )(x, params["w1"], params["b1"], params["w2"], params["b2"],
      params["wf"], params["bf"])


# ----------------------------------------------------------------------------
# Parameter packing: torch layouts -> banded / lane-ordered kernel layouts.
# ----------------------------------------------------------------------------
def _banded_conv_weight(w_oihw, w_in):
    """torch OIHW (cout, cin, 3, 3) -> (3, w_in*cin, w_in*cout).

    Row index      = w_in_pos * cin + cin_idx
    Output lane    = (w_out % 2) * (w_in//2) * cout + (w_out//2) * cout + cout
    (parity-major, so a 2x2 max-pool along W is a max of the two lane halves).
    Taps that fall outside the image have no row => zero padding along W.
    """
    w = np.asarray(w_oihw, np.float32).transpose(2, 3, 1, 0)  # (kh, kw, ci, co)
    cin, cout = w.shape[2], w.shape[3]
    half = w_in // 2
    out = np.zeros((3, w_in, cin, 2, half, cout), np.float32)
    for kh in range(3):
        for kw in range(3):
            for jo in range(w_in):
                jin = jo + kw - 1
                if 0 <= jin < w_in:
                    out[kh, jin, :, jo % 2, jo // 2, :] += w[kh, kw]
    return jnp.asarray(out.reshape(3, w_in * cin, w_in * cout))


def pack_params(p):
    """Convert torch-layout parameters to the fused-kernel layouts."""
    wf = np.asarray(p["wf"], np.float32).reshape(10, 16, 7, 7)   # (o, c, h, w)
    wf = wf.transpose(2, 3, 1, 0).reshape(7, 7 * 16, 10)         # (h, w*16+c, o)
    return {
        "w1": _banded_conv_weight(p["w1"], 28),                  # (3, 28, 448)
        "b1": jnp.asarray(
            np.tile(np.asarray(p["b1"], np.float32), 28).reshape(1, 448)),
        "w2": _banded_conv_weight(p["w2"], 14),                  # (3, 224, 224)
        "b2": jnp.asarray(
            np.tile(np.asarray(p["b2"], np.float32), 14).reshape(1, 224)),
        "wf": jnp.asarray(wf),                                   # (7, 112, 10)
        "bf": jnp.asarray(np.asarray(p["bf"], np.float32).reshape(1, 10)),
    }


def init_params(key):
    """Synthetic parameters in PyTorch layouts with PyTorch-default-style init."""
    ks = jax.random.split(key, 6)

    def unif(k, shape, fan_in):
        bound = 1.0 / np.sqrt(float(fan_in))
        return jax.random.uniform(k, shape, jnp.float32, -bound, bound)

    return {
        "w1": unif(ks[0], (16, 1, 3, 3), 1 * 9),          # OIHW
        "b1": unif(ks[1], (16,), 1 * 9),
        "w2": unif(ks[2], (16, 16, 3, 3), 16 * 9),
        "b2": unif(ks[3], (16,), 16 * 9),
        "wf": unif(ks[4], (10, 16 * 7 * 7), 16 * 7 * 7),  # (out, in)
        "bf": unif(ks[5], (10,), 16 * 7 * 7),
    }


# ----------------------------------------------------------------------------
# Pure-JAX reference (matches the PyTorch module exactly) for self-check.
# ----------------------------------------------------------------------------
def reference_forward(x_nchw, p):
    dn = ("NCHW", "OIHW", "NCHW")
    hi = jax.lax.Precision.HIGHEST

    def block(y, w, b):
        y = jax.lax.conv_general_dilated(y, w, (1, 1), ((1, 1), (1, 1)),
                                         dimension_numbers=dn, precision=hi)
        y = jnp.maximum(y + b[None, :, None, None], 0.0)
        return jax.lax.reduce_window(y, -jnp.inf, jax.lax.max,
                                     (1, 1, 2, 2), (1, 1, 2, 2), "VALID")

    y = block(x_nchw.astype(jnp.float32), p["w1"], p["b1"])
    y = block(y, p["w2"], p["b2"])
    flat = y.reshape(y.shape[0], -1)                  # torch (C, H, W) order
    return jnp.dot(flat, p["wf"].T, precision=hi) + p["bf"]


if __name__ == "__main__":
    key = jax.random.PRNGKey(0)
    k_x, k_p = jax.random.split(key)
    # FashionMNIST-shaped input: 28x28 is required by the 16*7*7 Linear.
    x = jax.random.normal(k_x, (2, 1, 28, 28), dtype=jnp.float32)

    torch_params = init_params(k_p)
    kernel_params = pack_params(torch_params)

    logits = target_network_forward(x, kernel_params)
    jax.block_until_ready(logits)
    assert logits.shape == (2, 10) and logits.dtype == jnp.float32

    ref = reference_forward(x, torch_params)
    np.testing.assert_allclose(np.asarray(logits), np.asarray(ref),
                               atol=1e-2, rtol=1e-2)
    print("KERNEL_OK")
</pallas_src>

<mosaic_0001>
module attributes {stable_mosaic.version = 11 : i64} {
  func.func @_fused_fwd_kernel(%arg0: i32, %arg1: memref<2x28x28xf32, #tpu.memory_space<vmem>>, %arg2: memref<3x28x448xf32, #tpu.memory_space<vmem>>, %arg3: memref<1x448xf32, #tpu.memory_space<vmem>>, %arg4: memref<3x224x224xf32, #tpu.memory_space<vmem>>, %arg5: memref<1x224xf32, #tpu.memory_space<vmem>>, %arg6: memref<7x112x10xf32, #tpu.memory_space<vmem>>, %arg7: memref<1x10xf32, #tpu.memory_space<vmem>>, %arg8: memref<2x10xf32, #tpu.memory_space<vmem>>, %arg9: memref<2x30x28xf32, #tpu.memory_space<vmem>>, %arg10: memref<2x16x224xf32, #tpu.memory_space<vmem>>) attributes {dimension_semantics = [#tpu.dimension_semantics<parallel>], iteration_bounds = array<i64: 1>, scalar_prefetch = 0 : i64, scratch_operands = 2 : i64, tpu.core_type = #tpu.core_type<tc>, window_params = [{transform_indices = @transform_0, window_bounds = array<i64: 2, 28, 28>}, {pipeline_mode = #tpu.pipeline_mode<synchronous>, transform_indices = @transform_1, window_bounds = array<i64: 3, 28, 448>}, {pipeline_mode = #tpu.pipeline_mode<synchronous>, transform_indices = @transform_2, window_bounds = array<i64: 1, 448>}, {pipeline_mode = #tpu.pipeline_mode<synchronous>, transform_indices = @transform_3, window_bounds = array<i64: 3, 224, 224>}, {pipeline_mode = #tpu.pipeline_mode<synchronous>, transform_indices = @transform_4, window_bounds = array<i64: 1, 224>}, {pipeline_mode = #tpu.pipeline_mode<synchronous>, transform_indices = @transform_5, window_bounds = array<i64: 7, 112, 10>}, {pipeline_mode = #tpu.pipeline_mode<synchronous>, transform_indices = @transform_6, window_bounds = array<i64: 1, 10>}, {transform_indices = @transform_7, window_bounds = array<i64: 2, 10>}]} {
    %cst = arith.constant 0.000000e+00 : f32
    %0 = vector.broadcast %cst : f32 to vector<2x30x28xf32>
    %c0 = arith.constant 0 : index
    %c0_0 = arith.constant 0 : index
    %c0_1 = arith.constant 0 : index
    %1 = vector.load %arg9[%c0, %c0_0, %c0_1] : memref<2x30x28xf32, #tpu.memory_space<vmem>>, vector<2x30x28xf32>
    tpu.vector_store %arg9[%c0, %c0_0, %c0_1], %0 {strides = array<i32>} : memref<2x30x28xf32, #tpu.memory_space<vmem>>, vector<2x30x28xf32>,
    %c0_2 = arith.constant 0 : index
    %c0_3 = arith.constant 0 : index
    %c0_4 = arith.constant 0 : index
    %2 = vector.load %arg1[%c0_2, %c0_3, %c0_4] : memref<2x28x28xf32, #tpu.memory_space<vmem>>, vector<2x28x28xf32>
    %c0_5 = arith.constant 0 : index
    %c1 = arith.constant 1 : index
    %c0_6 = arith.constant 0 : index
    %3 = vector.load %arg9[%c0_5, %c1, %c0_6] : memref<2x30x28xf32, #tpu.memory_space<vmem>>, vector<2x28x28xf32>
    tpu.vector_store %arg9[%c0_5, %c1, %c0_6], %2 {strides = array<i32>} : memref<2x30x28xf32, #tpu.memory_space<vmem>>, vector<2x28x28xf32>,
    %c0_7 = arith.constant 0 : index
    %c0_8 = arith.constant 0 : index
    %c0_9 = arith.constant 0 : index
    %4 = vector.load %arg9[%c0_7, %c0_8, %c0_9] : memref<2x30x28xf32, #tpu.memory_space<vmem>>, vector<2x28x28xf32>
    %5 = vector.shape_cast %4 : vector<2x28x28xf32> to vector<56x28xf32>
    %c0_10 = arith.constant 0 : index
    %c0_11 = arith.constant 0 : index
    %c0_12 = arith.constant 0 : index
    %6 = vector.load %arg2[%c0_10, %c0_11, %c0_12] : memref<3x28x448xf32, #tpu.memory_space<vmem>>, vector<1x28x448xf32>
    %7 = vector.shape_cast %6 : vector<1x28x448xf32> to vector<28x448xf32>
    %cst_13 = arith.constant dense<0.000000e+00> : vector<56x448xf32>
    %8 = tpu.matmul %5, %7, %cst_13 {dimension_numbers = #tpu.dot_dimension_numbers<[1], [0], [0], [1], [0, 0, 1, 1], [], []>} : vector<56x28xf32>, vector<28x448xf32>, vector<56x448xf32> -> vector<56x448xf32>
    %c0_14 = arith.constant 0 : index
    %c1_15 = arith.constant 1 : index
    %c0_16 = arith.constant 0 : index
    %9 = vector.load %arg9[%c0_14, %c1_15, %c0_16] : memref<2x30x28xf32, #tpu.memory_space<vmem>>, vector<2x28x28xf32>
    %10 = vector.shape_cast %9 : vector<2x28x28xf32> to vector<56x28xf32>
    %c1_17 = arith.constant 1 : index
    %c0_18 = arith.constant 0 : index
    %c0_19 = arith.constant 0 : index
    %11 = vector.load %arg2[%c1_17, %c0_18, %c0_19] : memref<3x28x448xf32, #tpu.memory_space<vmem>>, vector<1x28x448xf32>
    %12 = vector.shape_cast %11 : vector<1x28x448xf32> to vector<28x448xf32>
    %cst_20 = arith.constant dense<0.000000e+00> : vector<56x448xf32>
    %13 = tpu.matmul %10, %12, %cst_20 {dimension_numbers = #tpu.dot_dimension_numbers<[1], [0], [0], [1], [0, 0, 1, 1], [], []>} : vector<56x28xf32>, vector<28x448xf32>, vector<56x448xf32> -> vector<56x448xf32>
    %14 = arith.addf %8, %13 : vector<56x448xf32>
    %c0_21 = arith.constant 0 : index
    %c2 = arith.constant 2 : index
    %c0_22 = arith.constant 0 : index
    %15 = vector.load %arg9[%c0_21, %c2, %c0_22] : memref<2x30x28xf32, #tpu.memory_space<vmem>>, vector<2x28x28xf32>
    %16 = vector.shape_cast %15 : vector<2x28x28xf32> to vector<56x28xf32>
    %c2_23 = arith.constant 2 : index
    %c0_24 = arith.constant 0 : index
    %c0_25 = arith.constant 0 : index
    %17 = vector.load %arg2[%c2_23, %c0_24, %c0_25] : memref<3x28x448xf32, #tpu.memory_space<vmem>>, vector<1x28x448xf32>
    %18 = vector.shape_cast %17 : vector<1x28x448xf32> to vector<28x448xf32>
    %cst_26 = arith.constant dense<0.000000e+00> : vector<56x448xf32>
    %19 = tpu.matmul %16, %18, %cst_26 {dimension_numbers = #tpu.dot_dimension_numbers<[1], [0], [0], [1], [0, 0, 1, 1], [], []>} : vector<56x28xf32>, vector<28x448xf32>, vector<56x448xf32> -> vector<56x448xf32>
    %20 = arith.addf %14, %19 : vector<56x448xf32>
    %c0_27 = arith.constant 0 : index
    %c0_28 = arith.constant 0 : index
    %21 = vector.load %arg3[%c0_27, %c0_28] : memref<1x448xf32, #tpu.memory_space<vmem>>, vector<1x448xf32>
    %22 = vector.broadcast %21 : vector<1x448xf32> to vector<56x448xf32>
    %23 = arith.addf %20, %22 : vector<56x448xf32>
    %cst_29 = arith.constant 0.000000e+00 : f32
    %24 = vector.broadcast %cst_29 : f32 to vector<56x448xf32>
    %25 = arith.maximumf %23, %24 : vector<56x448xf32>
    %26 = vector.extract_strided_slice %25 {offsets = [0, 0], sizes = [56, 224], strides = [1, 1]} : vector<56x448xf32> to vector<56x224xf32>
    %27 = vector.extract_strided_slice %25 {offsets = [0, 224], sizes = [56, 224], strides = [1, 1]} : vector<56x448xf32> to vector<56x224xf32>
    %28 = arith.maximumf %26, %27 : vector<56x224xf32>
    %29 = vector.shape_cast %28 : vector<56x224xf32> to vector<2x14x2x224xf32>
    %cst_30 = arith.constant dense<0xFF800000> : vector<2x14x224xf32>
    %30 = vector.multi_reduction <maximumf>, %29, %cst_30 [2] : vector<2x14x2x224xf32> to vector<2x14x224xf32>
    %cst_31 = arith.constant 0.000000e+00 : f32
    %31 = vector.broadcast %cst_31 : f32 to vector<2x16x224xf32>
    %c0_32 = arith.constant 0 : index
    %c0_33 = arith.constant 0 : index
    %c0_34 = arith.constant 0 : index
    %32 = vector.load %arg10[%c0_32, %c0_33, %c0_34] : memref<2x16x224xf32, #tpu.memory_space<vmem>>, vector<2x16x224xf32>
    tpu.vector_store %arg10[%c0_32, %c0_33, %c0_34], %31 {strides = array<i32>} : memref<2x16x224xf32, #tpu.memory_space<vmem>>, vector<2x16x224xf32>,
    %c0_35 = arith.constant 0 : index
    %c1_36 = arith.constant 1 : index
    %c0_37 = arith.constant 0 : index
    %33 = vector.load %arg10[%c0_35, %c1_36, %c0_37] : memref<2x16x224xf32, #tpu.memory_space<vmem>>, vector<2x14x224xf32>
    tpu.vector_store %arg10[%c0_35, %c1_36, %c0_37], %30 {strides = array<i32>} : memref<2x16x224xf32, #tpu.memory_space<vmem>>, vector<2x14x224xf32>,
    %c0_38 = arith.constant 0 : index
    %c0_39 = arith.constant 0 : index
    %c0_40 = arith.constant 0 : index
    %34 = vector.load %arg10[%c0_38, %c0_39, %c0_40] : memref<2x16x224xf32, #tpu.memory_space<vmem>>, vector<2x14x224xf32>
    %35 = vector.shape_cast %34 : vector<2x14x224xf32> to vector<28x224xf32>
    %c0_41 = arith.constant 0 : index
    %c0_42 = arith.constant 0 : index
    %c0_43 = arith.constant 0 : index
    %36 = vector.load %arg4[%c0_41, %c0_42, %c0_43] : memref<3x224x224xf32, #tpu.memory_space<vmem>>, vector<1x224x224xf32>
    %37 = vector.shape_cast %36 : vector<1x224x224xf32> to vector<224x224xf32>
    %cst_44 = arith.constant dense<0.000000e+00> : vector<28x224xf32>
    %38 = tpu.matmul %35, %37, %cst_44 {dimension_numbers = #tpu.dot_dimension_numbers<[1], [0], [0], [1], [0, 0, 1, 1], [], []>} : vector<28x224xf32>, vector<224x224xf32>, vector<28x224xf32> -> vector<28x224xf32>
    %c0_45 = arith.constant 0 : index
    %c1_46 = arith.constant 1 : index
    %c0_47 = arith.constant 0 : index
    %39 = vector.load %arg10[%c0_45, %c1_46, %c0_47] : memref<2x16x224xf32, #tpu.memory_space<vmem>>, vector<2x14x224xf32>
    %40 = vector.shape_cast %39 : vector<2x14x224xf32> to vector<28x224xf32>
    %c1_48 = arith.constant 1 : index
    %c0_49 = arith.constant 0 : index
    %c0_50 = arith.constant 0 : index
    %41 = vector.load %arg4[%c1_48, %c0_49, %c0_50] : memref<3x224x224xf32, #tpu.memory_space<vmem>>, vector<1x224x224xf32>
    %42 = vector.shape_cast %41 : vector<1x224x224xf32> to vector<224x224xf32>
    %cst_51 = arith.constant dense<0.000000e+00> : vector<28x224xf32>
    %43 = tpu.matmul %40, %42, %cst_51 {dimension_numbers = #tpu.dot_dimension_numbers<[1], [0], [0], [1], [0, 0, 1, 1], [], []>} : vector<28x224xf32>, vector<224x224xf32>, vector<28x224xf32> -> vector<28x224xf32>
    %44 = arith.addf %38, %43 : vector<28x224xf32>
    %c0_52 = arith.constant 0 : index
    %c2_53 = arith.constant 2 : index
    %c0_54 = arith.constant 0 : index
    %45 = vector.load %arg10[%c0_52, %c2_53, %c0_54] : memref<2x16x224xf32, #tpu.memory_space<vmem>>, vector<2x14x224xf32>
    %46 = vector.shape_cast %45 : vector<2x14x224xf32> to vector<28x224xf32>
    %c2_55 = arith.constant 2 : index
    %c0_56 = arith.constant 0 : index
    %c0_57 = arith.constant 0 : index
    %47 = vector.load %arg4[%c2_55, %c0_56, %c0_57] : memref<3x224x224xf32, #tpu.memory_space<vmem>>, vector<1x224x224xf32>
    %48 = vector.shape_cast %47 : vector<1x224x224xf32> to vector<224x224xf32>
    %cst_58 = arith.constant dense<0.000000e+00> : vector<28x224xf32>
    %49 = tpu.matmul %46, %48, %cst_58 {dimension_numbers = #tpu.dot_dimension_numbers<[1], [0], [0], [1], [0, 0, 1, 1], [], []>} : vector<28x224xf32>, vector<224x224xf32>, vector<28x224xf32> -> vector<28x224xf32>
    %50 = arith.addf %44, %49 : vector<28x224xf32>
    %c0_59 = arith.constant 0 : index
    %c0_60 = arith.constant 0 : index
    %51 = vector.load %arg5[%c0_59, %c0_60] : memref<1x224xf32, #tpu.memory_space<vmem>>, vector<1x224xf32>
    %52 = vector.broadcast %51 : vector<1x224xf32> to vector<28x224xf32>
    %53 = arith.addf %50, %52 : vector<28x224xf32>
    %cst_61 = arith.constant 0.000000e+00 : f32
    %54 = vector.broadcast %cst_61 : f32 to vector<28x224xf32>
    %55 = arith.maximumf %53, %54 : vector<28x224xf32>
    %56 = vector.extract_strided_slice %55 {offsets = [0, 0], sizes = [28, 112], strides = [1, 1]} : vector<28x224xf32> to vector<28x112xf32>
    %57 = vector.extract_strided_slice %55 {offsets = [0, 112], sizes = [28, 112], strides = [1, 1]} : vector<28x224xf32> to vector<28x112xf32>
    %58 = arith.maximumf %56, %57 : vector<28x112xf32>
    %59 = vector.shape_cast %58 : vector<28x112xf32> to vector<2x7x2x112xf32>
    %cst_62 = arith.constant dense<0xFF800000> : vector<2x7x112xf32>
    %60 = vector.multi_reduction <maximumf>, %59, %cst_62 [2] : vector<2x7x2x112xf32> to vector<2x7x112xf32>
    %c0_63 = arith.constant 0 : index
    %c0_64 = arith.constant 0 : index
    %61 = vector.load %arg7[%c0_63, %c0_64] : memref<1x10xf32, #tpu.memory_space<vmem>>, vector<1x10xf32>
    %62 = vector.extract_strided_slice %60 {offsets = [0, 0, 0], sizes = [2, 1, 112], strides = [1, 1, 1]} : vector<2x7x112xf32> to vector<2x1x112xf32>
    %63 = vector.shape_cast %62 : vector<2x1x112xf32> to vector<2x112xf32>
    %c0_65 = arith.constant 0 : index
    %c0_66 = arith.constant 0 : index
    %c0_67 = arith.constant 0 : index
    %64 = vector.load %arg6[%c0_65, %c0_66, %c0_67] : memref<7x112x10xf32, #tpu.memory_space<vmem>>, vector<1x112x10xf32>
    %65 = vector.shape_cast %64 : vector<1x112x10xf32> to vector<112x10xf32>
    %cst_68 = arith.constant dense<0.000000e+00> : vector<2x10xf32>
    %66 = tpu.matmul %63, %65, %cst_68 {dimension_numbers = #tpu.dot_dimension_numbers<[1], [0], [0], [1], [0, 0, 1, 1], [], []>} : vector<2x112xf32>, vector<112x10xf32>, vector<2x10xf32> -> vector<2x10xf32>
    %67 = vector.broadcast %61 : vector<1x10xf32> to vector<2x10xf32>
    %68 = arith.addf %67, %66 : vector<2x10xf32>
    %69 = vector.extract_strided_slice %60 {offsets = [0, 1, 0], sizes = [2, 1, 112], strides = [1, 1, 1]} : vector<2x7x112xf32> to vector<2x1x112xf32>
    %70 = vector.shape_cast %69 : vector<2x1x112xf32> to vector<2x112xf32>
    %c1_69 = arith.constant 1 : index
    %c0_70 = arith.constant 0 : index
    %c0_71 = arith.constant 0 : index
    %71 = vector.load %arg6[%c1_69, %c0_70, %c0_71] : memref<7x112x10xf32, #tpu.memory_space<vmem>>, vector<1x112x10xf32>
    %72 = vector.shape_cast %71 : vector<1x112x10xf32> to vector<112x10xf32>
    %cst_72 = arith.constant dense<0.000000e+00> : vector<2x10xf32>
    %73 = tpu.matmul %70, %72, %cst_72 {dimension_numbers = #tpu.dot_dimension_numbers<[1], [0], [0], [1], [0, 0, 1, 1], [], []>} : vector<2x112xf32>, vector<112x10xf32>, vector<2x10xf32> -> vector<2x10xf32>
    %74 = arith.addf %68, %73 : vector<2x10xf32>
    %75 = vector.extract_strided_slice %60 {offsets = [0, 2, 0], sizes = [2, 1, 112], strides = [1, 1, 1]} : vector<2x7x112xf32> to vector<2x1x112xf32>
    %76 = vector.shape_cast %75 : vector<2x1x112xf32> to vector<2x112xf32>
    %c2_73 = arith.constant 2 : index
    %c0_74 = arith.constant 0 : index
    %c0_75 = arith.constant 0 : index
    %77 = vector.load %arg6[%c2_73, %c0_74, %c0_75] : memref<7x112x10xf32, #tpu.memory_space<vmem>>, vector<1x112x10xf32>
    %78 = vector.shape_cast %77 : vector<1x112x10xf32> to vector<112x10xf32>
    %cst_76 = arith.constant dense<0.000000e+00> : vector<2x10xf32>
    %79 = tpu.matmul %76, %78, %cst_76 {dimension_numbers = #tpu.dot_dimension_numbers<[1], [0], [0], [1], [0, 0, 1, 1], [], []>} : vector<2x112xf32>, vector<112x10xf32>, vector<2x10xf32> -> vector<2x10xf32>
    %80 = arith.addf %74, %79 : vector<2x10xf32>
    %81 = vector.extract_strided_slice %60 {offsets = [0, 3, 0], sizes = [2, 1, 112], strides = [1, 1, 1]} : vector<2x7x112xf32> to vector<2x1x112xf32>
    %82 = vector.shape_cast %81 : vector<2x1x112xf32> to vector<2x112xf32>
    %c3 = arith.constant 3 : index
    %c0_77 = arith.constant 0 : index
    %c0_78 = arith.constant 0 : index
    %83 = vector.load %arg6[%c3, %c0_77, %c0_78] : memref<7x112x10xf32, #tpu.memory_space<vmem>>, vector<1x112x10xf32>
    %84 = vector.shape_cast %83 : vector<1x112x10xf32> to vector<112x10xf32>
    %cst_79 = arith.constant dense<0.000000e+00> : vector<2x10xf32>
    %85 = tpu.matmul %82, %84, %cst_79 {dimension_numbers = #tpu.dot_dimension_numbers<[1], [0], [0], [1], [0, 0, 1, 1], [], []>} : vector<2x112xf32>, vector<112x10xf32>, vector<2x10xf32> -> vector<2x10xf32>
    %86 = arith.addf %80, %85 : vector<2x10xf32>
    %87 = vector.extract_strided_slice %60 {offsets = [0, 4, 0], sizes = [2, 1, 112], strides = [1, 1, 1]} : vector<2x7x112xf32> to vector<2x1x112xf32>
    %88 = vector.shape_cast %87 : vector<2x1x112xf32> to vector<2x112xf32>
    %c4 = arith.constant 4 : index
    %c0_80 = arith.constant 0 : index
    %c0_81 = arith.constant 0 : index
    %89 = vector.load %arg6[%c4, %c0_80, %c0_81] : memref<7x112x10xf32, #tpu.memory_space<vmem>>, vector<1x112x10xf32>
    %90 = vector.shape_cast %89 : vector<1x112x10xf32> to vector<112x10xf32>
    %cst_82 = arith.constant dense<0.000000e+00> : vector<2x10xf32>
    %91 = tpu.matmul %88, %90, %cst_82 {dimension_numbers = #tpu.dot_dimension_numbers<[1], [0], [0], [1], [0, 0, 1, 1], [], []>} : vector<2x112xf32>, vector<112x10xf32>, vector<2x10xf32> -> vector<2x10xf32>
    %92 = arith.addf %86, %91 : vector<2x10xf32>
    %93 = vector.extract_strided_slice %60 {offsets = [0, 5, 0], sizes = [2, 1, 112], strides = [1, 1, 1]} : vector<2x7x112xf32> to vector<2x1x112xf32>
    %94 = vector.shape_cast %93 : vector<2x1x112xf32> to vector<2x112xf32>
    %c5 = arith.constant 5 : index
    %c0_83 = arith.constant 0 : index
    %c0_84 = arith.constant 0 : index
    %95 = vector.load %arg6[%c5, %c0_83, %c0_84] : memref<7x112x10xf32, #tpu.memory_space<vmem>>, vector<1x112x10xf32>
    %96 = vector.shape_cast %95 : vector<1x112x10xf32> to vector<112x10xf32>
    %cst_85 = arith.constant dense<0.000000e+00> : vector<2x10xf32>
    %97 = tpu.matmul %94, %96, %cst_85 {dimension_numbers = #tpu.dot_dimension_numbers<[1], [0], [0], [1], [0, 0, 1, 1], [], []>} : vector<2x112xf32>, vector<112x10xf32>, vector<2x10xf32> -> vector<2x10xf32>
    %98 = arith.addf %92, %97 : vector<2x10xf32>
    %99 = vector.extract_strided_slice %60 {offsets = [0, 6, 0], sizes = [2, 1, 112], strides = [1, 1, 1]} : vector<2x7x112xf32> to vector<2x1x112xf32>
    %100 = vector.shape_cast %99 : vector<2x1x112xf32> to vector<2x112xf32>
    %c6 = arith.constant 6 : index
    %c0_86 = arith.constant 0 : index
    %c0_87 = arith.constant 0 : index
    %101 = vector.load %arg6[%c6, %c0_86, %c0_87] : memref<7x112x10xf32, #tpu.memory_space<vmem>>, vector<1x112x10xf32>
    %102 = vector.shape_cast %101 : vector<1x112x10xf32> to vector<112x10xf32>
    %cst_88 = arith.constant dense<0.000000e+00> : vector<2x10xf32>
    %103 = tpu.matmul %100, %102, %cst_88 {dimension_numbers = #tpu.dot_dimension_numbers<[1], [0], [0], [1], [0, 0, 1, 1], [], []>} : vector<2x112xf32>, vector<112x10xf32>, vector<2x10xf32> -> vector<2x10xf32>
    %104 = arith.addf %98, %103 : vector<2x10xf32>
    %c0_89 = arith.constant 0 : index
    %c0_90 = arith.constant 0 : index
    %105 = vector.load %arg8[%c0_89, %c0_90] : memref<2x10xf32, #tpu.memory_space<vmem>>, vector<2x10xf32>
    tpu.vector_store %arg8[%c0_89, %c0_90], %104 {strides = array<i32>} : memref<2x10xf32, #tpu.memory_space<vmem>>, vector<2x10xf32>,
    return
  }
  func.func @transform_0(%arg0: i32) -> (i32, i32, i32) {
    %c0_i32 = arith.constant 0 : i32
    %c0_i32_0 = arith.constant 0 : i32
    %c0_i32_1 = arith.constant 0 : i32
    return %arg0, %c0_i32, %c0_i32_0 : i32, i32, i32
  }
  func.func @transform_1(%arg0: i32) -> (i32, i32, i32) {
    %c0_i32 = arith.constant 0 : i32
    %c0_i32_0 = arith.constant 0 : i32
    %c0_i32_1 = arith.constant 0 : i32
    %c0_i32_2 = arith.constant 0 : i32
    return %c0_i32, %c0_i32_0, %c0_i32_1 : i32, i32, i32
  }
  func.func @transform_2(%arg0: i32) -> (i32, i32) {
    %c0_i32 = arith.constant 0 : i32
    %c0_i32_0 = arith.constant 0 : i32
    %c0_i32_1 = arith.constant 0 : i32
    return %c0_i32, %c0_i32_0 : i32, i32
  }
  func.func @transform_3(%arg0: i32) -> (i32, i32, i32) {
    %c0_i32 = arith.constant 0 : i32
    %c0_i32_0 = arith.constant 0 : i32
    %c0_i32_1 = arith.constant 0 : i32
    %c0_i32_2 = arith.constant 0 : i32
    return %c0_i32, %c0_i32_0, %c0_i32_1 : i32, i32, i32
  }
  func.func @transform_4(%arg0: i32) -> (i32, i32) {
    %c0_i32 = arith.constant 0 : i32
    %c0_i32_0 = arith.constant 0 : i32
    %c0_i32_1 = arith.constant 0 : i32
    return %c0_i32, %c0_i32_0 : i32, i32
  }
  func.func @transform_5(%arg0: i32) -> (i32, i32, i32) {
    %c0_i32 = arith.constant 0 : i32
    %c0_i32_0 = arith.constant 0 : i32
    %c0_i32_1 = arith.constant 0 : i32
    %c0_i32_2 = arith.constant 0 : i32
    return %c0_i32, %c0_i32_0, %c0_i32_1 : i32, i32, i32
  }
  func.func @transform_6(%arg0: i32) -> (i32, i32) {
    %c0_i32 = arith.constant 0 : i32
    %c0_i32_0 = arith.constant 0 : i32
    %c0_i32_1 = arith.constant 0 : i32
    return %c0_i32, %c0_i32_0 : i32, i32
  }
  func.func @transform_7(%arg0: i32) -> (i32, i32) {
    %c0_i32 = arith.constant 0 : i32
    %c0_i32_0 = arith.constant 0 : i32
    return %arg0, %c0_i32 : i32, i32
  }
}

</mosaic_0001>

<bundles_post_ra>
// kernel: target_network_forward.1
= control target key start
LH: loop header
LB: loop body
LE: loop exit
PB: predicated region body
PF: predicated region fallthrough
CT: control target
= control target key end

     0   :  { %12 = vsyncpa [#allocation5], 0  ;;  %s6487_s0 = inlined_call_operand.vmem [shape: f32[2,28,28], index: 0, kind: input, shape index: {}]   ;;  %s6488_s1 = inlined_call_operand.vmem [shape: f32[3,28,448], index: 1, kind: input, shape index: {}]   ;;  %s6489_s2 = inlined_call_operand.vmem [shape: f32[1,448], index: 2, kind: input, shape index: {}]   ;;  %s6490_s3 = inlined_call_operand.hbm [shape: f32[3,224,224], index: 3, kind: input, shape index: {}]   ;;  %s6491_s4 = inlined_call_operand.vmem [shape: f32[1,224], index: 4, kind: input, shape index: {}]   ;;  %s6492_s5 = inlined_call_operand.vmem [shape: f32[7,112,10], index: 5, kind: input, shape index: {}]   ;;  %s6493_s6 = inlined_call_operand.vmem [shape: f32[1,10], index: 6, kind: input, shape index: {}]   ;;  %s6494_s7 = inlined_call_operand.hbm [shape: f32[2,10], index: 7, kind: output, shape index: {}]  }
   0x1   :  { %13 = vsyncpa [#allocation6], 0  ;;  %s5063_s24 = smov [#allocation4]   ;;  %s5015_s28 = scalar_lea.hbm %s6490_s3, 21504 }
   0x2   :  { %s25_s25 = sshll.u32 %s5063_s24, 4  ;;  %p5016_p0 = scmp.ne.s32.totalorder %s6490_s3, %s5015_s28  ;;  %s26_s25 = int_to_ptr.vmem [resolvable:$true] %s25_s25 }
   0x3   :  { %p5019_p1 = scmp.lt.u32.totalorder %s5015_s28, %s6490_s3 }
   0x5   :  { %p5021_p2 = pnand %p5019_p1, %p5016_p0 }
   0x7   :  { %5024 = shalt.err (!%p5021_p2)
}
   0x8   :  { %s5025_s10 = scalar_lea.vmem %s26_s25, 21504  ;;  %p5030_p4 = scmp.lt.s32.totalorder %s26_s25, %s26_s25 }
   0x9   :  { %p5026_p3 = scmp.ne.s32.totalorder %s26_s25, %s5025_s10  ;;  %p5031_p5 = scmp.lt.s32.totalorder %s5025_s10, %s5025_s10 }
   0xb   :  { %p5032_p6 = por %p5031_p5, %p5030_p4 }
   0xd   :  { %p5033_p7 = pnand %p5032_p6, %p5026_p3 }
   0xf   :  { %5036 = shalt.err (!%p5033_p7)
}
  0x10   :  { %s5064_s11 = smov 256   ;;  %s5065_s12 = smov 16  }
  0x11   :  { %31 = dma.hbm_to_vmem [thread:$0]  %s6490_s3, 21504, %s26_s25, [#allocation5], %s5064_s11, %s5064_s11, %s5065_s12  }
  0x12   :  { %5059 = dma.done.wait [#allocation5], 21504  }
  0x13   :  { %5060 = vsyncadd [#allocation5], 4294945792  ;;  %vm41_vm0 = vcmask 228352   ;;  %v6495_v0 = vmov 0.0   ;;  %vm45_vm1 = vcmask 226304   ;;  %vm166_vm2 = vcmask 1043456  }
  0x14   :  { %243 = vmatprep.mubr.f32.mxu0 %v6495_v0  ;;  %1952 = vst [vmem:[#allocation3] sm:$0xff] %v6495_v0  ;;  %1955 = vst [vmem:[#allocation3 + $0x10] sm:$0xff] %v6495_v0  ;;  %362 = vmatprep.mubr.f32.mxu1 %v6495_v0  ;;  %vm5067_vm3 = vmmov 1   ;;  %v3973_v2 = vld [vmem:[%s6488_s1 + $0x88] sm:$0xff]  ;;  %v3972_v4 = vld [vmem:[%s6488_s1 + $0x80] sm:$0xff]  ;;  %vm62_vm5 = vcmask 224256  }
  0x15   :  { %1957 = vst [vmem:[#allocation3 + $0x20] sm:$0xff] %v6495_v0  ;;  %1959 = vst [vmem:[#allocation3 + $0x30] sm:$0xff] %v6495_v0  ;;  %v3977_v3 = vld [vmem:[%s6488_s1 + $0xa8] sm:$0xff]  ;;  %v3976_v6 = vld [vmem:[%s6488_s1 + $0xa0] sm:$0xff]  ;;  %vm1953_vm6 = vcmask 785408   ;;  %vm1095_vm7 = vcmask 261120  }
  0x16   :  { %42 = vst.msk [vmem:[#allocation2] sm:$0xff] %vm41_vm0, %v6495_v0  ;;  %43 = vst.msk [vmem:[#allocation2 + $0x8] sm:$0xff] %vm41_vm0, %v6495_v0  ;;  %v4487_v5 = vpack.c.bf16 %v3977_v3, %v3973_v2  ;;  %v3975_v7 = vld [vmem:[%s6488_s1 + $0x98] sm:$0xff]  ;;  %v4489_v9 = vpack.c.bf16 %v3976_v6, %v3972_v4  ;;  %v3974_v11 = vld [vmem:[%s6488_s1 + $0x90] sm:$0xff]  ;;  %vm1558_vm8 = vcmask 1041408   ;;  %vm1566_vm9 = vcmask 779264  }
  0x17   :  { %44 = vst.msk [vmem:[#allocation2 + $0x10] sm:$0xff] %vm41_vm0, %v6495_v0  ;;  %47 = vst.msk [vmem:[#allocation2 + $0x20] sm:$0xff] %vm41_vm0, %v6495_v0  ;;  %v3979_v8 = vld [vmem:[%s6488_s1 + $0xb8] sm:$0xff]  ;;  %v3978_v12 = vld [vmem:[%s6488_s1 + $0xb0] sm:$0xff]  ;;  %vm2017_vm10 = vcmask 1042434   ;;  %vm2019_vm11 = vcmask 1043459  }
  0x18   :  { %48 = vst.msk [vmem:[#allocation2 + $0x28] sm:$0xff] %vm41_vm0, %v6495_v0  ;;  %49 = vst.msk [vmem:[#allocation2 + $0x30] sm:$0xff] %vm41_vm0, %v6495_v0  ;;  %v4497_v10 = vpack.c.bf16 %v3979_v8, %v3975_v7  ;;  %v3981_v13 = vld [vmem:[%s6488_s1 + $0xc8] sm:$0xff]  ;;  %4488 = vmatprep.subr.bf16.mxu0 %v4487_v5  ;;  %v5177_v14 = vpack.c.bf16 %v3978_v12, %v3974_v11  ;;  %v3980_v16 = vld [vmem:[%s6488_s1 + $0xc0] sm:$0xff]  ;;  %vm2021_vm12 = vcmask 1044484   ;;  %vm2023_vm13 = vcmask 1045509  }
  0x19   :  { %46 = vst.msk [vmem:[#allocation2 + $0x18] sm:$0x3f] %vm45_vm1, %v6495_v0  ;;  %50 = vst.msk [vmem:[#allocation2 + $0x38] sm:$0x3f] %vm45_vm1, %v6495_v0  ;;  %v3985_v15 = vld [vmem:[%s6488_s1 + $0xe8] sm:$0xf]  ;;  %4490 = vmatpush1.bf16.msra.mxu0 %v4489_v9 }
  0x1a   :  { %vm5146_vm4 = vmpackc.low %vm166_vm2, %vm5067_vm3  ;;  %v3984_v17 = vld [vmem:[%s6488_s1 + $0xe0] sm:$0xf]  ;;  %4862 = vmatprep.subr.bf16.mxu1 %v4497_v10  ;;  %v4491_v18 = vpack.c.bf16 %v3985_v15, %v3981_v13  ;;  %v3983_v20 = vld [vmem:[%s6488_s1 + $0xd8] sm:$0xff]  ;;  %1954 = vst.msk [vmem:[#allocation3 + $0x8] sm:$0xff] %vm1953_vm6, %v6495_v0  ;;  %vm2025_vm14 = vcmask 1046534   ;;  %vm2027_vm15 = vcmask 1047559  }
  0x1b   :  { %v4494_v19 = vpack.c.bf16 %v3984_v17, %v3980_v16  ;;  %v3987_v21 = vld [vmem:[%s6488_s1 + $0xf8] sm:$0xf]  ;;  %v3982_v22 = vld [vmem:[%s6488_s1 + $0xd0] sm:$0xff]  ;;  %4864 = vmatpush1.bf16.msra.mxu1 %v5177_v14  ;;  %v51_v25 = vld [vmem:[%s6487_s0] sm:$0xff]  ;;  %1956 = vst.msk [vmem:[#allocation3 + $0x18] sm:$0xff] %vm1953_vm6, %v6495_v0  ;;  %vm2035_vm1 = vcmask 1041409  }
  0x1c   :  { %v4501_v23 = vpack.c.bf16 %v3987_v21, %v3983_v20  ;;  %v3986_v24 = vld [vmem:[%s6488_s1 + $0xf0] sm:$0xf]  ;;  %4493 = vmatprep.subr.msk.bf16.mxu0 %vm5146_vm4, %v4491_v18  ;;  %59 = vst.msk [vmem:[#allocation2 + $0x1] sm:$0xff] %vm41_vm0, %v51_v25  ;;  %v52_v28 = vld [vmem:[%s6487_s0 + $0x8] sm:$0xff]  ;;  %v54_v29 = vld [vmem:[%s6487_s0 + $0x18] sm:$0xf] }
  0x1d   :  { %v53_v26 = vld [vmem:[%s6487_s0 + $0x10] sm:$0xff]  ;;  %v5209_v27 = vpack.c.bf16 %v3986_v24, %v3982_v22  ;;  %v55_v30 = vld [vmem:[%s6487_s0 + $0x20] sm:$0xff]  ;;  %60 = vst.msk [vmem:[#allocation2 + $0x9] sm:$0xff] %vm41_vm0, %v52_v28  ;;  %v56_v31 = vld [vmem:[%s6487_s0 + $0x28] sm:$0xff]  ;;  %4496 = vmatpush1.bf16.msk.msra.mxu0 %vm5146_vm4, %v4494_v19  ;;  %vm2084_vm2 = vcmask 784384   ;;  %vm2320_vm3 = vcmask 1040384  }
  0x1e   :  { %61 = vst.msk [vmem:[#allocation2 + $0x11] sm:$0xff] %vm41_vm0, %v53_v26  ;;  %4863 = vmatprep.subr.msk.bf16.mxu1 %vm5146_vm4, %v4501_v23  ;;  %64 = vst.msk [vmem:[#allocation2 + $0x21] sm:$0xff] %vm41_vm0, %v55_v30  ;;  %v93_v32 = vld [vmem:[%s6488_s1 + $0x18] sm:$0xff]  ;;  %v57_v35 = vld [vmem:[%s6487_s0 + $0x30] sm:$0xff]  ;;  %4498 = vmatprep.subr.bf16.mxu0 %v4497_v10  ;;  %s5072_s14 = smov [#allocation7]  }
  0x1f   :  { %63 = vst.msk [vmem:[#allocation2 + $0x19] sm:$0xf] %vm62_vm5, %v54_v29  ;;  %v97_v33 = vld [vmem:[%s6488_s1 + $0x38] sm:$0xff]  ;;  %4865 = vmatpush1.bf16.msk.msra.mxu1 %vm5146_vm4, %v5209_v27  ;;  %v92_v37 = vld [vmem:[%s6488_s1 + $0x10] sm:$0xff]  ;;  %v91_v55 = vld [vmem:[%s6488_s1 + $0x8] sm:$0xff]  ;;  %s3963_s3 = sshll.u32 %s5072_s14, 4  ;;  %s3964_s3 = int_to_ptr.vmem [resolvable:$true] %s3963_s3 }
  0x20   :  { %65 = vst.msk [vmem:[#allocation2 + $0x29] sm:$0xff] %vm41_vm0, %v56_v31  ;;  %v4517_v34 = vpack.c.bf16 %v97_v33, %v93_v32  ;;  %66 = vst.msk [vmem:[#allocation2 + $0x31] sm:$0xff] %vm41_vm0, %v57_v35  ;;  %v58_v36 = vld [vmem:[%s6487_s0 + $0x38] sm:$0xf]  ;;  %v96_v40 = vld [vmem:[%s6488_s1 + $0x30] sm:$0xff]  ;;  %p5042_p9 = scmp.lt.s32.totalorder %s3964_s3, %s3964_s3 }
  0x21   :  { %67 = vst.msk [vmem:[#allocation2 + $0x39] sm:$0xf] %vm62_vm5, %v58_v36  ;;  %v101_v44 = vld [vmem:[%s6488_s1 + $0x58] sm:$0xff]  ;;  %v4519_v51 = vpack.c.bf16 %v96_v40, %v92_v37  ;;  %v100_v53 = vld [vmem:[%s6488_s1 + $0x50] sm:$0xff]  ;;  %v95_v59 = vld [vmem:[%s6488_s1 + $0x28] sm:$0xff] }
  0x22   :  { %4518 = vmatprep.subr.bf16.mxu1 %v4517_v34  ;;  %v105_v45 = vld [vmem:[%s6488_s1 + $0x78] sm:$0xf]  ;;  %v104_v54 = vld [vmem:[%s6488_s1 + $0x70] sm:$0xf]  ;;  %v4507_v2 = vpack.c.bf16 %v95_v59, %v91_v55  ;;  %v94_v28 = vld [vmem:[%s6488_s1 + $0x20] sm:$0xff]  ;;  %1958 = vst.msk [vmem:[#allocation3 + $0x28] sm:$0xff] %vm1953_vm6, %v6495_v0 }
  0x23   :  { %v106_v38 = vld [vmem:[#allocation2 + $0x1] sm:$0xff]  ;;  %v4521_v52 = vpack.c.bf16 %v105_v45, %v101_v44  ;;  %v4027_v60 = vld [vmem:[%s6488_s1 + $0x118] sm:$0xff]  ;;  %v4524_v63 = vpack.c.bf16 %v104_v54, %v100_v53  ;;  %v4030_v15 = vld [vmem:[%s6488_s1 + $0x130] sm:$0xff]  ;;  %1960 = vst.msk [vmem:[#allocation3 + $0x38] sm:$0xff] %vm1953_vm6, %v6495_v0 }
  0x24   :  { %v122_v41 = vcombine.high %v106_v38, %v106_v38  ;;  %v107_v43 = vld [vmem:[#allocation2 + $0x9] sm:$0xff]  ;;  %v4031_v61 = vld [vmem:[%s6488_s1 + $0x138] sm:$0xff]  ;;  %v68_v10 = vld [vmem:[#allocation2] sm:$0xff] }
  0x25   :  { %v108_v39 = vld [vmem:[#allocation2 + $0x11] sm:$0xff]  ;;  %v123_v46 = vcombine.high %v107_v43, %v107_v43  ;;  %v110_v48 = vld [vmem:[#allocation2 + $0x21] sm:$0xff]  ;;  %v4537_v3 = vpack.c.bf16 %v4031_v61, %v4027_v60  ;;  %v84_v12 = vcombine.high %v68_v10, %v68_v10 }
  0x26   :  { %v124_v42 = vcombine.high %v108_v39, %v108_v39  ;;  %v109_v47 = vld [vmem:[#allocation2 + $0x19] sm:$0xf]  ;;  %v5262_v49 = vcombine.low %v106_v38, %v122_v41  ;;  %v125_v58 = vcombine.high %v110_v48, %v110_v48  ;;  %v69_v13 = vld [vmem:[#allocation2 + $0x8] sm:$0xff]  ;;  %v70_v20 = vld [vmem:[#allocation2 + $0x10] sm:$0xff] }
  0x27   :  { %v5276_v56 = vcombine.low %v107_v43, %v123_v46  ;;  %v148_v57 = vcombine.low %v109_v47, %v110_v48  ;;  %v111_v62 = vld [vmem:[#allocation2 + $0x29] sm:$0xff]  ;;  %v112_v6 = vld [vmem:[#allocation2 + $0x31] sm:$0xff]  ;;  %v5320_v16 = vcombine.low %v68_v10, %v84_v12  ;;  %v85_v17 = vcombine.high %v69_v13, %v69_v13  ;;  %v72_v35 = vld [vmem:[#allocation2 + $0x20] sm:$0xff] }
  0x28   :  { %v147_v50 = vcombine.low %v108_v39, %v124_v42  ;;  %3990 = vmatmul.mubr.msk.f32.vlgmr.msra.gmra.mrb[0].mxu0 %vm41_vm0, %v5262_v49  ;;  %v149_v4 = vcombine.low %v125_v58, %v111_v62  ;;  %v126_v5 = vcombine.high %v111_v62, %v111_v62  ;;  %v127_v8 = vcombine.high %v112_v6, %v112_v6  ;;  %v113_v9 = vld [vmem:[#allocation2 + $0x39] sm:$0xf]  ;;  %v4038_v24 = vld [vmem:[%s6488_s1 + $0x170] sm:$0xf]  ;;  %v99_v30 = vld [vmem:[%s6488_s1 + $0x48] sm:$0xff] }
  0x29   :  { %4500 = vmatpush1.bf16.msra.mxu0 %v5177_v14  ;;  %249 = vmatprep.mubr.f32.mxu0 %v6495_v0  ;;  %v4026_v14 = vld [vmem:[%s6488_s1 + $0x110] sm:$0xff]  ;;  %v4035_v18 = vld [vmem:[%s6488_s1 + $0x158] sm:$0xff]  ;;  %v5339_v25 = vcombine.low %v69_v13, %v85_v17  ;;  %v86_v26 = vcombine.high %v70_v20, %v70_v20  ;;  %v103_v31 = vld [vmem:[%s6488_s1 + $0x68] sm:$0xf]  ;;  %v87_v42 = vcombine.high %v72_v35, %v72_v35 }
  0x2a   :  { %4001 = vmatmul.mubr.msk.f32.vlgmr.msra.gmra.mrb[0].mxu1 %vm41_vm0, %v147_v50  ;;  %4503 = vmatprep.subr.msk.bf16.mxu0 %vm5146_vm4, %v4501_v23  ;;  %v150_v7 = vcombine.low %v126_v5, %v112_v6  ;;  %v151_v11 = vcombine.low %v127_v8, %v113_v9  ;;  %v4039_v19 = vld [vmem:[%s6488_s1 + $0x178] sm:$0xf]  ;;  %v4539_v21 = vpack.c.bf16 %v4030_v15, %v4026_v14  ;;  %v4034_v23 = vld [vmem:[%s6488_s1 + $0x150] sm:$0xff]  ;;  %v98_v37 = vld [vmem:[%s6488_s1 + $0x40] sm:$0xff] }
  0x2b   :  { %368 = vmatprep.mubr.f32.mxu1 %v6495_v0  ;;  %4520 = vmatpush1.bf16.msra.mxu1 %v4519_v51  ;;  %v4541_v22 = vpack.c.bf16 %v4039_v19, %v4035_v18  ;;  %v4544_v29 = vpack.c.bf16 %v4038_v24, %v4034_v23  ;;  %v395_v32 = vcombine.low %v70_v20, %v86_v26  ;;  %v71_v34 = vld [vmem:[#allocation2 + $0x18] sm:$0xf]  ;;  %v102_v38 = vld [vmem:[%s6488_s1 + $0x60] sm:$0xf]  ;;  %v4025_v39 = vld [vmem:[%s6488_s1 + $0x108] sm:$0xff]  ;;  %v956_v24 = vlaneseq }
  0x2c   :  { %4523 = vmatprep.subr.msk.bf16.mxu1 %vm5146_vm4, %v4521_v52  ;;  %3991 = vmatmul.mubr.msk.f32.gmra.mrb[2].mxu0 %vm41_vm0, %v5276_v56  ;;  %v4511_v36 = vpack.c.bf16 %v103_v31, %v99_v30  ;;  %v4029_v40 = vld [vmem:[%s6488_s1 + $0x128] sm:$0xff]  ;;  %v396_v41 = vcombine.low %v71_v34, %v72_v35  ;;  %v4514_v43 = vpack.c.bf16 %v102_v38, %v98_v37  ;;  %v4024_v46 = vld [vmem:[%s6488_s1 + $0x100] sm:$0xff]  ;;  %v74_v53 = vld [vmem:[#allocation2 + $0x30] sm:$0xff] }
  0x2d   :  { %255 = vmatprep.mubr.f32.mxu0 %v6495_v0  ;;  %4506 = vmatpush1.bf16.msk.msra.mxu0 %vm5146_vm4, %v5209_v27  ;;  %v90_v27 = vld [vmem:[%s6488_s1] sm:$0xff]  ;;  %v73_v44 = vld [vmem:[#allocation2 + $0x28] sm:$0xff]  ;;  %v4527_v45 = vpack.c.bf16 %v4029_v40, %v4025_v39  ;;  %v89_v58 = vcombine.high %v74_v53, %v74_v53  ;;  %v75_v59 = vld [vmem:[#allocation2 + $0x38] sm:$0xf] }
  0x2e   :  { %4002 = vmatmul.mubr.msk.f32.gmra.mrb[2].mxu1 %vm41_vm0, %v148_v57  ;;  %4508 = vmatprep.subr.bf16.mxu0 %v4507_v2  ;;  %v4509_v33 = vpack.c.bf16 %v94_v28, %v90_v27  ;;  %v4028_v47 = vld [vmem:[%s6488_s1 + $0x120] sm:$0xff]  ;;  %v4033_v48 = vld [vmem:[%s6488_s1 + $0x148] sm:$0xff]  ;;  %v88_v51 = vcombine.high %v73_v44, %v73_v44  ;;  %v642_v5 = vld [vmem:[#allocation2 + $0x12] sm:$0xff] }
  0x2f   :  { %374 = vmatprep.mubr.f32.mxu1 %v6495_v0  ;;  %4526 = vmatpush1.bf16.msk.msra.mxu1 %vm5146_vm4, %v4524_v63  ;;  %v4529_v52 = vpack.c.bf16 %v4028_v47, %v4024_v46  ;;  %v4032_v55 = vld [vmem:[%s6488_s1 + $0x140] sm:$0xff]  ;;  %v399_v62 = vcombine.low %v89_v58, %v75_v59  ;;  %v641_v2 = vld [vmem:[#allocation2 + $0xa] sm:$0xff]  ;;  %v643_v8 = vld [vmem:[#allocation2 + $0x1a] sm:$0xf] }
  0x30   :  { %4538 = vmatprep.subr.bf16.mxu1 %v4537_v3  ;;  %3992 = vmatmul.mubr.msk.f32.gmra.mrb[4].mxu0 %vm41_vm0, %v147_v50  ;;  %v397_v50 = vcombine.low %v87_v42, %v73_v44  ;;  %v640_v60 = vld [vmem:[#allocation2 + $0x2] sm:$0xff]  ;;  %v645_v12 = vld [vmem:[#allocation2 + $0x2a] sm:$0xff]  ;;  %v646_v15 = vld [vmem:[#allocation2 + $0x32] sm:$0xff] }
  0x31   :  { %261 = vmatprep.mubr.f32.mxu0 %v6495_v0  ;;  %v656_v63 = vcombine.high %v640_v60, %v640_v60  ;;  %v644_v9 = vld [vmem:[#allocation2 + $0x22] sm:$0xff]  ;;  %v660_v14 = vcombine.high %v645_v12, %v645_v12  ;;  %v661_v17 = vcombine.high %v646_v15, %v646_v15  ;;  %v647_v18 = vld [vmem:[#allocation2 + $0x3a] sm:$0xf] }
  0x32   :  { %4003 = vmatmul.mubr.msk.f32.gmra.mrb[4].mxu1 %vm41_vm0, %v149_v4  ;;  %v682_v10 = vcombine.low %v643_v8, %v644_v9  ;;  %v954_v27 = vld [vmem:[%s6489_s2] sm:$0xf]  ;;  %s5068_s2 = smov 32  }
  0x33   :  { %380 = vmatprep.mubr.f32.mxu1 %v6495_v0  ;;  %v679_v3 = vcombine.low %v640_v60, %v656_v63  ;;  %v685_v19 = vcombine.low %v661_v17, %v647_v18 }
  0x34   :  { %3993 = vmatmul.mubr.msk.f32.gmra.mrb[6].mxu0 %vm41_vm0, %v148_v57  ;;  %v398_v57 = vcombine.low %v88_v51, %v74_v53 }
  0x35   :  { %267 = vmatprep.mubr.f32.mxu0 %v6495_v0 }
  0x36   :  { %4004 = vmatmul.mubr.msk.f32.gmra.mrb[6].mxu1 %vm41_vm0, %v150_v7 }
  0x37   :  { %386 = vmatprep.mubr.f32.mxu1 %v6495_v0 }
  0x38   :  { %3994 = vmatmul.mubr.msk.f32.gmra.mrb[8].mxu0 %vm41_vm0, %v149_v4  ;;  %v657_v4 = vcombine.high %v641_v2, %v641_v2 }
  0x39   :  { %273 = vmatprep.mubr.f32.mxu0 %v6495_v0 }
  0x3a   :  { %4005 = vmatmul.mubr.msk.f32.gmra.mrb[8].mxu1 %vm41_vm0, %v151_v11  ;;  %v680_v6 = vcombine.low %v641_v2, %v657_v4 }
  0x3b   :  { %597 = vmatprep.mubr.f32.mxu1 %v6495_v0 }
  0x3c   :  { %3995 = vmatmul.mubr.msk.f32.gmra.mrb[10].mxu0 %vm41_vm0, %v150_v7  ;;  %v658_v7 = vcombine.high %v642_v5, %v642_v5 }
  0x3d   :  { %279 = vmatprep.mubr.f32.mxu0 %v6495_v0 }
  0x3e   :  { %4017 = vmatmul.mubr.msk.f32.vlgmr.msra.gmra.mrb[10].mxu1 %vm41_vm0, %v5320_v16  ;;  %v681_v1 = vcombine.low %v642_v5, %v658_v7 }
  0x3f   :  { %603 = vmatprep.mubr.f32.mxu1 %v6495_v0  ;;  %4540 = vmatpush1.bf16.msra.mxu1 %v4539_v21 }
  0x40   :  { %4543 = vmatprep.subr.msk.bf16.mxu1 %vm5146_vm4, %v4541_v22  ;;  %3996 = vmatmul.mubr.msk.f32.gmra.mrb[12].mxu0 %vm41_vm0, %v151_v11  ;;  %v659_v11 = vcombine.high %v644_v9, %v644_v9 }
  0x41   :  { %350 = vmatprep.mubr.f32.mxu0 %v6495_v0 }
  0x42   :  { %4018 = vmatmul.mubr.msk.f32.gmra.mrb[12].mxu1 %vm41_vm0, %v5339_v25  ;;  %v683_v13 = vcombine.low %v659_v11, %v645_v12 }
  0x43   :  { %609 = vmatprep.mubr.f32.mxu1 %v6495_v0  ;;  %4546 = vmatpush1.bf16.msk.msra.mxu1 %vm5146_vm4, %v4544_v29 }
  0x44   :  { %3999 = vmatmul.mubr.msk.f32.vlgmr.msra.gmra.mrb[14].mxu0 %vm41_vm0, %v5262_v49  ;;  %v4037_v49 = vld [vmem:[%s6488_s1 + $0x168] sm:$0xf] }
  0x45   :  { %4510 = vmatpush1.bf16.msra.mxu0 %v4509_v33  ;;  %356 = vmatprep.mubr.f32.mxu0 %v6495_v0  ;;  %v4531_v54 = vpack.c.bf16 %v4037_v49, %v4033_v48 }
  0x46   :  { %4019 = vmatmul.mubr.msk.f32.gmra.mrb[0].mxu1 %vm41_vm0, %v395_v32  ;;  %4513 = vmatprep.subr.msk.bf16.mxu0 %vm5146_vm4, %v4511_v36 }
  0x47   :  { %615 = vmatprep.mubr.f32.mxu1 %v6495_v0 }
  0x48   :  { %4000 = vmatmul.mubr.msk.f32.gmra.mrb[16].mxu0 %vm41_vm0, %v5276_v56  ;;  %v4036_v56 = vld [vmem:[%s6488_s1 + $0x160] sm:$0xf] }
  0x49   :  { %4516 = vmatpush1.bf16.msk.msra.mxu0 %vm5146_vm4, %v4514_v43  ;;  %490 = vmatprep.mubr.f32.mxu0 %v6495_v0  ;;  %v4534_v61 = vpack.c.bf16 %v4036_v56, %v4032_v55 }
  0x4a   :  { %4020 = vmatmul.mubr.msk.f32.gmra.mrb[2].mxu1 %vm41_vm0, %v396_v41  ;;  %4528 = vmatprep.subr.bf16.mxu0 %v4527_v45 }
  0x4b   :  { %621 = vmatprep.mubr.f32.mxu1 %v6495_v0 }
  0x4c   :  { %4008 = vmatmul.mubr.msk.f32.vlgmr.msra.gmra.mrb[0].mxu0 %vm41_vm0, %v5320_v16  ;;  %v684_v16 = vcombine.low %v660_v14, %v646_v15 }
  0x4d   :  { %4530 = vmatpush1.bf16.msra.mxu0 %v4529_v52  ;;  %496 = vmatprep.mubr.f32.mxu0 %v6495_v0 }
  0x4e   :  { %4021 = vmatmul.mubr.msk.f32.gmra.mrb[4].mxu1 %vm41_vm0, %v397_v50  ;;  %4533 = vmatprep.subr.msk.bf16.mxu0 %vm5146_vm4, %v4531_v54 }
  0x4f   :  { %627 = vmatprep.mubr.f32.mxu1 %v6495_v0 }
  0x50   :  { %4009 = vmatmul.mubr.msk.f32.gmra.mrb[2].mxu0 %vm41_vm0, %v5339_v25  ;;  %v5460_v25 = vshrl.u32 %v956_v24, 7 }
  0x51   :  { %502 = vmatprep.mubr.f32.mxu0 %v6495_v0  ;;  %4536 = vmatpush1.bf16.msk.msra.mxu0 %vm5146_vm4, %v4534_v61  ;;  %vm2321_vm4 = vmor %vm2320_vm3, %vm2017_vm10 }
  0x52   :  { %4022 = vmatmul.mubr.msk.f32.gmra.mrb[6].mxu1 %vm41_vm0, %v398_v57  ;;  %v966_v26 = vsub.s32 2, %v5460_v25  ;;  %v970_v28 = vsub.s32 3, %v5460_v25  ;;  %v958_v48 = vsub.s32 0, %v5460_v25  ;;  %v6497_v51 = vsub.s32 1, %v5460_v25  ;;  %vm2322_vm5 = vmor %vm2321_vm4, %vm2021_vm12 }
  0x53   :  { %633 = vmatprep.mubr.f32.mxu1 %v6495_v0 }
  0x54   :  { %4010 = vmatmul.mubr.msk.f32.gmra.mrb[4].mxu0 %vm41_vm0, %v395_v32  ;;  %v5467_v29 = vrot.slane %v954_v27, %v966_v26  ;;  %v5469_v31 = vrot.slane %v954_v27, %v970_v28  ;;  %v5484_v54 = vrot.slane %v954_v27, %v958_v48  ;;  %v5488_v56 = vrot.slane %v954_v27, %v6497_v51 }
  0x55   :  { %508 = vmatprep.mubr.f32.mxu0 %v6495_v0 }
  0x56   :  { %4023 = vmatmul.mubr.msk.f32.gmra.mrb[8].mxu1 %vm41_vm0, %v399_v62 }
  0x57   :  { %883 = vmatprep.mubr.f32.mxu1 %v6495_v0 }
  0x58   :  { %4011 = vmatmul.mubr.msk.f32.gmra.mrb[6].mxu0 %vm41_vm0, %v396_v41 }
  0x59   :  { %514 = vmatprep.mubr.f32.mxu0 %v6495_v0 }
  0x5a   :  { %4051 = vmatmul.mubr.msk.f32.vlgmr.msra.gmra.mrb[10].mxu1 %vm41_vm0, %v679_v3 }
  0x5b   :  { %889 = vmatprep.mubr.f32.mxu1 %v6495_v0 }
  0x5c   :  { %4012 = vmatmul.mubr.msk.f32.gmra.mrb[8].mxu0 %vm41_vm0, %v397_v50 }
  0x5d   :  { %520 = vmatprep.mubr.f32.mxu0 %v6495_v0 }
  0x5e   :  { %4052 = vmatmul.mubr.msk.f32.gmra.mrb[12].mxu1 %vm41_vm0, %v680_v6 }
  0x5f   :  { %895 = vmatprep.mubr.f32.mxu1 %v6495_v0 }
  0x60   :  { %4013 = vmatmul.mubr.msk.f32.gmra.mrb[10].mxu0 %vm41_vm0, %v398_v57 }
  0x61   :  { %526 = vmatprep.mubr.f32.mxu0 %v6495_v0 }
  0x62   :  { %4053 = vmatmul.mubr.msk.f32.gmra.mrb[0].mxu1 %vm41_vm0, %v681_v1 }
  0x63   :  { %901 = vmatprep.mubr.f32.mxu1 %v6495_v0 }
  0x64   :  { %4014 = vmatmul.mubr.msk.f32.gmra.mrb[12].mxu0 %vm41_vm0, %v399_v62 }
  0x65   :  { %776 = vmatprep.mubr.f32.mxu0 %v6495_v0 }
  0x66   :  { %4054 = vmatmul.mubr.msk.f32.gmra.mrb[2].mxu1 %vm41_vm0, %v682_v10 }
  0x67   :  { %907 = vmatprep.mubr.f32.mxu1 %v6495_v0 }
  0x68   :  { %4042 = vmatmul.mubr.msk.f32.vlgmr.msra.gmra.mrb[0].mxu0 %vm41_vm0, %v679_v3 }
  0x69   :  { %782 = vmatprep.mubr.f32.mxu0 %v6495_v0 }
  0x6a   :  { %4055 = vmatmul.mubr.msk.f32.gmra.mrb[4].mxu1 %vm41_vm0, %v683_v13 }
  0x6b   :  { %913 = vmatprep.mubr.f32.mxu1 %v6495_v0 }
  0x6c   :  { %4043 = vmatmul.mubr.msk.f32.gmra.mrb[2].mxu0 %vm41_vm0, %v680_v6 }
  0x6d   :  { %788 = vmatprep.mubr.f32.mxu0 %v6495_v0 }
  0x6e   :  { %4056 = vmatmul.mubr.msk.f32.gmra.mrb[6].mxu1 %vm41_vm0, %v684_v16 }
  0x6f   :  { %919 = vmatprep.mubr.f32.mxu1 %v6495_v0 }
  0x70   :  { %4044 = vmatmul.mubr.msk.f32.gmra.mrb[4].mxu0 %vm41_vm0, %v681_v1 }
  0x71   :  { %794 = vmatprep.mubr.f32.mxu0 %v6495_v0 }
  0x72   :  { %4057 = vmatmul.mubr.msk.f32.gmra.mrb[8].mxu1 %vm41_vm0, %v685_v19 }
  0x74   :  { %4045 = vmatmul.mubr.msk.f32.gmra.mrb[6].mxu0 %vm41_vm0, %v682_v10 }
  0x75   :  { %800 = vmatprep.mubr.f32.mxu0 %v6495_v0 }
  0x78   :  { %4046 = vmatmul.mubr.msk.f32.gmra.mrb[8].mxu0 %vm41_vm0, %v683_v13 }
  0x79   :  { %806 = vmatprep.mubr.f32.mxu0 %v6495_v0 }
  0x7c   :  { %4047 = vmatmul.mubr.msk.f32.gmra.mrb[10].mxu0 %vm41_vm0, %v684_v16 }
  0x7d   :  { %812 = vmatprep.mubr.f32.mxu0 %v6495_v0 }
  0x80   :  { %4048 = vmatmul.mubr.msk.f32.gmra.mrb[12].mxu0 %vm41_vm0, %v685_v19  ;;  %vm2081_vm0 = vcmask 785409  }
 0x117   :  { %v352_v20 = vpop.f32.mrb[14].mxu0 }
 0x118   :  { %v354_v21 = vpop.f32.mrb[15].mxu0 }
 0x11b   :  { %v358_v22 = vpop.f32.mrb[16].mxu0 }
 0x11c   :  { %v360_v23 = vpop.f32.mrb[17].mxu0 }
 0x12d   :  { %v885_v30 = vpop.f32.mrb[10].mxu1 }
 0x12e   :  { %v4866_v32 = vadd.f32 %v885_v30, %v352_v20  ;;  %v887_v33 = vpop.f32.mrb[11].mxu1 }
 0x12f   :  { %v4867_v34 = vadd.f32 %v887_v33, %v354_v21 }
 0x130   :  { %v978_v35 = vadd.f32 %v4866_v32, %v5467_v29 }
 0x131   :  { %v891_v36 = vpop.f32.mrb[12].mxu1  ;;  %v979_v37 = vadd.f32 %v4867_v34, %v5469_v31 }
 0x132   :  { %v4868_v38 = vadd.f32 %v891_v36, %v358_v22  ;;  %v893_v39 = vpop.f32.mrb[13].mxu1  ;;  %v1006_v40 = vmax.f32 %v978_v35, 0.0 }
 0x133   :  { %v4869_v41 = vadd.f32 %v893_v39, %v360_v23  ;;  %v1007_v42 = vmax.f32 %v979_v37, 0.0 }
 0x134   :  { %v982_v43 = vadd.f32 %v4868_v38, %v5467_v29  ;;  %1055 = vrot.lane.b32.xlu0 %v1006_v40, %s5068_s2 }
 0x135   :  { %v983_v44 = vadd.f32 %v4869_v41, %v5469_v31  ;;  %1057 = vrot.lane.b32.xlu1 %v1007_v42, %s5068_s2  ;;  %v897_v45 = vpop.f32.mrb[0].mxu1 }
 0x136   :  { %v1010_v46 = vmax.f32 %v982_v43, 0.0  ;;  %v899_v47 = vpop.f32.mrb[1].mxu1  ;;  %v986_v50 = vadd.f32 %v5467_v29, %v897_v45 }
 0x137   :  { %v1011_v49 = vmax.f32 %v983_v44, 0.0  ;;  %v987_v63 = vadd.f32 %v5469_v31, %v899_v47 }
 0x138   :  { %1061 = vrot.lane.b32.xlu0 %v1010_v46, %s5068_s2  ;;  %v1014_v55 = vmax.f32 %v986_v50, 0.0 }
 0x139   :  { %1063 = vrot.lane.b32.xlu1 %v1011_v49, %s5068_s2  ;;  %v903_v52 = vpop.f32.mrb[2].mxu1  ;;  %v1015_v8 = vmax.f32 %v987_v63, 0.0  ;;  %v2371_v63 = vld [vmem:[#allocation4 + $0x1d0] sm:$0xff] }
 0x13a   :  { %v905_v53 = vpop.f32.mrb[3].mxu1  ;;  %v990_v16 = vadd.f32 %v5467_v29, %v903_v52 }
 0x13b   :  { %v778_v57 = vpop.f32.mrb[0].mxu0  ;;  %v991_v23 = vadd.f32 %v5469_v31, %v905_v53 }
 0x13c   :  { %v5492_v59 = vadd.f32 %v5484_v54, %v778_v57  ;;  %v780_v60 = vpop.f32.mrb[1].mxu0  ;;  %v1018_v22 = vmax.f32 %v990_v16, 0.0  ;;  %v2372_v57 = vld [vmem:[#allocation4 + $0x1d8] sm:$0xff]  ;;  %v2377_v16 = vld [vmem:[#allocation4 + $0x200] sm:$0xff] }
 0x13d   :  { %1067 = vrot.lane.b32.xlu1 %v1014_v55, %s5068_s2  ;;  %v909_v58 = vpop.f32.mrb[4].mxu1  ;;  %v5495_v62 = vadd.f32 %v5488_v56, %v780_v60  ;;  %v1019_v32 = vmax.f32 %v991_v23, 0.0  ;;  %v2384_v23 = vld [vmem:[#allocation4 + $0x238] sm:$0xff] }
 0x13e   :  { %v911_v61 = vpop.f32.mrb[5].mxu1  ;;  %v994_v33 = vadd.f32 %v5467_v29, %v909_v58 }
 0x13f   :  { %v1005_v2 = vmax.f32 %v5495_v62, 0.0  ;;  %v784_v3 = vpop.f32.mrb[2].mxu0  ;;  %v995_v24 = vadd.f32 %v5469_v31, %v911_v61  ;;  %v2401_v62 = vld [vmem:[#allocation4 + $0x2c0] sm:$0xff] }
 0x140   :  { %v5500_v5 = vadd.f32 %v5484_v54, %v784_v3  ;;  %v786_v6 = vpop.f32.mrb[3].mxu0  ;;  %v1022_v39 = vmax.f32 %v994_v33, 0.0  ;;  %v2374_v3 = vld [vmem:[#allocation4 + $0x1e8] sm:$0xff] }
 0x141   :  { %v915_v4 = vpop.f32.mrb[6].mxu1  ;;  %v5503_v1 = vadd.f32 %v5488_v56, %v786_v6  ;;  %1053 = vrot.lane.b32.xlu0 %v1005_v2, %s5068_s2  ;;  %v1023_v34 = vmax.f32 %v995_v24, 0.0  ;;  %v2386_v33 = vld [vmem:[#allocation4 + $0x248] sm:$0xff] }
 0x142   :  { %v917_v7 = vpop.f32.mrb[7].mxu1  ;;  %v998_v35 = vadd.f32 %v5467_v29, %v915_v4  ;;  %v2376_v4 = vld [vmem:[#allocation4 + $0x1f8] sm:$0xff] }
 0x143   :  { %v1009_v9 = vmax.f32 %v5503_v1, 0.0  ;;  %v790_v10 = vpop.f32.mrb[4].mxu0  ;;  %v999_v41 = vadd.f32 %v5469_v31, %v917_v7  ;;  %v4551_v6 = vpack.c.bf16 %v2376_v4, %v2374_v3  ;;  %v2373_v7 = vld [vmem:[#allocation4 + $0x1e0] sm:$0xff]  ;;  %v2395_v4 = vld [vmem:[#allocation4 + $0x290] sm:$0xff] }
 0x144   :  { %v5510_v12 = vadd.f32 %v5484_v54, %v790_v10  ;;  %v792_v13 = vpop.f32.mrb[5].mxu0  ;;  %v1026_v40 = vmax.f32 %v998_v35, 0.0  ;;  %v2393_v3 = vld [vmem:[#allocation4 + $0x280] sm:$0xff] }
 0x145   :  { %v921_v11 = vpop.f32.mrb[8].mxu1  ;;  %v5513_v15 = vadd.f32 %v5488_v56, %v792_v13  ;;  %1069 = vrot.lane.b32.xlu0 %v1015_v8, %s5068_s2  ;;  %1059 = vrot.lane.b32.xlu1 %v1009_v9, %s5068_s2  ;;  %v1027_v46 = vmax.f32 %v999_v41, 0.0  ;;  %v2375_v8 = vld [vmem:[#allocation4 + $0x1f0] sm:$0xff]  ;;  %v2380_v13 = vld [vmem:[#allocation4 + $0x218] sm:$0xff] }
 0x146   :  { %v923_v14 = vpop.f32.mrb[9].mxu1  ;;  %v1002_v52 = vadd.f32 %v5467_v29, %v921_v11  ;;  %v2369_v29 = vld [vmem:[#allocation4 + $0x1c0] sm:$0xff]  ;;  %v4553_v10 = vpack.c.bf16 %v2375_v8, %v2373_v7  ;;  %v2378_v11 = vld [vmem:[#allocation4 + $0x208] sm:$0xff]  ;;  %v2392_v41 = vld [vmem:[#allocation4 + $0x278] sm:$0xff] }
 0x147   :  { %v1013_v17 = vmax.f32 %v5513_v15, 0.0  ;;  %v796_v18 = vpop.f32.mrb[6].mxu0  ;;  %v1003_v53 = vadd.f32 %v5469_v31, %v923_v14  ;;  %v4549_v31 = vpack.c.bf16 %v2371_v63, %v2369_v29  ;;  %v4555_v14 = vpack.c.bf16 %v2380_v13, %v2378_v11  ;;  %v2396_v29 = vld [vmem:[#allocation4 + $0x298] sm:$0xff] }
 0x148   :  { %v5522_v19 = vadd.f32 %v5484_v54, %v796_v18  ;;  %v798_v20 = vpop.f32.mrb[7].mxu0  ;;  %v1030_v58 = vmax.f32 %v1002_v52, 0.0  ;;  %v2379_v18 = vld [vmem:[#allocation4 + $0x210] sm:$0xff]  ;;  %v2400_v11 = vld [vmem:[#allocation4 + $0x2b8] sm:$0xff]  ;;  %v1004_v13 = vmax.f32 %v5492_v59, 0.0  ;;  %v1012_v59 = vmax.f32 %v5510_v12, 0.0 }
 0x149   :  { %v5525_v21 = vadd.f32 %v5488_v56, %v798_v20  ;;  %1065 = vrot.lane.b32.xlu0 %v1013_v17, %s5068_s2  ;;  %v1031_v60 = vmax.f32 %v1003_v53, 0.0  ;;  %v4557_v20 = vpack.c.bf16 %v2379_v18, %v2377_v16 }
 0x14b   :  { %v1017_v26 = vmax.f32 %v5525_v21, 0.0  ;;  %v802_v27 = vpop.f32.mrb[8].mxu0 }
 0x14c   :  { %v5534_v28 = vadd.f32 %v5484_v54, %v802_v27  ;;  %v804_v30 = vpop.f32.mrb[9].mxu0  ;;  %v2381_v27 = vld [vmem:[#allocation4 + $0x220] sm:$0xff] }
 0x14d   :  { %1073 = vrot.lane.b32.xlu0 %v1018_v22, %s5068_s2  ;;  %1071 = vrot.lane.b32.xlu1 %v1017_v26, %s5068_s2  ;;  %v5549_v42 = vadd.f32 %v5488_v56, %v804_v30  ;;  %v2382_v22 = vld [vmem:[#allocation4 + $0x228] sm:$0xff]  ;;  %v2383_v30 = vld [vmem:[#allocation4 + $0x230] sm:$0xff] }
 0x14e   :  { %v4559_v24 = vpack.c.bf16 %v2384_v23, %v2382_v22  ;;  %v2399_v22 = vld [vmem:[#allocation4 + $0x2b0] sm:$0xff] }
 0x14f   :  { %v808_v36 = vpop.f32.mrb[10].mxu0  ;;  %v1021_v47 = vmax.f32 %v5549_v42, 0.0 }
 0x150   :  { %v5543_v37 = vadd.f32 %v5484_v54, %v808_v36  ;;  %v810_v38 = vpop.f32.mrb[11].mxu0  ;;  %v2385_v36 = vld [vmem:[#allocation4 + $0x240] sm:$0xff] }
 0x151   :  { %1081 = vrot.lane.b32.xlu0 %v1023_v34, %s5068_s2  ;;  %1075 = vrot.lane.b32.xlu1 %v1019_v32, %s5068_s2  ;;  %v5566_v49 = vadd.f32 %v5488_v56, %v810_v38  ;;  %v4561_v32 = vpack.c.bf16 %v2383_v30, %v2381_v27  ;;  %v2388_v34 = vld [vmem:[#allocation4 + $0x258] sm:$0xff]  ;;  %v2387_v38 = vld [vmem:[#allocation4 + $0x250] sm:$0xff] }
 0x152   :  { %v4563_v35 = vpack.c.bf16 %v2388_v34, %v2386_v33  ;;  %v1008_v33 = vmax.f32 %v5500_v5, 0.0  ;;  %v2402_v34 = vld [vmem:[#allocation4 + $0x2c8] sm:$0xff] }
 0x153   :  { %v814_v43 = vpop.f32.mrb[12].mxu0 }
 0x154   :  { %v5560_v44 = vadd.f32 %v5484_v54, %v814_v43  ;;  %v816_v45 = vpop.f32.mrb[13].mxu0  ;;  %v1025_v54 = vmax.f32 %v5566_v49, 0.0 }
 0x155   :  { %1085 = vrot.lane.b32.xlu0 %v1026_v40, %s5068_s2  ;;  %1079 = vrot.lane.b32.xlu1 %v1022_v39, %s5068_s2  ;;  %v5569_v50 = vadd.f32 %v5488_v56, %v816_v45  ;;  %v2370_v56 = vld [vmem:[#allocation4 + $0x1c8] sm:$0xff]  ;;  %v4565_v39 = vpack.c.bf16 %v2387_v38, %v2385_v36  ;;  %v2389_v45 = vld [vmem:[#allocation4 + $0x260] sm:$0xff] }
 0x156   :  { %v4547_v61 = vpack.c.bf16 %v2372_v57, %v2370_v56  ;;  %v2390_v40 = vld [vmem:[#allocation4 + $0x268] sm:$0xff]  ;;  %v5069_v57 = vmov 1983009808  }
 0x157   :  { %v1029_v55 = vmax.f32 %v5569_v50, 0.0  ;;  %v4567_v43 = vpack.c.bf16 %v2392_v41, %v2390_v40  ;;  %v2424_v50 = vld [vmem:[#allocation4 + $0x378] sm:$0xff] }
 0x158   :  { %4548 = vmatprep.subr.bf16.mxu0 %v4547_v61  ;;  %v2394_v61 = vld [vmem:[#allocation4 + $0x288] sm:$0xff] }
 0x159   :  { %1087 = vrot.lane.b32.xlu1 %v1027_v46, %s5068_s2  ;;  %1077 = vrot.lane.b32.xlu0 %v1021_v47, %s5068_s2  ;;  %v2391_v46 = vld [vmem:[#allocation4 + $0x270] sm:$0xff] }
 0x15a   :  { %4550 = vmatpush1.bf16.msra.mxu0 %v4549_v31  ;;  %v4569_v52 = vpack.c.bf16 %v2391_v46, %v2389_v45  ;;  %v4571_v31 = vpack.c.bf16 %v2396_v29, %v2394_v61  ;;  %v1016_v45 = vmax.f32 %v5522_v19, 0.0  ;;  %v1028_v61 = vmax.f32 %v5560_v44, 0.0 }
 0x15b   :  { %4552 = vmatprep.subr.bf16.mxu0 %v4551_v6  ;;  %v4573_v6 = vpack.c.bf16 %v2395_v4, %v2393_v3  ;;  %v2408_v3 = vld [vmem:[#allocation4 + $0x2f8] sm:$0xff] }
 0x15d   :  { %1083 = vrot.lane.b32.xlu1 %v1025_v54, %s5068_s2  ;;  %1089 = vrot.lane.b32.xlu0 %v1029_v55, %s5068_s2 }
 0x15e   :  { %4554 = vmatpush1.bf16.msra.mxu0 %v4553_v10  ;;  %v2398_v10 = vld [vmem:[#allocation4 + $0x2a8] sm:$0xff] }
 0x15f   :  { %4556 = vmatprep.subr.bf16.mxu0 %v4555_v14  ;;  %v4575_v18 = vpack.c.bf16 %v2400_v11, %v2398_v10 }
 0x161   :  { %1091 = vrot.lane.b32.xlu1 %v1030_v58, %s5068_s2  ;;  %1093 = vrot.lane.b32.xlu0 %v1031_v60, %s5068_s2  ;;  %v1155_v58 = vunpack.c.l.s4 %v5069_v57 }
 0x162   :  { %4558 = vmatpush1.bf16.msra.mxu0 %v4557_v20  ;;  %v2397_v20 = vld [vmem:[#allocation4 + $0x2a0] sm:$0xff] }
 0x163   :  { %4560 = vmatprep.subr.bf16.mxu0 %v4559_v24  ;;  %v1156_v7 = vunpack.c.0.s8 %v1155_v58  ;;  %v4577_v24 = vpack.c.bf16 %v2399_v22, %v2397_v20 }
 0x165   :  { %v5591_v27 = vsub.s32 %v1156_v7, %v5460_v25 }
 0x166   :  { %4562 = vmatpush1.bf16.msra.mxu0 %v4561_v32 }
 0x167   :  { %4564 = vmatprep.subr.bf16.mxu0 %v4563_v35  ;;  %v2404_v35 = vld [vmem:[#allocation4 + $0x2d8] sm:$0xff] }
 0x16a   :  { %4566 = vmatpush1.bf16.msra.mxu0 %v4565_v39 }
 0x16b   :  { %4568 = vmatprep.subr.bf16.mxu0 %v4567_v43  ;;  %v4579_v43 = vpack.c.bf16 %v2404_v35, %v2402_v34 }
 0x16e   :  { %4570 = vmatpush1.bf16.msra.mxu0 %v4569_v52 }
 0x16f   :  { %4572 = vmatprep.subr.bf16.mxu0 %v4571_v31 }
 0x172   :  { %4574 = vmatpush1.bf16.msra.mxu0 %v4573_v6 }
 0x173   :  { %4576 = vmatprep.subr.bf16.mxu0 %v4575_v18 }
 0x176   :  { %4578 = vmatpush1.bf16.msra.mxu0 %v4577_v24 }
 0x177   :  { %4580 = vmatprep.subr.bf16.mxu0 %v4579_v43 }
 0x1a6   :  { %v1056_v56 = vpop.permute.xlu0 %1055 }
 0x1a7   :  { %v1058_v53 = vpop.permute.xlu1 %1057 }
 0x1a8   :  { %v1097_v8 = vsel %vm1095_vm7, %v1056_v56, %v1058_v53  ;;  %v1020_v53 = vmax.f32 %v5534_v28, 0.0 }
 0x1a9   :  { %v1125_v30 = vmax.f32 %v1005_v2, %v1097_v8  ;;  %v2403_v2 = vld [vmem:[#allocation4 + $0x2d0] sm:$0xff] }
 0x1aa   :  { %v1062_v63 = vpop.permute.xlu0 %1061  ;;  %v4581_v52 = vpack.c.bf16 %v2403_v2, %v2401_v62 }
 0x1ab   :  { %v1064_v60 = vpop.permute.xlu1 %1063 }
 0x1ac   :  { %v1099_v36 = vsel %vm1095_vm7, %v1062_v63, %v1064_v60  ;;  %v1024_v60 = vmax.f32 %v5543_v37, 0.0  ;;  %4582 = vmatpush1.bf16.msra.mxu0 %v4581_v52 }
 0x1ad   :  { %v1127_v29 = vmax.f32 %v1009_v9, %v1099_v36 }
 0x1af   :  { %v1068_v14 = vpop.permute.xlu1 %1067 }
 0x1b3   :  { %v1054_v16 = vpop.permute.xlu0 %1053 }
 0x1b4   :  { %v1096_v23 = vsel %vm1095_vm7, %v1054_v16, %v1056_v56 }
 0x1b5   :  { %v1124_v32 = vmax.f32 %v1004_v13, %v1096_v23 }
 0x1b7   :  { %v1152_v38 = vcombine.low %v1124_v32, %v1125_v30  ;;  %v1153_v39 = vcombine.high %v1124_v32, %v1125_v30  ;;  %v1070_v40 = vpop.permute.xlu0 %1069  ;;  %v1060_v41 = vpop.permute.xlu1 %1059 }
 0x1b8   :  { %v1101_v5 = vsel %vm1095_vm7, %v1068_v14, %v1070_v40  ;;  %v1098_v46 = vsel %vm1095_vm7, %v1060_v41, %v1062_v63  ;;  %v2406_v63 = vld [vmem:[#allocation4 + $0x2e8] sm:$0xff] }
 0x1b9   :  { %v1160_v56 = vrot.slane %v1152_v38, %v5591_v27  ;;  %v1167_v57 = vrot.slane %v1153_v39, %v5591_v27  ;;  %v1126_v58 = vmax.f32 %v1008_v33, %v1098_v46  ;;  %v5610_v31 = vmax.f32 %v1013_v17, %v1101_v5 }
 0x1ba   :  { %v4583_v1 = vpack.c.bf16 %v2408_v3, %v2406_v63 }
 0x1bb   :  { %v1168_v4 = vcombine.high %v1160_v56, %v1160_v56  ;;  %v1169_v6 = vcombine.high %v1167_v57, %v1167_v57  ;;  %v1284_v7 = vrot.slane %v1160_v56, %v5591_v27  ;;  %v1300_v8 = vrot.slane %v1167_v57, %v5591_v27  ;;  %v1066_v10 = vpop.permute.xlu0 %1065 }
 0x1bc   :  { %v1170_v11 = vcombine.low %v1126_v58, %v1127_v29  ;;  %v1171_v13 = vcombine.high %v1126_v58, %v1127_v29  ;;  %v5615_v16 = vsel %vm1095_vm7, %v1066_v10, %v1068_v14  ;;  %4584 = vmatprep.subr.bf16.mxu0 %v4583_v1 }
 0x1bd   :  { %v1285_v9 = vcombine.high %v1284_v7, %v1284_v7  ;;  %v1292_v15 = vrot.slane %v1168_v4, %v5591_v27  ;;  %v1301_v17 = vcombine.high %v1300_v8, %v1300_v8  ;;  %v1308_v18 = vrot.slane %v1169_v6, %v5591_v27 }
 0x1be   :  { %v1559_v20 = vsel %vm1558_vm8, %v1284_v7, -inf  ;;  %v1588_v22 = vsel %vm1558_vm8, %v1300_v8, -inf  ;;  %v5622_v23 = vrot.slane %v1170_v11, %v5591_v27  ;;  %v5625_v24 = vrot.slane %v1171_v13, %v5591_v27 }
 0x1bf   :  { %v1293_v14 = vcombine.high %v1292_v15, %v1292_v15  ;;  %v1309_v30 = vcombine.high %v1308_v18, %v1308_v18  ;;  %v1560_v32 = vrot.slane %v1559_v20, 4  ;;  %v1567_v33 = vsel %vm1566_vm9, %v1285_v9, -inf }
 0x1c0   :  { %v1568_v34 = vrot.slane %v1567_v33, 4  ;;  %v1574_v35 = vsel %vm1558_vm8, %v1292_v15, -inf  ;;  %v1589_v36 = vrot.slane %v1588_v22, 4  ;;  %v1595_v38 = vsel %vm1566_vm9, %v1301_v17, -inf }
 0x1c1   :  { %v1561_v39 = vmax.f32 %v1559_v20, %v1560_v32  ;;  %v1575_v40 = vrot.slane %v1574_v35, 4  ;;  %v1581_v41 = vsel %vm1566_vm9, %v1293_v14, -inf  ;;  %v1596_v43 = vrot.slane %v1595_v38, 4 }
 0x1c2   :  { %v1569_v62 = vmax.f32 %v1567_v33, %v1568_v34  ;;  %v1582_v2 = vrot.slane %v1581_v41, 4  ;;  %v1590_v5 = vmax.f32 %v1588_v22, %v1589_v36  ;;  %v1602_v46 = vsel %vm1558_vm8, %v1308_v18, -inf }
 0x1c3   :  { %v1562_v52 = vrot.slane %v1561_v39, 2  ;;  %v1576_v56 = vmax.f32 %v1574_v35, %v1575_v40  ;;  %v1597_v57 = vmax.f32 %v1595_v38, %v1596_v43  ;;  %v1603_v58 = vrot.slane %v1602_v46, 4  ;;  %v5633_v38 = vpop.permute.xlu1 %1071 }
 0x1c4   :  { %v1570_v29 = vrot.slane %v1569_v62, 2  ;;  %v1583_v63 = vmax.f32 %v1581_v41, %v1582_v2  ;;  %v1591_v3 = vrot.slane %v1590_v5, 2  ;;  %v1609_v4 = vsel %vm1566_vm9, %v1309_v30, -inf }
 0x1c5   :  { %v1563_v6 = vmax.f32 %v1561_v39, %v1562_v52  ;;  %v1577_v7 = vrot.slane %v1576_v56, 2  ;;  %v1598_v8 = vrot.slane %v1597_v57, 2  ;;  %v1604_v10 = vmax.f32 %v1602_v46, %v1603_v58 }
 0x1c6   :  { %v1571_v11 = vmax.f32 %v1569_v62, %v1570_v29  ;;  %v1584_v13 = vrot.slane %v1583_v63, 2  ;;  %v1592_v1 = vmax.f32 %v1590_v5, %v1591_v3  ;;  %v1610_v9 = vrot.slane %v1609_v4, 4 }
 0x1c7   :  { %v1564_v15 = vrot.slane %v1563_v6, 1  ;;  %v1578_v17 = vmax.f32 %v1576_v56, %v1577_v7  ;;  %v1599_v18 = vmax.f32 %v1597_v57, %v1598_v8  ;;  %v1605_v20 = vrot.slane %v1604_v10, 2 }
 0x1c8   :  { %v1572_v22 = vrot.slane %v1571_v11, 1  ;;  %v1585_v14 = vmax.f32 %v1583_v63, %v1584_v13  ;;  %v1593_v32 = vrot.slane %v1592_v1, 1  ;;  %v1611_v33 = vmax.f32 %v1609_v4, %v1610_v9 }
 0x1c9   :  { %v1565_v34 = vmax.f32 %v1563_v6, %v1564_v15  ;;  %v1579_v35 = vrot.slane %v1578_v17, 1  ;;  %v1600_v36 = vrot.slane %v1599_v18, 1  ;;  %v1606_v30 = vmax.f32 %v1604_v10, %v1605_v20  ;;  %v5645_v6 = vpop.permute.xlu0 %1073  ;;  %v5653_v15 = vpop.permute.xlu1 %1075 }
 0x1ca   :  { %v1573_v39 = vmax.f32 %v1571_v11, %v1572_v22  ;;  %v1586_v40 = vrot.slane %v1585_v14, 1  ;;  %v1594_v41 = vmax.f32 %v1592_v1, %v1593_v32  ;;  %v1612_v43 = vrot.slane %v1611_v33, 2 }
 0x1cb   :  { %v1580_v62 = vmax.f32 %v1578_v17, %v1579_v35  ;;  %v1601_v2 = vmax.f32 %v1599_v18, %v1600_v36  ;;  %v1607_v5 = vrot.slane %v1606_v30, 1  ;;  %v1186_v46 = vcombine.high %v5622_v23, %v5622_v23 }
 0x1cc   :  { %v1587_v52 = vmax.f32 %v1585_v14, %v1586_v40  ;;  %v1613_v56 = vmax.f32 %v1611_v33, %v1612_v43  ;;  %v1187_v57 = vcombine.high %v5625_v24, %v5625_v24  ;;  %v1316_v58 = vrot.slane %v5622_v23, %v5591_v27 }
 0x1cd   :  { %v1608_v29 = vmax.f32 %v1606_v30, %v1607_v5  ;;  %v2018_v63 = vsel %vm2017_vm10, %v1580_v62, %v1565_v34  ;;  %v1324_v3 = vrot.slane %v1186_v46, %v5591_v27  ;;  %v1332_v4 = vrot.slane %v5625_v24, %v5591_v27  ;;  %v5663_v62 = vpop.permute.xlu0 %1081 }
 0x1ce   :  { %v1614_v7 = vrot.slane %v1613_v56, 1  ;;  %v2020_v8 = vsel %vm2019_vm11, %v1594_v41, %v2018_v63  ;;  %v2029_v10 = vsel %vm2017_vm10, %v1587_v52, %v1573_v39  ;;  %v1317_v11 = vcombine.high %v1316_v58, %v1316_v58  ;;  %v1080_v63 = vpop.permute.xlu1 %1079 }
 0x1cf   :  { %v5650_v13 = vsel %vm2021_vm12, %v1608_v29, %v2020_v8  ;;  %v2030_v23 = vsel %vm2019_vm11, %v1601_v2, %v2029_v10  ;;  %v1325_v1 = vcombine.high %v1324_v3, %v1324_v3  ;;  %v1333_v9 = vcombine.high %v1332_v4, %v1332_v4 }
 0x1d0   :  { %v1615_v17 = vmax.f32 %v1613_v56, %v1614_v7  ;;  %v1340_v24 = vrot.slane %v1187_v57, %v5591_v27  ;;  %v1616_v18 = vsel %vm1558_vm8, %v1316_v58, -inf  ;;  %v1623_v20 = vsel %vm1566_vm9, %v1317_v11, -inf }
 0x1d1   :  { %v1617_v22 = vrot.slane %v1616_v18, 4  ;;  %v1624_v14 = vrot.slane %v1623_v20, 4  ;;  %v1630_v32 = vsel %vm1558_vm8, %v1324_v3, -inf  ;;  %v1637_v33 = vsel %vm1566_vm9, %v1325_v1, -inf }
 0x1d2   :  { %v2031_v34 = vsel %vm2021_vm12, %v1615_v17, %v2030_v23  ;;  %v1341_v35 = vcombine.high %v1340_v24, %v1340_v24  ;;  %v1631_v36 = vrot.slane %v1630_v32, 4  ;;  %v1638_v30 = vrot.slane %v1637_v33, 4 }
 0x1d3   :  { %v1618_v39 = vmax.f32 %v1616_v18, %v1617_v22  ;;  %v1625_v40 = vmax.f32 %v1623_v20, %v1624_v14  ;;  %v1644_v41 = vsel %vm1558_vm8, %v1332_v4, -inf  ;;  %v1651_v43 = vsel %vm1566_vm9, %v1333_v9, -inf }
 0x1d4   :  { %v1632_v2 = vmax.f32 %v1630_v32, %v1631_v36  ;;  %v1639_v5 = vmax.f32 %v1637_v33, %v1638_v30  ;;  %v1645_v46 = vrot.slane %v1644_v41, 4  ;;  %v1652_v52 = vrot.slane %v1651_v43, 4  ;;  %v1086_v33 = vpop.permute.xlu0 %1085 }
 0x1d5   :  { %v1619_v56 = vrot.slane %v1618_v39, 2  ;;  %v1626_v57 = vrot.slane %v1625_v40, 2  ;;  %v1658_v58 = vsel %vm1558_vm8, %v1340_v24, -inf  ;;  %v1665_v29 = vsel %vm1566_vm9, %v1341_v35, -inf }
 0x1d6   :  { %v1633_v3 = vrot.slane %v1632_v2, 2  ;;  %v1640_v7 = vrot.slane %v1639_v5, 2  ;;  %v1646_v4 = vmax.f32 %v1644_v41, %v1645_v46  ;;  %v1653_v8 = vmax.f32 %v1651_v43, %v1652_v52 }
 0x1d7   :  { %v1620_v10 = vmax.f32 %v1618_v39, %v1619_v56  ;;  %v1627_v11 = vmax.f32 %v1625_v40, %v1626_v57  ;;  %v1659_v23 = vrot.slane %v1658_v58, 4  ;;  %v1666_v1 = vrot.slane %v1665_v29, 4  ;;  %v1088_v40 = vpop.permute.xlu1 %1087 }
 0x1d8   :  { %v1634_v9 = vmax.f32 %v1632_v2, %v1633_v3  ;;  %v1641_v17 = vmax.f32 %v1639_v5, %v1640_v7  ;;  %v1647_v18 = vrot.slane %v1646_v4, 2  ;;  %v1654_v20 = vrot.slane %v1653_v8, 2 }
 0x1d9   :  { %v1621_v22 = vrot.slane %v1620_v10, 1  ;;  %v1628_v14 = vrot.slane %v1627_v11, 1  ;;  %v1660_v32 = vmax.f32 %v1658_v58, %v1659_v23  ;;  %v1667_v24 = vmax.f32 %v1665_v29, %v1666_v1 }
 0x1da   :  { %v1635_v35 = vrot.slane %v1634_v9, 1  ;;  %v1642_v36 = vrot.slane %v1641_v17, 1  ;;  %v1648_v30 = vmax.f32 %v1646_v4, %v1647_v18  ;;  %v1655_v0 = vmax.f32 %v1653_v8, %v1654_v20 }
 0x1db   :  { %v1622_v51 = vmax.f32 %v1620_v10, %v1621_v22  ;;  %v1629_v41 = vmax.f32 %v1627_v11, %v1628_v14  ;;  %v1661_v43 = vrot.slane %v1660_v32, 2  ;;  %v1668_v39 = vrot.slane %v1667_v24, 2 }
 0x1dc   :  { %v1636_v46 = vmax.f32 %v1634_v9, %v1635_v35  ;;  %v1643_v52 = vmax.f32 %v1641_v17, %v1642_v36  ;;  %v1649_v2 = vrot.slane %v1648_v30, 1  ;;  %v1656_v5 = vrot.slane %v1655_v0, 1  ;;  %v1078_v9 = vpop.permute.xlu0 %1077 }
 0x1dd   :  { %v1662_v56 = vmax.f32 %v1660_v32, %v1661_v43  ;;  %v1669_v57 = vmax.f32 %v1667_v24, %v1668_v39  ;;  %v2024_v58 = vsel %vm2023_vm13, %v1622_v51, %v5650_v13  ;;  %v2032_v29 = vsel %vm2023_vm13, %v1629_v41, %v2031_v34 }
 0x1de   :  { %v1650_v3 = vmax.f32 %v1648_v30, %v1649_v2  ;;  %v1657_v7 = vmax.f32 %v1655_v0, %v1656_v5  ;;  %v2026_v4 = vsel %vm2025_vm14, %v1636_v46, %v2024_v58  ;;  %v2033_v8 = vsel %vm2025_vm14, %v1643_v52, %v2032_v29 }
 0x1df   :  { %v1663_v10 = vrot.slane %v1662_v56, 1  ;;  %v1670_v11 = vrot.slane %v1669_v57, 1  ;;  %v1128_v23 = vmax.f32 %v1012_v59, %v5615_v16  ;;  %v1102_v1 = vsel %vm1095_vm7, %v5633_v38, %v5645_v6  ;;  %v1084_v38 = vpop.permute.xlu1 %1083 }
 0x1e0   :  { %v2028_v51 = vsel %vm2027_vm15, %v1650_v3, %v2026_v4  ;;  %v2034_v13 = vsel %vm2027_vm15, %v1657_v7, %v2033_v8  ;;  %v1130_v0 = vmax.f32 %v1016_v45, %v1102_v1  ;;  %v1103_v34 = vsel %vm1095_vm7, %v5645_v6, %v5653_v15 }
 0x1e1   :  { %v5685_v17 = vmax.f32 %v1662_v56, %v1663_v10  ;;  %v5687_v12 = vmax.f32 %v1669_v57, %v1670_v11  ;;  %2080 = vst [vmem:[#allocation3] sm:$0xfe] %v2028_v51  ;;  %2082 = vst.msk [vmem:[#allocation3 + $0x8] sm:$0xfe] %vm2081_vm0, %v2034_v13  ;;  %v1188_v59 = vcombine.low %v1128_v23, %v5610_v31 }
 0x1e2   :  { %v1189_v16 = vcombine.high %v1128_v23, %v5610_v31  ;;  %v1131_v19 = vmax.f32 %v1017_v26, %v1103_v34  ;;  %v1105_v45 = vsel %vm1095_vm7, %v1080_v63, %v5663_v62  ;;  %v1107_v6 = vsel %vm1095_vm7, %v1086_v33, %v1088_v40 }
 0x1e3   :  { %v1104_v15 = vsel %vm1095_vm7, %v1078_v9, %v1080_v63  ;;  %v1196_v18 = vrot.slane %v1188_v59, %v5591_v27  ;;  %v5702_v22 = vmax.f32 %v1021_v47, %v1105_v45  ;;  %v5706_v31 = vmax.f32 %v1025_v54, %v1107_v6 }
 0x1e4   :  { %v1203_v20 = vrot.slane %v1189_v16, %v5591_v27  ;;  %v1206_v21 = vcombine.low %v1130_v0, %v1131_v19  ;;  %v1207_v26 = vcombine.high %v1130_v0, %v1131_v19  ;;  %v5710_v62 = vmax.f32 %v1020_v53, %v1104_v15 }
 0x1e5   :  { %v5713_v63 = vsel %vm1095_vm7, %v1084_v38, %v1086_v33  ;;  %v1204_v14 = vcombine.high %v1196_v18, %v1196_v18  ;;  %v1348_v24 = vrot.slane %v1196_v18, %v5591_v27 }
 0x1e6   :  { %v1205_v32 = vcombine.high %v1203_v20, %v1203_v20  ;;  %v1364_v42 = vrot.slane %v1203_v20, %v5591_v27  ;;  %v5718_v47 = vrot.slane %v1206_v21, %v5591_v27  ;;  %v5721_v49 = vrot.slane %v1207_v26, %v5591_v27 }
 0x1e7   :  { %v1224_v28 = vcombine.low %v5710_v62, %v5702_v22  ;;  %v1225_v54 = vcombine.high %v5710_v62, %v5702_v22  ;;  %v1349_v53 = vcombine.high %v1348_v24, %v1348_v24  ;;  %v1356_v33 = vrot.slane %v1204_v14, %v5591_v27 }
 0x1e8   :  { %v1365_v35 = vcombine.high %v1364_v42, %v1364_v42  ;;  %v1372_v36 = vrot.slane %v1205_v32, %v5591_v27  ;;  %v1672_v30 = vsel %vm1558_vm8, %v1348_v24, -inf  ;;  %v1700_v41 = vsel %vm1558_vm8, %v1364_v42, -inf }
 0x1e9   :  { %v1222_v43 = vcombine.high %v5718_v47, %v5718_v47  ;;  %v1223_v39 = vcombine.high %v5721_v49, %v5721_v49  ;;  %v1357_v40 = vcombine.high %v1356_v33, %v1356_v33  ;;  %v1673_v52 = vrot.slane %v1672_v30, 4 }
 0x1ea   :  { %v1373_v46 = vcombine.high %v1372_v36, %v1372_v36  ;;  %v1679_v2 = vsel %vm1566_vm9, %v1349_v53, -inf  ;;  %v1686_v56 = vsel %vm1558_vm8, %v1356_v33, -inf  ;;  %v1701_v57 = vrot.slane %v1700_v41, 4 }
 0x1eb   :  { %v1680_v5 = vrot.slane %v1679_v2, 4  ;;  %v1707_v58 = vsel %vm1566_vm9, %v1365_v35, -inf  ;;  %v1674_v29 = vmax.f32 %v1672_v30, %v1673_v52  ;;  %v1687_v3 = vrot.slane %v1686_v56, 4 }
 0x1ec   :  { %v1693_v7 = vsel %vm1566_vm9, %v1357_v40, -inf  ;;  %v1708_v4 = vrot.slane %v1707_v58, 4  ;;  %v1702_v11 = vmax.f32 %v1700_v41, %v1701_v57  ;;  %v1714_v23 = vsel %vm1558_vm8, %v1372_v36, -inf }
 0x1ed   :  { %v1681_v8 = vmax.f32 %v1679_v2, %v1680_v5  ;;  %v1694_v10 = vrot.slane %v1693_v7, 4  ;;  %v1675_v1 = vrot.slane %v1674_v29, 2  ;;  %v1688_v9 = vmax.f32 %v1686_v56, %v1687_v3 }
 0x1ee   :  { %v1709_v51 = vmax.f32 %v1707_v58, %v1708_v4  ;;  %v1715_v13 = vrot.slane %v1714_v23, 4  ;;  %v1703_v59 = vrot.slane %v1702_v11, 2  ;;  %v1721_v16 = vsel %vm1566_vm9, %v1373_v46, -inf }
 0x1ef   :  { %v1682_v0 = vrot.slane %v1681_v8, 2  ;;  %v1695_v34 = vmax.f32 %v1693_v7, %v1694_v10  ;;  %v1676_v38 = vmax.f32 %v1674_v29, %v1675_v1  ;;  %v1689_v19 = vrot.slane %v1688_v9, 2 }
 0x1f0   :  { %v1710_v45 = vrot.slane %v1709_v51, 2  ;;  %v1716_v6 = vmax.f32 %v1714_v23, %v1715_v13  ;;  %v1704_v20 = vmax.f32 %v1702_v11, %v1703_v59  ;;  %v1722_v21 = vrot.slane %v1721_v16, 4 }
 0x1f1   :  { %v1683_v15 = vmax.f32 %v1681_v8, %v1682_v0  ;;  %v1696_v18 = vrot.slane %v1695_v34, 2  ;;  %v1677_v26 = vrot.slane %v1676_v38, 1  ;;  %v1690_v14 = vmax.f32 %v1688_v9, %v1689_v19 }
 0x1f2   :  { %v1711_v32 = vmax.f32 %v1709_v51, %v1710_v45  ;;  %v1717_v24 = vrot.slane %v1716_v6, 2  ;;  %v1705_v33 = vrot.slane %v1704_v20, 1  ;;  %v1723_v35 = vmax.f32 %v1721_v16, %v1722_v21 }
 0x1f3   :  { %v1684_v42 = vrot.slane %v1683_v15, 1  ;;  %v1697_v53 = vmax.f32 %v1695_v34, %v1696_v18  ;;  %v1678_v36 = vmax.f32 %v1676_v38, %v1677_v26  ;;  %v1691_v30 = vrot.slane %v1690_v14, 1 }
 0x1f4   :  { %v1712_v41 = vrot.slane %v1711_v32, 1  ;;  %v1718_v40 = vmax.f32 %v1716_v6, %v1717_v24  ;;  %v1706_v2 = vmax.f32 %v1704_v20, %v1705_v33  ;;  %v1724_v5 = vrot.slane %v1723_v35, 2 }
 0x1f5   :  { %v1685_v46 = vmax.f32 %v1683_v15, %v1684_v42  ;;  %v1698_v52 = vrot.slane %v1697_v53, 1  ;;  %v1692_v56 = vmax.f32 %v1690_v14, %v1691_v30  ;;  %v2036_v29 = vsel %vm2035_vm1, %v1678_v36, %v5685_v17 }
 0x1f6   :  { %v1713_v57 = vmax.f32 %v1711_v32, %v1712_v41  ;;  %v1719_v58 = vrot.slane %v1718_v40, 1  ;;  %v1725_v7 = vmax.f32 %v1723_v35, %v1724_v5  ;;  %v1380_v8 = vrot.slane %v5718_v47, %v5591_v27 }
 0x1f7   :  { %v1699_v3 = vmax.f32 %v1697_v53, %v1698_v52  ;;  %v2042_v4 = vsel %vm2035_vm1, %v1685_v46, %v5687_v12  ;;  %v2037_v11 = vsel %vm2017_vm10, %v1692_v56, %v2036_v29  ;;  %v1388_v23 = vrot.slane %v1222_v43, %v5591_v27  ;;  %v1090_v29 = vpop.permute.xlu0 %1089 }
 0x1f8   :  { %v1720_v10 = vmax.f32 %v1718_v40, %v1719_v58  ;;  %v1396_v1 = vrot.slane %v5721_v49, %v5591_v27  ;;  %v1726_v9 = vrot.slane %v1725_v7, 1  ;;  %v2038_v51 = vsel %vm2019_vm11, %v1706_v2, %v2037_v11 }
 0x1f9   :  { %v2043_v17 = vsel %vm2017_vm10, %v1699_v3, %v2042_v4  ;;  %v1381_v13 = vcombine.high %v1380_v8, %v1380_v8  ;;  %v1389_v34 = vcombine.high %v1388_v23, %v1388_v23  ;;  %v1404_v43 = vrot.slane %v1223_v39, %v5591_v27 }
 0x1fa   :  { %v2039_v0 = vsel %vm2021_vm12, %v1720_v10, %v2038_v51  ;;  %v2044_v12 = vsel %vm2019_vm11, %v1713_v57, %v2043_v17  ;;  %v1397_v47 = vcombine.high %v1396_v1, %v1396_v1  ;;  %v1727_v59 = vmax.f32 %v1725_v7, %v1726_v9 }
 0x1fb   :  { %v1728_v16 = vsel %vm1558_vm8, %v1380_v8, -inf  ;;  %v1735_v38 = vsel %vm1566_vm9, %v1381_v13, -inf  ;;  %v1742_v6 = vsel %vm1558_vm8, %v1388_v23, -inf  ;;  %v1749_v15 = vsel %vm1566_vm9, %v1389_v34, -inf }
 0x1fc   :  { %v1729_v19 = vrot.slane %v1728_v16, 4  ;;  %v1736_v45 = vrot.slane %v1735_v38, 4  ;;  %v2045_v18 = vsel %vm2021_vm12, %v1727_v59, %v2044_v12  ;;  %v1405_v20 = vcombine.high %v1404_v43, %v1404_v43 }
 0x1fd   :  { %v1743_v21 = vrot.slane %v1742_v6, 4  ;;  %v1750_v26 = vrot.slane %v1749_v15, 4  ;;  %v1756_v49 = vsel %vm1558_vm8, %v1396_v1, -inf  ;;  %v1763_v39 = vsel %vm1566_vm9, %v1397_v47, -inf }
 0x1fe   :  { %v1730_v14 = vmax.f32 %v1728_v16, %v1729_v19  ;;  %v1737_v32 = vmax.f32 %v1735_v38, %v1736_v45  ;;  %v1757_v53 = vrot.slane %v1756_v49, 4  ;;  %v1764_v33 = vrot.slane %v1763_v39, 4 }
 0x1ff   :  { %v1744_v24 = vmax.f32 %v1742_v6, %v1743_v21  ;;  %v1751_v42 = vmax.f32 %v1749_v15, %v1750_v26  ;;  %v1770_v30 = vsel %vm1558_vm8, %v1404_v43, -inf  ;;  %v1777_v41 = vsel %vm1566_vm9, %v1405_v20, -inf  ;;  %v1092_v21 = vpop.permute.xlu1 %1091  ;;  %v1094_v26 = vpop.permute.xlu0 %1093 }
 0x200   :  { %v1731_v35 = vrot.slane %v1730_v14, 2  ;;  %v1738_v36 = vrot.slane %v1737_v32, 2  ;;  %v1758_v52 = vmax.f32 %v1756_v49, %v1757_v53  ;;  %v1765_v2 = vmax.f32 %v1763_v39, %v1764_v33 }
 0x201   :  { %v1745_v40 = vrot.slane %v1744_v24, 2  ;;  %v1752_v46 = vrot.slane %v1751_v42, 2  ;;  %v1771_v57 = vrot.slane %v1770_v30, 4  ;;  %v1778_v58 = vrot.slane %v1777_v41, 4 }
 0x202   :  { %v1732_v5 = vmax.f32 %v1730_v14, %v1731_v35  ;;  %v1739_v56 = vmax.f32 %v1737_v32, %v1738_v36  ;;  %v1759_v4 = vrot.slane %v1758_v52, 2  ;;  %v1766_v8 = vrot.slane %v1765_v2, 2  ;;  %v2405_v14 = vld [vmem:[#allocation4 + $0x2e0] sm:$0xff]  ;;  %v2407_v32 = vld [vmem:[#allocation4 + $0x2f0] sm:$0xff] }
 0x203   :  { %v1746_v3 = vmax.f32 %v1744_v24, %v1745_v40  ;;  %v1753_v7 = vmax.f32 %v1751_v42, %v1752_v46  ;;  %v1772_v23 = vmax.f32 %v1770_v30, %v1771_v57  ;;  %v1779_v1 = vmax.f32 %v1777_v41, %v1778_v58 }
 0x204   :  { %v1733_v10 = vrot.slane %v1732_v5, 1  ;;  %v1740_v11 = vrot.slane %v1739_v56, 1  ;;  %v1760_v17 = vmax.f32 %v1758_v52, %v1759_v4  ;;  %v1767_v13 = vmax.f32 %v1765_v2, %v1766_v8 }
 0x205   :  { %v1747_v9 = vrot.slane %v1746_v3, 1  ;;  %v1754_v51 = vrot.slane %v1753_v7, 1  ;;  %v1773_v47 = vrot.slane %v1772_v23, 2  ;;  %v1780_v59 = vrot.slane %v1779_v1, 2 }
 0x206   :  { %v1734_v12 = vmax.f32 %v1732_v5, %v1733_v10  ;;  %v1741_v34 = vmax.f32 %v1739_v56, %v1740_v11  ;;  %v1761_v38 = vrot.slane %v1760_v17, 1  ;;  %v1768_v19 = vrot.slane %v1767_v13, 1 }
 0x207   :  { %v1748_v43 = vmax.f32 %v1746_v3, %v1747_v9  ;;  %v1755_v16 = vmax.f32 %v1753_v7, %v1754_v51  ;;  %v1774_v45 = vmax.f32 %v1772_v23, %v1773_v47  ;;  %v1781_v6 = vmax.f32 %v1779_v1, %v1780_v59 }
 0x208   :  { %v2040_v15 = vsel %vm2023_vm13, %v1734_v12, %v2039_v0  ;;  %v2046_v20 = vsel %vm2023_vm13, %v1741_v34, %v2045_v18  ;;  %v1762_v49 = vmax.f32 %v1760_v17, %v1761_v38  ;;  %v1769_v39 = vmax.f32 %v1767_v13, %v1768_v19 }
 0x209   :  { %v2041_v24 = vsel %vm2025_vm14, %v1748_v43, %v2040_v15  ;;  %v2047_v42 = vsel %vm2025_vm14, %v1755_v16, %v2046_v20  ;;  %v1775_v53 = vrot.slane %v1774_v45, 1  ;;  %v1782_v33 = vrot.slane %v1781_v6, 1 }
 0x20a   :  { %2083 = vst [vmem:[#allocation3 + $0x10] sm:$0x7f] %v2041_v24  ;;  %2085 = vst.msk [vmem:[#allocation3 + $0x18] sm:$0x7f] %vm2084_vm2, %v2047_v42  ;;  %v1232_v0 = vrot.slane %v1224_v28, %v5591_v27  ;;  %v1239_v18 = vrot.slane %v1225_v54, %v5591_v27  ;;  %v5784_v35 = vmax.f32 %v1024_v60, %v5713_v63 }
 0x20b   :  { %v5787_v36 = vsel %vm1095_vm7, %v1090_v29, %v1092_v21  ;;  %v5790_v30 = vsel %vm1095_vm7, %v1092_v21, %v1094_v26  ;;  %v4585_v41 = vpack.c.bf16 %v2407_v32, %v2405_v14  ;;  %v1776_v40 = vmax.f32 %v1774_v45, %v1775_v53  ;;  %vm5900_vm7 = vmor %vm2322_vm5, %vm2025_vm14 }
 0x20c   :  { %v1783_v46 = vmax.f32 %v1781_v6, %v1782_v33  ;;  %v1240_v28 = vcombine.high %v1232_v0, %v1232_v0  ;;  %v1241_v52 = vcombine.high %v1239_v18, %v1239_v18  ;;  %v1412_v2 = vrot.slane %v1232_v0, %v5591_v27 }
 0x20d   :  { %v1428_v22 = vrot.slane %v1239_v18, %v5591_v27  ;;  %v1242_v37 = vcombine.low %v5784_v35, %v5706_v31  ;;  %v1243_v60 = vcombine.high %v5784_v35, %v5706_v31  ;;  %4586 = vmatpush1.bf16.msra.mxu0 %v4585_v41  ;;  %v2048_v62 = vsel %vm2017_vm10, %v1776_v40, %v1762_v49 }
 0x20e   :  { %v5800_v63 = vsel %vm2017_vm10, %v1783_v46, %v1769_v39  ;;  %v1420_v54 = vrot.slane %v1240_v28, %v5591_v27  ;;  %v1436_v5 = vrot.slane %v1241_v52, %v5591_v27  ;;  %v1413_v56 = vcombine.high %v1412_v2, %v1412_v2 }
 0x20f   :  { %v1429_v57 = vcombine.high %v1428_v22, %v1428_v22  ;;  %v1784_v58 = vsel %vm1558_vm8, %v1412_v2, -inf  ;;  %v1812_v29 = vsel %vm1558_vm8, %v1428_v22, -inf }
 0x210   :  { %v1421_v3 = vcombine.high %v1420_v54, %v1420_v54  ;;  %v1437_v7 = vcombine.high %v1436_v5, %v1436_v5  ;;  %v1785_v4 = vrot.slane %v1784_v58, 4  ;;  %v1798_v8 = vsel %vm1558_vm8, %v1420_v54, -inf }
 0x211   :  { %v1791_v10 = vsel %vm1566_vm9, %v1413_v56, -inf  ;;  %v1799_v11 = vrot.slane %v1798_v8, 4  ;;  %v1813_v23 = vrot.slane %v1812_v29, 4  ;;  %v1819_v1 = vsel %vm1566_vm9, %v1429_v57, -inf }
 0x212   :  { %v1786_v9 = vmax.f32 %v1784_v58, %v1785_v4  ;;  %v1792_v51 = vrot.slane %v1791_v10, 4  ;;  %v1805_v17 = vsel %vm1566_vm9, %v1421_v3, -inf  ;;  %v1820_v13 = vrot.slane %v1819_v1, 4 }
 0x213   :  { %v1800_v12 = vmax.f32 %v1798_v8, %v1799_v11  ;;  %v1806_v34 = vrot.slane %v1805_v17, 4  ;;  %v1814_v47 = vmax.f32 %v1812_v29, %v1813_v23  ;;  %v1826_v59 = vsel %vm1558_vm8, %v1436_v5, -inf }
 0x214   :  { %v1787_v43 = vrot.slane %v1786_v9, 2  ;;  %v1793_v16 = vmax.f32 %v1791_v10, %v1792_v51  ;;  %v1821_v38 = vmax.f32 %v1819_v1, %v1820_v13  ;;  %v1827_v19 = vrot.slane %v1826_v59, 4 }
 0x215   :  { %v1801_v45 = vrot.slane %v1800_v12, 2  ;;  %v1807_v6 = vmax.f32 %v1805_v17, %v1806_v34  ;;  %v1815_v15 = vrot.slane %v1814_v47, 2  ;;  %v1833_v20 = vsel %vm1566_vm9, %v1437_v7, -inf }
 0x216   :  { %v1788_v21 = vmax.f32 %v1786_v9, %v1787_v43  ;;  %v1794_v26 = vrot.slane %v1793_v16, 2  ;;  %v1822_v14 = vrot.slane %v1821_v38, 2  ;;  %v1828_v32 = vmax.f32 %v1826_v59, %v1827_v19 }
 0x217   :  { %v1802_v49 = vmax.f32 %v1800_v12, %v1801_v45  ;;  %v1808_v39 = vrot.slane %v1807_v6, 2  ;;  %v1816_v24 = vmax.f32 %v1814_v47, %v1815_v15  ;;  %v1834_v42 = vrot.slane %v1833_v20, 4 }
 0x218   :  { %v1789_v53 = vrot.slane %v1788_v21, 1  ;;  %v1795_v33 = vmax.f32 %v1793_v16, %v1794_v26  ;;  %v1823_v0 = vmax.f32 %v1821_v38, %v1822_v14  ;;  %v1829_v18 = vrot.slane %v1828_v32, 2 }
 0x219   :  { %v1803_v41 = vrot.slane %v1802_v49, 1  ;;  %v1809_v40 = vmax.f32 %v1807_v6, %v1808_v39  ;;  %v1817_v46 = vrot.slane %v1816_v24, 1  ;;  %v1835_v28 = vmax.f32 %v1833_v20, %v1834_v42 }
 0x21a   :  { %v1790_v52 = vmax.f32 %v1788_v21, %v1789_v53  ;;  %v1796_v2 = vrot.slane %v1795_v33, 1  ;;  %v1824_v22 = vrot.slane %v1823_v0, 1  ;;  %v1830_v54 = vmax.f32 %v1828_v32, %v1829_v18 }
 0x21b   :  { %v1804_v5 = vmax.f32 %v1802_v49, %v1803_v41  ;;  %v1810_v56 = vrot.slane %v1809_v40, 1  ;;  %v1818_v57 = vmax.f32 %v1816_v24, %v1817_v46  ;;  %v1836_v58 = vrot.slane %v1835_v28, 2 }
 0x21c   :  { %v1797_v29 = vmax.f32 %v1795_v33, %v1796_v2  ;;  %v1825_v3 = vmax.f32 %v1823_v0, %v1824_v22  ;;  %v1831_v7 = vrot.slane %v1830_v54, 1  ;;  %v2049_v4 = vsel %vm2019_vm11, %v1790_v52, %v2048_v62 }
 0x21d   :  { %v1811_v8 = vmax.f32 %v1809_v40, %v1810_v56  ;;  %v1837_v10 = vmax.f32 %v1835_v28, %v1836_v58  ;;  %v2050_v11 = vsel %vm2021_vm12, %v1804_v5, %v2049_v4  ;;  %v1250_v23 = vrot.slane %v1242_v37, %v5591_v27 }
 0x21e   :  { %v1832_v1 = vmax.f32 %v1830_v54, %v1831_v7  ;;  %v2051_v9 = vsel %vm2023_vm13, %v1818_v57, %v2050_v11  ;;  %v2055_v51 = vsel %vm2019_vm11, %v1797_v29, %v5800_v63  ;;  %v1257_v62 = vrot.slane %v1243_v60, %v5591_v27 }
 0x21f   :  { %v1838_v17 = vrot.slane %v1837_v10, 1  ;;  %v2056_v13 = vsel %vm2021_vm12, %v1811_v8, %v2055_v51  ;;  %v1258_v12 = vcombine.high %v1250_v23, %v1250_v23  ;;  %v1444_v34 = vrot.slane %v1250_v23, %v5591_v27 }
 0x220   :  { %v2052_v47 = vsel %vm2025_vm14, %v1832_v1, %v2051_v9  ;;  %v2057_v37 = vsel %vm2023_vm13, %v1825_v3, %v2056_v13  ;;  %v1259_v59 = vcombine.high %v1257_v62, %v1257_v62  ;;  %v1460_v43 = vrot.slane %v1257_v62, %v5591_v27 }
 0x221   :  { %v1839_v16 = vmax.f32 %v1837_v10, %v1838_v17  ;;  %v1445_v63 = vcombine.high %v1444_v34, %v1444_v34  ;;  %v1452_v38 = vrot.slane %v1258_v12, %v5591_v27  ;;  %v1840_v31 = vsel %vm1558_vm8, %v1444_v34, -inf }
 0x222   :  { %v1461_v35 = vcombine.high %v1460_v43, %v1460_v43  ;;  %v1468_v60 = vrot.slane %v1259_v59, %v5591_v27  ;;  %v1841_v19 = vrot.slane %v1840_v31, 4  ;;  %v1868_v45 = vsel %vm1558_vm8, %v1460_v43, -inf }
 0x223   :  { %v2058_v6 = vsel %vm2025_vm14, %v1839_v16, %v2057_v37  ;;  %v1453_v15 = vcombine.high %v1452_v38, %v1452_v38  ;;  %v1847_v20 = vsel %vm1566_vm9, %v1445_v63, -inf  ;;  %v1854_v21 = vsel %vm1558_vm8, %v1452_v38, -inf  ;;  %v2410_v38 = vld [vmem:[#allocation4 + $0x308] sm:$0xff] }
 0x224   :  { %v1469_v26 = vcombine.high %v1468_v60, %v1468_v60  ;;  %v1842_v14 = vmax.f32 %v1840_v31, %v1841_v19  ;;  %v1848_v32 = vrot.slane %v1847_v20, 4  ;;  %v1855_v49 = vrot.slane %v1854_v21, 4  ;;  %v2412_v31 = vld [vmem:[#allocation4 + $0x318] sm:$0xff] }
 0x225   :  { %v1861_v39 = vsel %vm1566_vm9, %v1453_v15, -inf  ;;  %v1869_v24 = vrot.slane %v1868_v45, 4  ;;  %v1875_v42 = vsel %vm1566_vm9, %v1461_v35, -inf  ;;  %v1882_v53 = vsel %vm1558_vm8, %v1468_v60, -inf  ;;  %v2409_v35 = vld [vmem:[#allocation4 + $0x300] sm:$0xff] }
 0x226   :  { %v1843_v33 = vrot.slane %v1842_v14, 2  ;;  %v1849_v0 = vmax.f32 %v1847_v20, %v1848_v32  ;;  %v1856_v18 = vmax.f32 %v1854_v21, %v1855_v49  ;;  %v1862_v41 = vrot.slane %v1861_v39, 4  ;;  %v2411_v20 = vld [vmem:[#allocation4 + $0x310] sm:$0xff]  ;;  %v2414_v21 = vld [vmem:[#allocation4 + $0x328] sm:$0xff] }
 0x227   :  { %v1870_v40 = vmax.f32 %v1868_v45, %v1869_v24  ;;  %v1876_v46 = vrot.slane %v1875_v42, 4  ;;  %v1883_v28 = vrot.slane %v1882_v53, 4  ;;  %v1889_v52 = vsel %vm1566_vm9, %v1469_v26, -inf  ;;  %v2416_v26 = vld [vmem:[#allocation4 + $0x338] sm:$0xff]  ;;  %v2415_v24 = vld [vmem:[#allocation4 + $0x330] sm:$0xff] }
 0x228   :  { %v1844_v2 = vmax.f32 %v1842_v14, %v1843_v33  ;;  %v1850_v22 = vrot.slane %v1849_v0, 2  ;;  %v1857_v54 = vrot.slane %v1856_v18, 2  ;;  %v1863_v5 = vmax.f32 %v1861_v39, %v1862_v41  ;;  %v2413_v39 = vld [vmem:[#allocation4 + $0x320] sm:$0xff]  ;;  %v2420_v41 = vld [vmem:[#allocation4 + $0x358] sm:$0xff] }
 0x229   :  { %v1871_v56 = vrot.slane %v1870_v40, 2  ;;  %v1877_v57 = vmax.f32 %v1875_v42, %v1876_v46  ;;  %v1884_v58 = vmax.f32 %v1882_v53, %v1883_v28  ;;  %v1890_v29 = vrot.slane %v1889_v52, 4  ;;  %v2418_v42 = vld [vmem:[#allocation4 + $0x348] sm:$0xff] }
 0x22a   :  { %v1845_v3 = vrot.slane %v1844_v2, 1  ;;  %v1851_v7 = vmax.f32 %v1849_v0, %v1850_v22  ;;  %v1858_v4 = vmax.f32 %v1856_v18, %v1857_v54  ;;  %v1864_v8 = vrot.slane %v1863_v5, 2  ;;  %v2422_v28 = vld [vmem:[#allocation4 + $0x368] sm:$0xff]  ;;  %v4982_v54 = vld [vmem:[#allocation3 + $0x10] ss:$8 sps:$4 sm:$0xff]  }
 0x22b   :  { %v1872_v10 = vmax.f32 %v1870_v40, %v1871_v56  ;;  %v1878_v11 = vrot.slane %v1877_v57, 2  ;;  %v1885_v23 = vrot.slane %v1884_v58, 2  ;;  %v1891_v1 = vmax.f32 %v1889_v52, %v1890_v29  ;;  %v2419_v40 = vld [vmem:[#allocation4 + $0x350] sm:$0xff]  ;;  %v4981_v22 = vld [vmem:[#allocation3 + $0x4] ss:$8 sps:$4 sm:$0xff]  }
 0x22c   :  { %v1846_v9 = vmax.f32 %v1844_v2, %v1845_v3  ;;  %v1852_v51 = vrot.slane %v1851_v7, 1  ;;  %v1859_v62 = vrot.slane %v1858_v4, 1  ;;  %v1865_v17 = vmax.f32 %v1863_v5, %v1864_v8  ;;  %v2421_v29 = vld [vmem:[#allocation4 + $0x360] sm:$0xff]  ;;  %v2423_v3 = vld [vmem:[#allocation4 + $0x370] sm:$0xff] }
 0x22d   :  { %v1873_v13 = vrot.slane %v1872_v10, 1  ;;  %v1879_v12 = vmax.f32 %v1877_v57, %v1878_v11  ;;  %v1886_v34 = vmax.f32 %v1884_v58, %v1885_v23  ;;  %v1892_v37 = vrot.slane %v1891_v1, 2 }
 0x22e   :  { %v1853_v59 = vmax.f32 %v1851_v7, %v1852_v51  ;;  %v1860_v43 = vmax.f32 %v1858_v4, %v1859_v62  ;;  %v1866_v16 = vrot.slane %v1865_v17, 1  ;;  %v2053_v63 = vsel %vm2027_vm15, %v1846_v9, %v2052_v47 }
 0x22f   :  { %v1874_v60 = vmax.f32 %v1872_v10, %v1873_v13  ;;  %v1880_v19 = vrot.slane %v1879_v12, 1  ;;  %v1887_v45 = vrot.slane %v1886_v34, 1  ;;  %v1893_v15 = vmax.f32 %v1891_v1, %v1892_v37  ;;  %2086 = vst [vmem:[#allocation3 + $0x20] sm:$0xfe] %v2053_v63 }
 0x230   :  { %v1867_v14 = vmax.f32 %v1865_v17, %v1866_v16  ;;  %v2059_v32 = vsel %vm2027_vm15, %v1853_v59, %v2058_v6  ;;  %v1136_v49 = vmax.f32 %v1028_v61, %v5787_v36  ;;  %v1137_v47 = vmax.f32 %v1029_v55, %v5790_v30  ;;  %v2417_v6 = vld [vmem:[#allocation4 + $0x340] sm:$0xff] }
 0x231   :  { %v1881_v53 = vmax.f32 %v1879_v12, %v1880_v19  ;;  %v1888_v33 = vmax.f32 %v1886_v34, %v1887_v45  ;;  %v1894_v0 = vrot.slane %v1893_v15, 1  ;;  %v2060_v18 = vsel %vm2035_vm1, %v1874_v60, %v1860_v43  ;;  %2087 = vst.msk [vmem:[#allocation3 + $0x28] sm:$0xfe] %vm2081_vm0, %v2059_v32  ;;  %v4979_v55 = vld [vmem:[#allocation3] ss:$8 sps:$4 sm:$0xee]  }
 0x232   :  { %v1260_v46 = vcombine.low %v1136_v49, %v1137_v47  ;;  %v1261_v44 = vcombine.high %v1136_v49, %v1137_v47  ;;  %v4587_v61 = vpack.c.bf16 %v2412_v31, %v2410_v38  ;;  %v4589_v36 = vpack.c.bf16 %v2411_v20, %v2409_v35 }
 0x233   :  { %v1895_v30 = vmax.f32 %v1893_v15, %v1894_v0  ;;  %v2066_v52 = vsel %vm2035_vm1, %v1881_v53, %v1867_v14  ;;  %v4591_v2 = vpack.c.bf16 %v2416_v26, %v2414_v21  ;;  %v5853_v5 = vsel %vm2017_vm10, %v1888_v33, %v2060_v18 }
 0x234   :  { %v1268_v56 = vrot.slane %v1260_v46, %v5591_v27  ;;  %v1275_v57 = vrot.slane %v1261_v44, %v5591_v27  ;;  %4588 = vmatprep.subr.bf16.mxu0 %v4587_v61  ;;  %v4593_v58 = vpack.c.bf16 %v2415_v24, %v2413_v39  ;;  %v4595_v4 = vpack.c.bf16 %v2420_v41, %v2418_v42 }
 0x235   :  { %v5858_v7 = vsel %vm2017_vm10, %v1895_v30, %v2066_v52  ;;  %4590 = vmatpush1.bf16.msra.mxu0 %v4589_v36  ;;  %v4597_v8 = vpack.c.bf16 %v2419_v40, %v2417_v6  ;;  %v4599_v10 = vpack.c.bf16 %v2424_v50, %v2422_v28  ;;  %v4601_v51 = vpack.c.bf16 %v2423_v3, %v2421_v29 }
 0x236   :  { %v1276_v11 = vcombine.high %v1268_v56, %v1268_v56  ;;  %v1277_v23 = vcombine.high %v1275_v57, %v1275_v57  ;;  %v1476_v1 = vrot.slane %v1268_v56, %v5591_v27  ;;  %v1492_v9 = vrot.slane %v1275_v57, %v5591_v27  ;;  %4592 = vmatprep.subr.bf16.mxu0 %v4591_v2 }
 0x237   :  { %v5863_v62 = vrot.slane %v4979_v55, %v5591_v27  ;;  %v5866_v17 = vrot.slane %v4981_v22, %v5591_v27  ;;  %v5869_v13 = vrot.slane %v4982_v54, %v5591_v27  ;;  %vm3329_vm10 = vcmask 916480  }
 0x238   :  { %v1477_v12 = vcombine.high %v1476_v1, %v1476_v1  ;;  %v1484_v34 = vrot.slane %v1276_v11, %v5591_v27  ;;  %v1493_v37 = vcombine.high %v1492_v9, %v1492_v9  ;;  %v1500_v59 = vrot.slane %v1277_v23, %v5591_v27 }
 0x239   :  { %v1896_v43 = vsel %vm1558_vm8, %v1476_v1, -inf  ;;  %v1924_v16 = vsel %vm1558_vm8, %v1492_v9, -inf  ;;  %4594 = vmatpush1.bf16.msra.mxu0 %v4593_v58  ;;  %v2264_v63 = vcombine.high %v5863_v62, %v5863_v62  ;;  %v2265_v9 = vcombine.high %v5866_v17, %v5866_v17 }
 0x23a   :  { %v1485_v38 = vcombine.high %v1484_v34, %v1484_v34  ;;  %v1501_v31 = vcombine.high %v1500_v59, %v1500_v59  ;;  %v1897_v35 = vrot.slane %v1896_v43, 4  ;;  %v1903_v60 = vsel %vm1566_vm9, %v1477_v12, -inf  ;;  %4596 = vmatprep.subr.bf16.mxu0 %v4595_v4 }
 0x23b   :  { %v1904_v19 = vrot.slane %v1903_v60, 4  ;;  %v1910_v45 = vsel %vm1558_vm8, %v1484_v34, -inf  ;;  %v1925_v15 = vrot.slane %v1924_v16, 4  ;;  %v1931_v20 = vsel %vm1566_vm9, %v1493_v37, -inf }
 0x23c   :  { %v1898_v21 = vmax.f32 %v1896_v43, %v1897_v35  ;;  %v1911_v26 = vrot.slane %v1910_v45, 4  ;;  %v1917_v14 = vsel %vm1566_vm9, %v1485_v38, -inf  ;;  %v1932_v32 = vrot.slane %v1931_v20, 4 }
 0x23d   :  { %v1905_v49 = vmax.f32 %v1903_v60, %v1904_v19  ;;  %v1918_v47 = vrot.slane %v1917_v14, 4  ;;  %v1926_v39 = vmax.f32 %v1924_v16, %v1925_v15  ;;  %v1938_v24 = vsel %vm1558_vm8, %v1500_v59, -inf  ;;  %4598 = vmatpush1.bf16.msra.mxu0 %v4597_v8 }
 0x23e   :  { %v1899_v42 = vrot.slane %v1898_v21, 2  ;;  %v1912_v53 = vmax.f32 %v1910_v45, %v1911_v26  ;;  %v1933_v33 = vmax.f32 %v1931_v20, %v1932_v32  ;;  %v1939_v0 = vrot.slane %v1938_v24, 4  ;;  %4600 = vmatprep.subr.bf16.mxu0 %v4599_v10  ;;  %v2179_v26 = vld [vmem:[#allocation4 + $0x18] sm:$0xff]  ;;  %v2196_v20 = vld [vmem:[#allocation4 + $0xa0] sm:$0xff] }
 0x23f   :  { %v1906_v18 = vrot.slane %v1905_v49, 2  ;;  %v1919_v41 = vmax.f32 %v1917_v14, %v1918_v47  ;;  %v1927_v6 = vrot.slane %v1926_v39, 2  ;;  %v1945_v40 = vsel %vm1566_vm9, %v1501_v31, -inf }
 0x240   :  { %v1900_v46 = vmax.f32 %v1898_v21, %v1899_v42  ;;  %v1913_v44 = vrot.slane %v1912_v53, 2  ;;  %v1934_v61 = vrot.slane %v1933_v33, 2  ;;  %v1940_v36 = vmax.f32 %v1938_v24, %v1939_v0  ;;  %v2177_v21 = vld [vmem:[#allocation4 + $0x8] sm:$0xff]  ;;  %v4984_v42 = vld [vmem:[#allocation3 + $0x14] ss:$8 sps:$4 sm:$0x77]  }
 0x241   :  { %v1907_v28 = vmax.f32 %v1905_v49, %v1906_v18  ;;  %v1920_v50 = vrot.slane %v1919_v41, 2  ;;  %v1928_v55 = vmax.f32 %v1926_v39, %v1927_v6  ;;  %v1946_v30 = vrot.slane %v1945_v40, 4  ;;  %4602 = vmatpush1.bf16.msra.mxu0 %v4601_v51  ;;  %v4985_v18 = vld [vmem:[#allocation3 + $0x20] ss:$8 sps:$4 sm:$0xee]  }
 0x242   :  { %v1901_v52 = vrot.slane %v1900_v46, 1  ;;  %v1914_v2 = vmax.f32 %v1912_v53, %v1913_v44  ;;  %v1935_v22 = vmax.f32 %v1933_v33, %v1934_v61  ;;  %v1941_v54 = vrot.slane %v1940_v36, 2  ;;  %v2176_v44 = vld [vmem:[#allocation4] sm:$0xff]  ;;  %v2178_v61 = vld [vmem:[#allocation4 + $0x10] sm:$0xff] }
 0x243   :  { %v1908_v56 = vrot.slane %v1907_v28, 1  ;;  %v1921_v57 = vmax.f32 %v1919_v41, %v1920_v50  ;;  %v1929_v58 = vrot.slane %v1928_v55, 1  ;;  %v1947_v29 = vmax.f32 %v1945_v40, %v1946_v30 }
 0x244   :  { %v1902_v3 = vmax.f32 %v1900_v46, %v1901_v52  ;;  %v1915_v4 = vrot.slane %v1914_v2, 1  ;;  %v1936_v8 = vrot.slane %v1935_v22, 1  ;;  %v1942_v10 = vmax.f32 %v1940_v36, %v1941_v54  ;;  %v2181_v36 = vld [vmem:[#allocation4 + $0x28] sm:$0xff]  ;;  %v2183_v52 = vld [vmem:[#allocation4 + $0x38] sm:$0xff] }
 0x245   :  { %v1909_v11 = vmax.f32 %v1907_v28, %v1908_v56  ;;  %v1922_v23 = vrot.slane %v1921_v57, 1  ;;  %v1948_v1 = vrot.slane %v1947_v29, 2  ;;  %v1930_v12 = vmax.f32 %v1928_v55, %v1929_v58  ;;  %v4987_v54 = vld [vmem:[#allocation3 + $0x24] ss:$8 sps:$4 sm:$0xff]   ;;  %v2182_v56 = vld [vmem:[#allocation4 + $0x30] sm:$0xff]  ;;  %v2187_v58 = vld [vmem:[#allocation4 + $0x58] sm:$0xff] }
 0x246   :  { %v1916_v51 = vmax.f32 %v1914_v2, %v1915_v4  ;;  %v1943_v34 = vrot.slane %v1942_v10, 1  ;;  %v2062_v37 = vsel %vm2019_vm11, %v1902_v3, %v5853_v5  ;;  %v1937_v43 = vmax.f32 %v1935_v22, %v1936_v8  ;;  %v2180_v2 = vld [vmem:[#allocation4 + $0x20] sm:$0xff] }
 0x247   :  { %v1923_v59 = vmax.f32 %v1921_v57, %v1922_v23  ;;  %v1949_v16 = vmax.f32 %v1947_v29, %v1948_v1  ;;  %v2068_v38 = vsel %vm2019_vm11, %v1909_v11, %v5858_v7  ;;  %v2326_v60 = vrot.slane %v2264_v63, 7  ;;  %v2185_v57 = vld [vmem:[#allocation4 + $0x48] sm:$0xff] }
 0x248   :  { %v1944_v31 = vmax.f32 %v1942_v10, %v1943_v34  ;;  %v2063_v35 = vsel %vm2021_vm12, %v1916_v51, %v2062_v37  ;;  %v2329_v19 = vrot.slane %v5866_v17, 7  ;;  %v2332_v7 = vrot.slane %v2265_v9, 7  ;;  %v2184_v9 = vld [vmem:[#allocation4 + $0x40] sm:$0xff]  ;;  %v2186_v51 = vld [vmem:[#allocation4 + $0x50] sm:$0xff] }
 0x249   :  { %v1950_v45 = vrot.slane %v1949_v16, 1  ;;  %v2064_v5 = vsel %vm2023_vm13, %v1930_v12, %v2063_v35  ;;  %v2069_v15 = vsel %vm2021_vm12, %v1923_v59, %v2068_v38  ;;  %v4058_v63 = vrot.slane %v5863_v62, 9 }
 0x24a   :  { %v2065_v14 = vsel %vm2025_vm14, %v1944_v31, %v2064_v5  ;;  %v2070_v32 = vsel %vm2023_vm13, %v1937_v43, %v2069_v15  ;;  %v2328_v17 = vrot.slane %v2326_v60, 2  ;;  %v2331_v47 = vrot.slane %v2329_v19, 2  ;;  %v2189_v43 = vld [vmem:[#allocation4 + $0x68] sm:$0xff] }
 0x24b   :  { %v1951_v49 = vmax.f32 %v1949_v16, %v1950_v45  ;;  %2088 = vst [vmem:[#allocation3 + $0x30] sm:$0x7f] %v2065_v14  ;;  %v2334_v39 = vrot.slane %v2332_v7, 2  ;;  %v2335_v24 = vrot.slane %v5869_v13, 7  ;;  %v2327_v53 = vsel %vm5900_vm7, %v4058_v63, %v2326_v60  ;;  %v2191_v16 = vld [vmem:[#allocation4 + $0x78] sm:$0xff] }
 0x24c   :  { %v2330_v33 = vsel %vm5900_vm7, %v2328_v17, %v2329_v19  ;;  %v4603_v0 = vpack.c.bf16 %v2179_v26, %v2177_v21  ;;  %v2333_v62 = vsel %vm5900_vm7, %v2331_v47, %v2332_v7  ;;  %v2281_v28 = vrot.slane %v4984_v42, %v5591_v27  ;;  %v4991_v60 = vld [vmem:[#allocation3] ss:$8 sps:$4 sm:$0xff]  }
 0x24d   :  { %v2071_v41 = vsel %vm2025_vm14, %v1951_v49, %v2070_v32  ;;  %v2336_v6 = vsel %vm5900_vm7, %v2334_v39, %v2335_v24  ;;  %v2425_v40 = vcombine.low %v2327_v53, %v2330_v33  ;;  %v2282_v50 = vcombine.high %v5869_v13, %v5869_v13  ;;  %v2188_v53 = vld [vmem:[#allocation4 + $0x60] sm:$0xff]  ;;  %v2190_v33 = vld [vmem:[#allocation4 + $0x70] sm:$0xff] }
 0x24e   :  { %2089 = vst.msk [vmem:[#allocation3 + $0x38] sm:$0x7f] %vm2084_vm2, %v2071_v41  ;;  %v2426_v46 = vcombine.low %v2333_v62, %v2336_v6  ;;  %4604 = vmatprep.subr.bf16.mxu0 %v4603_v0  ;;  %v2292_v22 = vrot.slane %v4985_v18, %v5591_v27  ;;  %v2283_v29 = vcombine.high %v2281_v28, %v2281_v28  ;;  %v2337_v3 = vrot.slane %v2335_v24, 2 }
 0x24f   :  { %v2433_v55 = vrot.slane %v2425_v40, %v5591_v27  ;;  %v2338_v4 = vrot.slane %v2282_v50, 7  ;;  %v2341_v8 = vrot.slane %v2281_v28, 7  ;;  %v4605_v23 = vpack.c.bf16 %v2178_v61, %v2176_v44  ;;  %v4993_v40 = vld [vmem:[#allocation3 + $0x4] ss:$8 sps:$4 sm:$0xff]  }
 0x250   :  { %v2440_v30 = vrot.slane %v2426_v46, %v5591_v27  ;;  %v2300_v13 = vcombine.high %v2292_v22, %v2292_v22  ;;  %v4607_v1 = vpack.c.bf16 %v2183_v52, %v2181_v36  ;;  %v2344_v37 = vrot.slane %v2283_v29, 7  ;;  %v2193_v52 = vld [vmem:[#allocation4 + $0x88] sm:$0xff] }
 0x251   :  { %v2340_v12 = vrot.slane %v2338_v4, 2  ;;  %v2343_v34 = vrot.slane %v2341_v8, 2  ;;  %v4609_v59 = vpack.c.bf16 %v2182_v56, %v2180_v2  ;;  %v4059_v38 = vrot.slane %v2292_v22, 9  ;;  %v2195_v2 = vld [vmem:[#allocation4 + $0x98] sm:$0xff] }
 0x252   :  { %v2441_v10 = vcombine.low %v2433_v55, %v2440_v30  ;;  %v2442_v11 = vcombine.high %v2433_v55, %v2440_v30  ;;  %v2348_v31 = vrot.slane %v2300_v13, 7  ;;  %v2299_v35 = vrot.slane %v4987_v54, %v5591_v27 }
 0x253   :  { %v4611_v19 = vpack.c.bf16 %v2187_v58, %v2185_v57  ;;  %v2339_v45 = vsel %vm5900_vm7, %v2337_v3, %v2338_v4  ;;  %v2342_v5 = vsel %vm5900_vm7, %v2340_v12, %v2341_v8  ;;  %v2345_v15 = vsel %vm5900_vm7, %v2343_v34, %v2344_v37  ;;  %v2197_v37 = vld [vmem:[#allocation4 + $0xa8] sm:$0xff] }
 0x254   :  { %4060 = vmatprep.mubr.msk.f32.mxu0 %vm1953_vm6, %v2442_v11  ;;  %v2349_v21 = vsel %vm5900_vm7, %v4059_v38, %v2348_v31  ;;  %v2443_v26 = vcombine.low %v2339_v45, %v2342_v5  ;;  %v2301_v14 = vcombine.high %v2299_v35, %v2299_v35  ;;  %v2350_v32 = vrot.slane %v2348_v31, 2 }
 0x255   :  { %2565 = vmatmul.mubr.f32.vlgmr.msra.gmra.mrb[18].mxu0 %v2441_v10  ;;  %v4988_v7 = vld [vmem:[#allocation3 + $0x30] ss:$8 sps:$4 sm:$0xff]   ;;  %v4990_v63 = vld [vmem:[#allocation3 + $0x34] ss:$8 sps:$4 sm:$0x77]   ;;  %v4613_v17 = vpack.c.bf16 %v2186_v51, %v2184_v9  ;;  %v2444_v49 = vcombine.low %v2345_v15, %v2349_v21  ;;  %v2351_v39 = vrot.slane %v2299_v35, 7  ;;  %v4615_v24 = vpack.c.bf16 %v2191_v16, %v2189_v43 }
 0x256   :  { %4606 = vmatpush1.bf16.msra.mxu0 %v4605_v23  ;;  %v2310_v47 = vrot.slane %v4988_v7, %v5591_v27  ;;  %v2451_v42 = vrot.slane %v2443_v26, %v5591_v27  ;;  %v2354_v0 = vrot.slane %v2301_v14, 7  ;;  %v2317_v18 = vrot.slane %v4990_v63, %v5591_v27  ;;  %v2194_v9 = vld [vmem:[#allocation4 + $0x90] sm:$0xff]  ;;  %v2201_v14 = vld [vmem:[#allocation4 + $0xc8] sm:$0xff] }
 0x257   :  { %4608 = vmatprep.subr.bf16.mxu0 %v4607_v1  ;;  %v2458_v41 = vrot.slane %v2444_v49, %v5591_v27  ;;  %v2353_v6 = vrot.slane %v2351_v39, 2  ;;  %v2114_v46 = vrot.slane %v4991_v60, %v5591_v27  ;;  %v2352_v44 = vsel %vm5900_vm7, %v2350_v32, %v2351_v39  ;;  %v2192_v1 = vld [vmem:[#allocation4 + $0x80] sm:$0xff]  ;;  %v2198_v21 = vld [vmem:[#allocation4 + $0xb0] sm:$0xff]  ;;  %v2203_v32 = vld [vmem:[#allocation4 + $0xd8] sm:$0xff] }
 0x258   :  { %v2318_v62 = vcombine.high %v2310_v47, %v2310_v47  ;;  %v2357_v61 = vrot.slane %v2310_v47, 7  ;;  %v2319_v36 = vcombine.high %v2317_v18, %v2317_v18  ;;  %v2363_v28 = vrot.slane %v2317_v18, 7  ;;  %v2200_v39 = vld [vmem:[#allocation4 + $0xc0] sm:$0xff] }
 0x259   :  { %v2460_v50 = vcombine.high %v2451_v42, %v2458_v41  ;;  %v4617_v55 = vpack.c.bf16 %v2190_v33, %v2188_v53  ;;  %v2459_v30 = vcombine.low %v2451_v42, %v2458_v41  ;;  %v2355_v54 = vsel %vm5900_vm7, %v2353_v6, %v2354_v0  ;;  %v2205_v42 = vld [vmem:[#allocation4 + $0xe8] sm:$0xff]  ;;  %v2207_v53 = vld [vmem:[#allocation4 + $0xf8] sm:$0xff]  ;;  %v2204_v41 = vld [vmem:[#allocation4 + $0xe0] sm:$0xff] }
 0x25a   :  { %4610 = vmatpush1.bf16.msra.mxu0 %v4609_v59  ;;  %v2360_v22 = vrot.slane %v2318_v62, 7  ;;  %v2356_v56 = vrot.slane %v2354_v0, 2  ;;  %v2359_v57 = vrot.slane %v2357_v61, 2  ;;  %v2365_v58 = vrot.slane %v2363_v28, 2  ;;  %v2199_v59 = vld [vmem:[#allocation4 + $0xb8] sm:$0xff]  ;;  %v2206_v62 = vld [vmem:[#allocation4 + $0xf0] sm:$0xff] }
 0x25b   :  { %4612 = vmatprep.subr.bf16.mxu0 %v4611_v19  ;;  %4061 = vmatprep.mubr.msk.f32.mxu0 %vm1953_vm6, %v2460_v50  ;;  %v2461_v29 = vcombine.low %v2352_v44, %v2355_v54  ;;  %v2366_v4 = vrot.slane %v2319_v36, 7  ;;  %v2121_v8 = vrot.slane %v4993_v40, %v5591_v27  ;;  %v4619_v10 = vpack.c.bf16 %v2195_v2, %v2193_v52  ;;  %v2209_v6 = vld [vmem:[#allocation4 + $0x108] sm:$0xff]  ;;  %v2211_v40 = vld [vmem:[#allocation4 + $0x118] sm:$0xff]  ;;  %v2210_v36 = vld [vmem:[#allocation4 + $0x110] sm:$0xff] }
 0x25c   :  { %v2362_v3 = vrot.slane %v2360_v22, 2  ;;  %v2358_v11 = vsel %vm5900_vm7, %v2356_v56, %v2357_v61  ;;  %v2361_v23 = vsel %vm5900_vm7, %v2359_v57, %v2360_v22  ;;  %v2122_v13 = vcombine.high %v2114_v46, %v2114_v46  ;;  %2571 = vmatmul.mubr.f32.gmra.mrb[20].mxu0 %v2459_v30  ;;  %v2208_v61 = vld [vmem:[#allocation4 + $0x100] sm:$0xff]  ;;  %v2215_v50 = vld [vmem:[#allocation4 + $0x138] sm:$0xff]  ;;  %v2214_v2 = vld [vmem:[#allocation4 + $0x130] sm:$0xff] }
 0x25d   :  { %v2462_v51 = vcombine.low %v2358_v11, %v2361_v23  ;;  %v2367_v34 = vsel %vm5900_vm7, %v2365_v58, %v2366_v4  ;;  %v2123_v16 = vcombine.high %v2121_v8, %v2121_v8  ;;  %v2469_v38 = vrot.slane %v2461_v29, %v5591_v27  ;;  %v2212_v52 = vld [vmem:[#allocation4 + $0x120] sm:$0xff]  ;;  %v2217_v22 = vld [vmem:[#allocation4 + $0x148] sm:$0xff]  ;;  %v2219_v54 = vld [vmem:[#allocation4 + $0x158] sm:$0xff] }
 0x25e   :  { %4614 = vmatpush1.bf16.msra.mxu0 %v4613_v17  ;;  %v2364_v12 = vsel %vm5900_vm7, %v2362_v3, %v2363_v28  ;;  %v4621_v35 = vpack.c.bf16 %v2194_v9, %v2192_v1  ;;  %v2589_v19 = vcombine.low %v2114_v46, %v2122_v13  ;;  %v4623_v15 = vpack.c.bf16 %v2199_v59, %v2197_v37  ;;  %v2213_v28 = vld [vmem:[#allocation4 + $0x128] sm:$0xff]  ;;  %v2216_v58 = vld [vmem:[#allocation4 + $0x140] sm:$0xff]  ;;  %v2218_v29 = vld [vmem:[#allocation4 + $0x150] sm:$0xff] }
 0x25f   :  { %4616 = vmatprep.subr.bf16.mxu0 %v4615_v24  ;;  %v2479_v43 = vcombine.low %v2364_v12, %v2367_v34  ;;  %v2476_v31 = vrot.slane %v2462_v51, %v5591_v27  ;;  %v2590_v45 = vcombine.low %v2121_v8, %v2123_v16  ;;  %v4625_v63 = vpack.c.bf16 %v2198_v21, %v2196_v20  ;;  %v2202_v24 = vld [vmem:[#allocation4 + $0xd0] sm:$0xff]  ;;  %v2221_v3 = vld [vmem:[#allocation4 + $0x168] sm:$0xff]  ;;  %v2223_v4 = vld [vmem:[#allocation4 + $0x178] sm:$0xff] }
 0x260   :  { %v5958_v17 = vrot.slane %v2589_v19, %v5591_v27  ;;  %v4627_v47 = vpack.c.bf16 %v2203_v32, %v2201_v14  ;;  %v4629_v33 = vpack.c.bf16 %v2202_v24, %v2200_v39  ;;  %v4631_v18 = vpack.c.bf16 %v2207_v53, %v2205_v42  ;;  %v2220_v23 = vld [vmem:[#allocation4 + $0x160] sm:$0xff]  ;;  %v2222_v13 = vld [vmem:[#allocation4 + $0x170] sm:$0xff]  ;;  %v2225_v1 = vld [vmem:[#allocation4 + $0x188] sm:$0xff] }
 0x261   :  { %v2486_v60 = vrot.slane %v2479_v43, %v5591_v27  ;;  %v2478_v5 = vcombine.high %v2469_v38, %v2476_v31  ;;  %v2477_v7 = vcombine.low %v2469_v38, %v2476_v31  ;;  %v5961_v49 = vrot.slane %v2590_v45, %v5591_v27  ;;  %v2227_v9 = vld [vmem:[#allocation4 + $0x198] sm:$0xff]  ;;  %v4997_v51 = vld [vmem:[#allocation3 + $0x20] ss:$8 sps:$4 sm:$0xff]   ;;  %v4999_v59 = vld [vmem:[#allocation3 + $0x24] ss:$8 sps:$4 sm:$0xff]  }
 0x262   :  { %4618 = vmatpush1.bf16.msra.mxu0 %v4617_v55  ;;  %v4633_v46 = vpack.c.bf16 %v2206_v62, %v2204_v41  ;;  %v4635_v44 = vpack.c.bf16 %v2211_v40, %v2209_v6  ;;  %v4637_v55 = vpack.c.bf16 %v2210_v36, %v2208_v61  ;;  %v4639_v30 = vpack.c.bf16 %v2215_v50, %v2213_v28  ;;  %v4996_v34 = vld [vmem:[#allocation3 + $0x14] ss:$8 sps:$4 sm:$0x33]   ;;  %v2224_v16 = vld [vmem:[#allocation4 + $0x180] sm:$0xff]  ;;  %v2229_v31 = vld [vmem:[#allocation4 + $0x1a8] sm:$0xff] }
 0x263   :  { %4620 = vmatprep.subr.bf16.mxu0 %v4619_v10  ;;  %v2487_v26 = vcombine.high %v2486_v60, %v2486_v60  ;;  %4062 = vmatprep.mubr.msk.f32.mxu0 %vm1953_vm6, %v2478_v5  ;;  %v2606_v0 = vcombine.high %v5958_v17, %v5961_v49  ;;  %v4641_v56 = vpack.c.bf16 %v2214_v2, %v2212_v52  ;;  %v4994_v10 = vld [vmem:[#allocation3 + $0x10] ss:$8 sps:$4 sm:$0xff]   ;;  %v2228_v21 = vld [vmem:[#allocation4 + $0x1a0] sm:$0xff]  ;;  %v2843_v14 = vld [vmem:[#allocation4 + $0x388] sm:$0xff]  ;;  %vm3122_vm8 = vcmask 130048  }
 0x264   :  { %2577 = vmatmul.mubr.f32.gmra.mrb[22].mxu0 %v2477_v7  ;;  %v4643_v57 = vpack.c.bf16 %v2219_v54, %v2217_v22  ;;  %v4645_v8 = vpack.c.bf16 %v2218_v29, %v2216_v58  ;;  %v4647_v11 = vpack.c.bf16 %v2223_v4, %v2221_v3  ;;  %v4649_v12 = vpack.c.bf16 %v2222_v13, %v2220_v23  ;;  %v2226_v38 = vld [vmem:[#allocation4 + $0x190] sm:$0xff]  ;;  %v2845_v32 = vld [vmem:[#allocation4 + $0x398] sm:$0xff]  ;;  %v5003_v24 = vld [vmem:[#allocation3] ss:$8 sps:$4 sm:$0xcc]  }
 0x265   :  { %4063 = vmatprep.mubr.msk.f32.mxu0 %vm1953_vm6, %v2487_v26  ;;  %v2132_v37 = vrot.slane %v4994_v10, %v5591_v27  ;;  %v4651_v43 = vpack.c.bf16 %v2227_v9, %v2225_v1  ;;  %v5000_v19 = vld [vmem:[#allocation3 + $0x30] ss:$8 sps:$4 sm:$0xff]   ;;  %v4653_v45 = vpack.c.bf16 %v2226_v38, %v2224_v16  ;;  %v2139_v5 = vrot.slane %v4996_v34, %v5591_v27  ;;  %v5002_v39 = vld [vmem:[#allocation3 + $0x34] ss:$8 sps:$4 sm:$0x33]   ;;  %v2846_v2 = vld [vmem:[#allocation4 + $0x3a0] sm:$0xff] }
 0x266   :  { %4622 = vmatpush1.bf16.msra.mxu0 %v4621_v35  ;;  %v2231_v35 = vld [vmem:[#allocation4 + $0x1b8] sm:$0xff]  ;;  %v2156_v7 = vrot.slane %v4999_v59, %v5591_v27  ;;  %v2230_v26 = vld [vmem:[#allocation4 + $0x1b0] sm:$0xff]  ;;  %v5005_v62 = vld [vmem:[#allocation3 + $0x4] ss:$8 sps:$4 sm:$0xff]   ;;  %v4659_v6 = vpack.c.bf16 %v2845_v32, %v2843_v14  ;;  %v2777_v54 = vrot.slane %v5003_v24, %v5591_v27  ;;  %vm3212_vm9 = vcmask 910336  }
 0x267   :  { %4624 = vmatprep.subr.bf16.mxu0 %v4623_v15  ;;  %v2140_v15 = vcombine.high %v2132_v37, %v2132_v37  ;;  %v4655_v20 = vpack.c.bf16 %v2231_v35, %v2229_v31  ;;  %v4657_v42 = vpack.c.bf16 %v2230_v26, %v2228_v21  ;;  %v5006_v28 = vld [vmem:[#allocation3 + $0x10] ss:$8 sps:$4 sm:$0xff]   ;;  %v2851_v4 = vld [vmem:[#allocation4 + $0x3c8] sm:$0xff]  ;;  %v2858_v32 = vld [vmem:[#allocation4 + $0x400] sm:$0xff]  ;;  %vm3955_vm11 = vcmask 74752  }
 0x268   :  { %2583 = vmatmul.mubr.f32.gmra.mrb[24].mxu0 %v2486_v60  ;;  %v2149_v60 = vrot.slane %v4997_v51, %v5591_v27  ;;  %v2158_v41 = vcombine.high %v2156_v7, %v2156_v7  ;;  %v2848_v22 = vld [vmem:[#allocation4 + $0x3b0] sm:$0xff]  ;;  %v2785_v1 = vcombine.high %v2777_v54, %v2777_v54  ;;  %v2850_v51 = vld [vmem:[#allocation4 + $0x3c0] sm:$0xff]  ;;  %v2855_v59 = vld [vmem:[#allocation4 + $0x3e8] sm:$0xff] }
 0x269   :  { %4064 = vmatprep.mubr.msk.f32.mxu0 %vm1953_vm6, %v2606_v0  ;;  %v2607_v53 = vcombine.low %v2132_v37, %v2140_v15  ;;  %v2844_v0 = vld [vmem:[#allocation4 + $0x390] sm:$0xff]  ;;  %v4665_v23 = vpack.c.bf16 %v2848_v22, %v2846_v2  ;;  %v2865_v24 = vld [vmem:[#allocation4 + $0x438] sm:$0xff]  ;;  %v2874_v54 = vld [vmem:[#allocation4 + $0x480] sm:$0xff] }
 0x26a   :  { %4626 = vmatpush1.bf16.msra.mxu0 %v4625_v63  ;;  %v2608_v63 = vcombine.low %v2139_v5, %v2149_v60 }
 0x26b   :  { %4628 = vmatprep.subr.bf16.mxu0 %v4627_v47  ;;  %v2167_v47 = vrot.slane %v5000_v19, %v5591_v27  ;;  %v2854_v19 = vld [vmem:[#allocation4 + $0x3e0] sm:$0xff] }
 0x26c   :  { %v2622_v40 = vrot.slane %v2608_v63, %v5591_v27  ;;  %v2860_v63 = vld [vmem:[#allocation4 + $0x410] sm:$0xff] }
 0x26d   :  { %v2626_v61 = vcombine.low %v2158_v41, %v2167_v47  ;;  %v2175_v36 = vcombine.high %v2167_v47, %v2167_v47  ;;  %v2869_v41 = vld [vmem:[#allocation4 + $0x458] sm:$0xff] }
 0x26e   :  { %4630 = vmatpush1.bf16.msra.mxu0 %v4629_v33  ;;  %v2842_v33 = vld [vmem:[#allocation4 + $0x380] sm:$0xff] }
 0x26f   :  { %4632 = vmatprep.subr.bf16.mxu0 %v4631_v18  ;;  %v2157_v18 = vcombine.high %v2149_v60, %v2149_v60  ;;  %v4661_v50 = vpack.c.bf16 %v2844_v0, %v2842_v33  ;;  %v2640_v3 = vrot.slane %v2626_v61, %v5591_v27  ;;  %v2862_v33 = vld [vmem:[#allocation4 + $0x420] sm:$0xff]  ;;  %v2864_v0 = vld [vmem:[#allocation4 + $0x430] sm:$0xff]  ;;  %v2873_v61 = vld [vmem:[#allocation4 + $0x478] sm:$0xff] }
 0x271   :  { %v2625_v52 = vcombine.low %v2157_v18, %v2156_v7  ;;  %v2859_v7 = vld [vmem:[#allocation4 + $0x408] sm:$0xff] }
 0x272   :  { %4634 = vmatpush1.bf16.msra.mxu0 %v4633_v46  ;;  %v2847_v46 = vld [vmem:[#allocation4 + $0x3a8] sm:$0xff] }
 0x273   :  { %4636 = vmatprep.subr.bf16.mxu0 %v4635_v44  ;;  %v2849_v44 = vld [vmem:[#allocation4 + $0x3b8] sm:$0xff]  ;;  %v2633_v13 = vrot.slane %v2625_v52, %v5591_v27  ;;  %v2867_v18 = vld [vmem:[#allocation4 + $0x448] sm:$0xff] }
 0x274   :  { %v4663_v58 = vpack.c.bf16 %v2849_v44, %v2847_v46  ;;  %v2868_v46 = vld [vmem:[#allocation4 + $0x450] sm:$0xff]  ;;  %v2871_v44 = vld [vmem:[#allocation4 + $0x468] sm:$0xff]  ;;  %v2877_v52 = vld [vmem:[#allocation4 + $0x498] sm:$0xff] }
 0x275   :  { %v2642_v34 = vcombine.high %v2633_v13, %v2640_v3  ;;  %v2641_v35 = vcombine.low %v2633_v13, %v2640_v3 }
 0x276   :  { %4638 = vmatpush1.bf16.msra.mxu0 %v4637_v55  ;;  %v2174_v55 = vrot.slane %v5002_v39, %v5591_v27  ;;  %v2863_v39 = vld [vmem:[#allocation4 + $0x428] sm:$0xff] }
 0x277   :  { %4640 = vmatprep.subr.bf16.mxu0 %v4639_v30  ;;  %v2615_v30 = vrot.slane %v2607_v53, %v5591_v27  ;;  %v4679_v53 = vpack.c.bf16 %v2865_v24, %v2863_v39 }
 0x278   :  { %v2643_v10 = vcombine.low %v2175_v36, %v2174_v55  ;;  %v2872_v55 = vld [vmem:[#allocation4 + $0x470] sm:$0xff] }
 0x279   :  { %v2624_v29 = vcombine.high %v2615_v30, %v2622_v40 }
 0x27a   :  { %4642 = vmatpush1.bf16.msra.mxu0 %v4641_v56  ;;  %v2784_v56 = vrot.slane %v5005_v62, %v5591_v27  ;;  %v2650_v37 = vrot.slane %v2643_v10, %v5591_v27  ;;  %v4681_v62 = vpack.c.bf16 %v2864_v0, %v2862_v33  ;;  %v2883_v10 = vld [vmem:[#allocation4 + $0x4c8] sm:$0xff]  ;;  %v2894_v33 = vld [vmem:[#allocation4 + $0x520] sm:$0xff]  ;;  %v2896_v0 = vld [vmem:[#allocation4 + $0x530] sm:$0xff] }
 0x27b   :  { %4644 = vmatprep.subr.bf16.mxu0 %v4643_v57  ;;  %v2605_v57 = vcombine.low %v5958_v17, %v5961_v49  ;;  %v2623_v49 = vcombine.low %v2615_v30, %v2622_v40  ;;  %v2866_v40 = vld [vmem:[#allocation4 + $0x440] sm:$0xff]  ;;  %v2875_v30 = vld [vmem:[#allocation4 + $0x488] sm:$0xff] }
 0x27c   :  { %v2786_v17 = vcombine.high %v2784_v56, %v2784_v56  ;;  %v2898_v31 = vcombine.low %v2785_v1, %v2784_v56  ;;  %v2651_v5 = vcombine.high %v2650_v37, %v2650_v37  ;;  %v4685_v36 = vpack.c.bf16 %v2868_v46, %v2866_v40  ;;  %v2876_v56 = vld [vmem:[#allocation4 + $0x490] sm:$0xff] }
 0x27d   :  { %v4691_v22 = vpack.c.bf16 %v2877_v52, %v2875_v30 }
 0x27e   :  { %4646 = vmatpush1.bf16.msra.mxu0 %v4645_v8  ;;  %v2853_v8 = vld [vmem:[#allocation4 + $0x3d8] sm:$0xff]  ;;  %v5993_v26 = vrot.slane %v2898_v31, %v5591_v27 }
 0x27f   :  { %4648 = vmatprep.subr.bf16.mxu0 %v4647_v11  ;;  %v5981_v11 = vrot.slane %v5006_v28, %v5591_v27  ;;  %v4667_v9 = vpack.c.bf16 %v2853_v8, %v2851_v4  ;;  %v4687_v28 = vpack.c.bf16 %v2873_v61, %v2871_v44  ;;  %v2878_v4 = vld [vmem:[#allocation4 + $0x4a0] sm:$0xff]  ;;  %v2880_v8 = vld [vmem:[#allocation4 + $0x4b0] sm:$0xff] }
 0x280   :  { %v4697_v13 = vpack.c.bf16 %v2880_v8, %v2878_v4  ;;  %v5012_v31 = vld [vmem:[#allocation3 + $0x30] ss:$8 sps:$4 sm:$0xff]  }
 0x281   :  { %v2899_v16 = vcombine.low %v2786_v17, %v5981_v11  ;;  %v2882_v17 = vld [vmem:[#allocation4 + $0x4c0] sm:$0xff]  ;;  %v2803_v24 = vcombine.high %v5981_v11, %v5981_v11  ;;  %v3314_v4 = vld [vmem:[%s6492_s5 + $0x10] sm:$0xff]  ;;  %v3315_v8 = vld [vmem:[%s6492_s5 + $0x18] sm:$0xff] }
 0x282   :  { %4650 = vmatpush1.bf16.msra.mxu0 %v4649_v12  ;;  %v2852_v12 = vld [vmem:[#allocation4 + $0x3d0] sm:$0xff] }
 0x283   :  { %4652 = vmatprep.subr.bf16.mxu0 %v4651_v43  ;;  %v2857_v43 = vld [vmem:[#allocation4 + $0x3f8] sm:$0xff]  ;;  %v4669_v38 = vpack.c.bf16 %v2852_v12, %v2850_v51  ;;  %v5989_v15 = vrot.slane %v2899_v16, %v5591_v27 }
 0x284   :  { %v4671_v60 = vpack.c.bf16 %v2857_v43, %v2855_v59  ;;  %v2889_v51 = vld [vmem:[#allocation4 + $0x4f8] sm:$0xff]  ;;  %v2888_v59 = vld [vmem:[#allocation4 + $0x4f0] sm:$0xff]  ;;  %v2891_v43 = vld [vmem:[#allocation4 + $0x508] sm:$0xff] }
 0x285   :  { %v2915_v47 = vcombine.high %v5993_v26, %v5989_v15  ;;  %v2893_v16 = vld [vmem:[#allocation4 + $0x518] sm:$0xff] }
 0x286   :  { %4654 = vmatpush1.bf16.msra.mxu0 %v4653_v45  ;;  %v2856_v45 = vld [vmem:[#allocation4 + $0x3f0] sm:$0xff] }
 0x287   :  { %4656 = vmatprep.subr.bf16.mxu0 %v4655_v20  ;;  %v2861_v20 = vld [vmem:[#allocation4 + $0x418] sm:$0xff]  ;;  %v4673_v21 = vpack.c.bf16 %v2856_v45, %v2854_v19  ;;  %v5011_v19 = vld [vmem:[#allocation3 + $0x24] ss:$8 sps:$4 sm:$0xff]   ;;  %v4707_v45 = vpack.c.bf16 %v2893_v16, %v2891_v43 }
 0x288   :  { %v4675_v14 = vpack.c.bf16 %v2861_v20, %v2859_v7  ;;  %v2892_v7 = vld [vmem:[#allocation4 + $0x510] sm:$0xff]  ;;  %v2895_v20 = vld [vmem:[#allocation4 + $0x528] sm:$0xff] }
 0x28a   :  { %4658 = vmatpush1.bf16.msra.mxu0 %v4657_v42  ;;  %v4677_v42 = vpack.c.bf16 %v2860_v63, %v2858_v32  ;;  %v2831_v32 = vrot.slane %v5012_v31, %v5591_v27  ;;  %v5014_v63 = vld [vmem:[#allocation3 + $0x34] ss:$8 sps:$4 sm:$0xff]  }
 0x28b   :  { %4660 = vmatprep.subr.bf16.mxu0 %v4659_v6  ;;  %v4683_v6 = vpack.c.bf16 %v2869_v41, %v2867_v18 }
 0x28c   :  { %v2839_v41 = vcombine.high %v2831_v32, %v2831_v32 }
 0x28d   :  { %2729 = vmatmul.mubr.f32.vlgmr.msra.gmra.mrb[18].mxu0 %v2605_v57  ;;  %v2879_v57 = vld [vmem:[#allocation4 + $0x4a8] sm:$0xff] }
 0x28e   :  { %4065 = vmatprep.mubr.msk.f32.mxu0 %vm1953_vm6, %v2624_v29  ;;  %4662 = vmatpush1.bf16.msra.mxu0 %v4661_v50  ;;  %v2870_v50 = vld [vmem:[#allocation4 + $0x460] sm:$0xff]  ;;  %v4693_v29 = vpack.c.bf16 %v2876_v56, %v2874_v54  ;;  %v2935_v61 = vcombine.low %v2831_v32, %v2839_v41 }
 0x28f   :  { %4664 = vmatprep.subr.bf16.mxu0 %v4663_v58  ;;  %v4689_v2 = vpack.c.bf16 %v2872_v55, %v2870_v50  ;;  %v2881_v58 = vld [vmem:[#allocation4 + $0x4b8] sm:$0xff]  ;;  %v2914_v50 = vcombine.low %v5993_v26, %v5989_v15  ;;  %v3312_v15 = vld [vmem:[%s6492_s5] sm:$0xff]  ;;  %v3313_v26 = vld [vmem:[%s6492_s5 + $0x8] sm:$0xff] }
 0x290   :  { %v4695_v3 = vpack.c.bf16 %v2881_v58, %v2879_v57  ;;  %v2949_v30 = vrot.slane %v2935_v61, %v5591_v27  ;;  %v6503_v61 = vmov 0.0  }
 0x291   :  { %2735 = vmatmul.mubr.f32.gmra.mrb[20].mxu0 %v2623_v49  ;;  %v2884_v49 = vld [vmem:[#allocation4 + $0x4d0] sm:$0xff] }
 0x292   :  { %4066 = vmatprep.mubr.msk.f32.mxu0 %vm1953_vm6, %v2642_v34  ;;  %4666 = vmatpush1.bf16.msra.mxu0 %v4665_v23  ;;  %v2885_v23 = vld [vmem:[#allocation4 + $0x4d8] sm:$0xff]  ;;  %v4701_v12 = vpack.c.bf16 %v2884_v49, %v2882_v17  ;;  %v6502_v49 = vsub.s32 1, %v5460_v25 }
 0x293   :  { %4668 = vmatprep.subr.bf16.mxu0 %v4667_v9  ;;  %v4699_v1 = vpack.c.bf16 %v2885_v23, %v2883_v10  ;;  %v2887_v9 = vld [vmem:[#allocation4 + $0x4e8] sm:$0xff]  ;;  %v4719_v10 = vpack.c.bf16 %v3315_v8, %v3314_v4 }
 0x294   :  { %v4703_v34 = vpack.c.bf16 %v2889_v51, %v2887_v9 }
 0x295   :  { %2741 = vmatmul.mubr.f32.gmra.mrb[22].mxu0 %v2641_v35 }
 0x296   :  { %4067 = vmatprep.mubr.msk.f32.mxu0 %vm1953_vm6, %v2651_v5  ;;  %4670 = vmatpush1.bf16.msra.mxu0 %v4669_v38  ;;  %v5009_v38 = vld [vmem:[#allocation3 + $0x20] ss:$8 sps:$4 sm:$0xcc]  }
 0x297   :  { %4672 = vmatprep.subr.bf16.mxu0 %v4671_v60  ;;  %v5008_v60 = vld [vmem:[#allocation3 + $0x14] ss:$8 sps:$4 sm:$0xff]   ;;  %v2890_v5 = vld [vmem:[#allocation4 + $0x500] sm:$0xff] }
 0x298   :  { %v2802_v39 = vrot.slane %v5008_v60, %v5591_v27 }
 0x299   :  { %2747 = vmatmul.mubr.f32.gmra.mrb[24].mxu0 %v2650_v37  ;;  %v2886_v37 = vld [vmem:[#allocation4 + $0x4e0] sm:$0xff] }
 0x29a   :  { %4674 = vmatpush1.bf16.msra.mxu0 %v4673_v21  ;;  %4069 = vmatprep.mubr.msk.f32.mxu0 %vm1953_vm6, %v2915_v47  ;;  %v4705_v35 = vpack.c.bf16 %v2888_v59, %v2886_v37  ;;  %v2897_v21 = vld [vmem:[#allocation4 + $0x538] sm:$0xff]  ;;  %v4709_v47 = vpack.c.bf16 %v2892_v7, %v2890_v5  ;;  %v2916_v40 = vcombine.low %v2803_v24, %v2802_v39  ;;  %v3316_v7 = vld [vmem:[%s6492_s5 + $0x20] sm:$0xff] }
 0x29b   :  { %4676 = vmatprep.subr.bf16.mxu0 %v4675_v14  ;;  %v2813_v14 = vrot.slane %v5009_v38, %v5591_v27 }
 0x29c   :  { %v2924_v11 = vrot.slane %v2916_v40, %v5591_v27  ;;  %v3324_v40 = vld [vmem:[%s6492_s5 + $0x60] sm:$0xff] }
 0x29d   :  { %v4068_v18 = vcombine.high %v2802_v39, %v2813_v14 }
 0x29e   :  { %4678 = vmatpush1.bf16.msra.mxu0 %v4677_v42  ;;  %v2820_v42 = vrot.slane %v5011_v19, %v5591_v27 }
 0x29f   :  { %4680 = vmatprep.subr.bf16.mxu0 %v4679_v53  ;;  %v4711_v53 = vpack.c.bf16 %v2897_v21, %v2895_v20  ;;  %v2931_v44 = vrot.slane %v4068_v18, %v5591_v27  ;;  %v3317_v20 = vld [vmem:[%s6492_s5 + $0x28] sm:$0xff] }
 0x2a0   :  { %v2822_v46 = vcombine.high %v2820_v42, %v2820_v42  ;;  %v4722_v21 = vpack.c.bf16 %v3317_v20, %v3316_v7  ;;  %v3321_v18 = vld [vmem:[%s6492_s5 + $0x48] sm:$0xff] }
 0x2a1   :  { %v2933_v55 = vcombine.high %v2924_v11, %v2931_v44 }
 0x2a2   :  { %4682 = vmatpush1.bf16.msra.mxu0 %v4681_v62  ;;  %v2838_v62 = vrot.slane %v5014_v63, %v5591_v27 }
 0x2a3   :  { %4684 = vmatprep.subr.bf16.mxu0 %v4683_v6  ;;  %v4713_v6 = vpack.c.bf16 %v2896_v0, %v2894_v33  ;;  %v3320_v0 = vld [vmem:[%s6492_s5 + $0x40] sm:$0xff] }
 0x2a4   :  { %v4728_v41 = vpack.c.bf16 %v3321_v18, %v3320_v0 }
 0x2a6   :  { %4686 = vmatpush1.bf16.msra.mxu0 %v4685_v36  ;;  %v2840_v36 = vcombine.high %v2838_v62, %v2838_v62 }
 0x2a7   :  { %4688 = vmatprep.subr.bf16.mxu0 %v4687_v28  ;;  %v2934_v28 = vcombine.low %v2820_v42, %v2822_v46  ;;  %v3318_v42 = vld [vmem:[%s6492_s5 + $0x30] sm:$0xff] }
 0x2a8   :  { %v2952_v52 = vcombine.low %v2838_v62, %v2840_v36  ;;  %v3322_v62 = vld [vmem:[%s6492_s5 + $0x50] sm:$0xff] }
 0x2aa   :  { %4690 = vmatpush1.bf16.msra.mxu0 %v4689_v2  ;;  %v2942_v2 = vrot.slane %v2934_v28, %v5591_v27  ;;  %v2959_v56 = vrot.slane %v2952_v52, %v5591_v27 }
 0x2ab   :  { %4692 = vmatprep.subr.bf16.mxu0 %v4691_v22  ;;  %v2932_v22 = vcombine.low %v2924_v11, %v2931_v44  ;;  %v3325_v44 = vld [vmem:[%s6492_s5 + $0x68] sm:$0xff] }
 0x2ac   :  { %v2951_v54 = vcombine.high %v2942_v2, %v2949_v30  ;;  %v2950_v57 = vcombine.low %v2942_v2, %v2949_v30  ;;  %v2960_v58 = vcombine.high %v2959_v56, %v2959_v56  ;;  %v4734_v36 = vpack.c.bf16 %v3325_v44, %v3324_v40 }
 0x2ae   :  { %4694 = vmatpush1.bf16.msra.mxu0 %v4693_v29  ;;  %v5070_v29 = vmov 0.0|0.0  }
 0x2af   :  { %4696 = vmatprep.subr.bf16.mxu0 %v4695_v3  ;;  %4715 = vmatprep.subr.bf16.mxu1 %v5070_v29  ;;  %v4716_v3 = vpack.c.bf16 %v3313_v26, %v3312_v15 }
 0x2b1   :  { %4717 = vmatpush3.bf16.msra.mxu1 %v4716_v3 }
 0x2b2   :  { %4698 = vmatpush1.bf16.msra.mxu0 %v4697_v13  ;;  %4718 = vmatprep.subr.bf16.mxu1 %v5070_v29  ;;  %v3070_v13 = vld [vmem:[%s6491_s4] sm:$0x3] }
 0x2b3   :  { %4700 = vmatprep.subr.bf16.mxu0 %v4699_v1  ;;  %v3075_v17 = vrot.slane %v3070_v13, %v958_v48  ;;  %v3079_v9 = vrot.slane %v3070_v13, %v6502_v49 }
 0x2b5   :  { %4720 = vmatpush3.bf16.msra.mxu1 %v4719_v10 }
 0x2b6   :  { %4702 = vmatpush1.bf16.msra.mxu0 %v4701_v12  ;;  %4721 = vmatprep.subr.bf16.mxu1 %v5070_v29 }
 0x2b7   :  { %4704 = vmatprep.subr.bf16.mxu0 %v4703_v34 }
 0x2b9   :  { %4723 = vmatpush3.bf16.msra.mxu1 %v4722_v21 }
 0x2ba   :  { %4706 = vmatpush1.bf16.msra.mxu0 %v4705_v35  ;;  %4724 = vmatprep.subr.bf16.mxu1 %v5070_v29 }
 0x2bb   :  { %4708 = vmatprep.subr.bf16.mxu0 %v4707_v45 }
 0x2be   :  { %4710 = vmatpush1.bf16.msra.mxu0 %v4709_v47 }
 0x2bf   :  { %4712 = vmatprep.subr.bf16.mxu0 %v4711_v53  ;;  %v3319_v53 = vld [vmem:[%s6492_s5 + $0x38] sm:$0xff] }
 0x2c0   :  { %v4725_v33 = vpack.c.bf16 %v3319_v53, %v3318_v42 }
 0x2c2   :  { %4714 = vmatpush1.bf16.msra.mxu0 %v4713_v6  ;;  %4726 = vmatpush3.bf16.msra.mxu1 %v4725_v33  ;;  %v3323_v6 = vld [vmem:[%s6492_s5 + $0x58] sm:$0xff] }
 0x2c3   :  { %4727 = vmatprep.subr.bf16.mxu1 %v5070_v29  ;;  %v4731_v46 = vpack.c.bf16 %v3323_v6, %v3322_v62 }
 0x2c5   :  { %3038 = vmatmul.mubr.f32.vlgmr.msra.gmra.mrb[18].mxu0 %v2914_v50 }
 0x2c6   :  { %4070 = vmatprep.mubr.msk.f32.mxu0 %vm1953_vm6, %v2933_v55  ;;  %4729 = vmatpush3.bf16.msra.mxu1 %v4728_v41 }
 0x2c7   :  { %4730 = vmatprep.subr.bf16.mxu1 %v5070_v29 }
 0x2c9   :  { %3044 = vmatmul.mubr.f32.gmra.mrb[20].mxu0 %v2932_v22 }
 0x2ca   :  { %4071 = vmatprep.mubr.msk.f32.mxu0 %vm1953_vm6, %v2951_v54  ;;  %4732 = vmatpush3.bf16.msra.mxu1 %v4731_v46 }
 0x2cb   :  { %4733 = vmatprep.subr.bf16.mxu1 %v5070_v29 }
 0x2cd   :  { %3050 = vmatmul.mubr.f32.gmra.mrb[22].mxu0 %v2950_v57 }
 0x2ce   :  { %4072 = vmatprep.mubr.msk.f32.mxu0 %vm1953_vm6, %v2960_v58  ;;  %vm5071_vm6 = vmmov 0   ;;  %4735 = vmatpush3.bf16.msra.mxu1 %v4734_v36  ;;  %v4077_v36 = vld [vmem:[%s6492_s5 + $0x80] sm:$0xff] }
 0x2cf   :  { %4298 = vmatprep.mubr.msk.f32.mxu1 %vm5071_vm6, %v6503_v61  ;;  %4736 = vmatprep.subr.bf16.mxu1 %v5070_v29 }
 0x2d1   :  { %3056 = vmatmul.mubr.f32.gmra.mrb[24].mxu0 %v2959_v56 }
 0x398   :  { %v3039_v23 = vpop.f32.mrb[18].mxu0 }
 0x399   :  { %v3041_v1 = vpop.f32.mrb[19].mxu0  ;;  %v6037_v59 = vadd.f32 %v3075_v17, %v3039_v23 }
 0x39a   :  { %v3083_v16 = vadd.f32 %v3079_v9, %v3041_v1 }
 0x39b   :  { %v3090_v48 = vmax.f32 %v6037_v59, 0.0 }
 0x39c   :  { %v3045_v51 = vpop.f32.mrb[20].mxu0  ;;  %v3091_v25 = vmax.f32 %v3083_v16, 0.0 }
 0x39d   :  { %v3084_v12 = vadd.f32 %v3075_v17, %v3045_v51  ;;  %v3047_v34 = vpop.f32.mrb[21].mxu0 }
 0x39e   :  { %v3085_v37 = vadd.f32 %v3079_v9, %v3047_v34 }
 0x39f   :  { %v3092_v43 = vmax.f32 %v3084_v12, 0.0 }
 0x3a0   :  { %v3093_v38 = vmax.f32 %v3085_v37, 0.0  ;;  %v3051_v31 = vpop.f32.mrb[22].mxu0 }
 0x3a1   :  { %3110 = vrot.lane.b32.xlu1 %v3092_v43, %s5065_s12  ;;  %v3053_v35 = vpop.f32.mrb[23].mxu0  ;;  %v6042_v60 = vadd.f32 %v3075_v17, %v3051_v31 }
 0x3a2   :  { %3112 = vrot.lane.b32.xlu0 %v3093_v38, %s5065_s12  ;;  %v3087_v19 = vadd.f32 %v3079_v9, %v3053_v35 }
 0x3a3   :  { %v3094_v14 = vmax.f32 %v6042_v60, 0.0  ;;  %v4075_v60 = vld [vmem:[%s6492_s5 + $0x70] sm:$0xff] }
 0x3a4   :  { %v3057_v45 = vpop.f32.mrb[24].mxu0  ;;  %v3095_v63 = vmax.f32 %v3087_v19, 0.0 }
 0x3a5   :  { %3106 = vrot.lane.b32.xlu1 %v3090_v48, %s5065_s12  ;;  %v3059_v5 = vpop.f32.mrb[25].mxu0  ;;  %v6053_v32 = vadd.f32 %v3075_v17, %v3057_v45 }
 0x3a6   :  { %3108 = vrot.lane.b32.xlu0 %v3091_v25, %s5065_s12  ;;  %v3089_v47 = vadd.f32 %v3079_v9, %v3059_v5 }
 0x3a7   :  { %v3096_v39 = vmax.f32 %v6053_v32, 0.0 }
 0x3a8   :  { %v3097_v24 = vmax.f32 %v3089_v47, 0.0 }
 0x3a9   :  { %3114 = vrot.lane.b32.xlu1 %v3094_v14, %s5065_s12 }
 0x3aa   :  { %3116 = vrot.lane.b32.xlu0 %v3095_v63, %s5065_s12 }
 0x3ad   :  { %3118 = vrot.lane.b32.xlu1 %v3096_v39, %s5065_s12 }
 0x3ae   :  { %3120 = vrot.lane.b32.xlu0 %v3097_v24, %s5065_s12 }
 0x413   :  { %v3111_v11 = vpop.permute.xlu1 %3110 }
 0x414   :  { %v3113_v28 = vpop.permute.xlu0 %3112 }
 0x415   :  { %v3124_v50 = vsel %vm3122_vm8, %v3111_v11, %v3113_v28  ;;  %v4078_v11 = vld [vmem:[%s6492_s5 + $0x88] sm:$0xff] }
 0x416   :  { %v3132_v55 = vmax.f32 %v3092_v43, %v3124_v50 }
 0x417   :  { %v3107_v30 = vpop.permute.xlu1 %3106 }
 0x418   :  { %v3156_v52 = vcombine.high %v3132_v55, %v3132_v55  ;;  %v3163_v2 = vrot.slane %v3132_v55, %v5591_v27  ;;  %v3109_v22 = vpop.permute.xlu0 %3108 }
 0x419   :  { %v3123_v54 = vsel %vm3122_vm8, %v3107_v30, %v3109_v22 }
 0x41a   :  { %v3170_v56 = vrot.slane %v3156_v52, %v5591_v27  ;;  %v3171_v57 = vcombine.high %v3163_v2, %v3163_v2  ;;  %v3241_v58 = vsel %vm3212_vm9, %v3163_v2, -inf  ;;  %v6100_v15 = vmax.f32 %v3090_v48, %v3123_v54 }
 0x41b   :  { %v3115_v8 = vpop.permute.xlu1 %3114  ;;  %v3242_v59 = vrot.slane %v3241_v58, 4 }
 0x41c   :  { %v3172_v26 = vcombine.high %v3170_v56, %v3170_v56  ;;  %v3248_v3 = vsel %vm3212_vm9, %v3171_v57, -inf  ;;  %v3255_v4 = vsel %vm3212_vm9, %v3170_v56, -inf  ;;  %v3117_v10 = vpop.permute.xlu0 %3116  ;;  %v3146_v23 = vrot.slane %v6100_v15, %v5591_v27 }
 0x41d   :  { %v3125_v51 = vsel %vm3122_vm8, %v3115_v8, %v3117_v10  ;;  %v3243_v45 = vmax.f32 %v3241_v58, %v3242_v59  ;;  %v3249_v7 = vrot.slane %v3248_v3, 4  ;;  %v3256_v63 = vrot.slane %v3255_v4, 4  ;;  %v4080_v8 = vld [vmem:[%s6492_s5 + $0x98] sm:$0xff]  ;;  %v4081_v59 = vld [vmem:[%s6492_s5 + $0xa0] sm:$0xff] }
 0x41e   :  { %v3262_v13 = vsel %vm3212_vm9, %v3172_v26, -inf  ;;  %v3213_v17 = vsel %vm3212_vm9, %v3146_v23, -inf  ;;  %v3133_v38 = vmax.f32 %v3094_v14, %v3125_v51  ;;  %v4076_v14 = vld [vmem:[%s6492_s5 + $0x78] sm:$0xff]  ;;  %v3154_v46 = vcombine.high %v3146_v23, %v3146_v23 }
 0x41f   :  { %v3263_v1 = vrot.slane %v3262_v13, 4  ;;  %v3214_v9 = vrot.slane %v3213_v17, 4  ;;  %v3119_v12 = vpop.permute.xlu1 %3118  ;;  %v3244_v42 = vrot.slane %v3243_v45, 2  ;;  %v4737_v0 = vpack.c.bf16 %v4076_v14, %v4075_v60 }
 0x420   :  { %v3121_v34 = vpop.permute.xlu0 %3120  ;;  %v3173_v48 = vcombine.high %v3133_v38, %v3133_v38  ;;  %v6127_v33 = vrot.slane %v3133_v38, %v5591_v27  ;;  %v3250_v18 = vmax.f32 %v3248_v3, %v3249_v7  ;;  %v3257_v40 = vmax.f32 %v3255_v4, %v3256_v63  ;;  %v4079_v4 = vld [vmem:[%s6492_s5 + $0x90] sm:$0xff] }
 0x421   :  { %v3264_v49 = vmax.f32 %v3262_v13, %v3263_v1  ;;  %v3215_v43 = vmax.f32 %v3213_v17, %v3214_v9  ;;  %v3126_v31 = vsel %vm3122_vm8, %v3119_v12, %v3121_v34  ;;  %v3245_v30 = vmax.f32 %v3243_v45, %v3244_v42  ;;  %v4083_v7 = vld [vmem:[%s6492_s5 + $0xb0] sm:$0xff] }
 0x422   :  { %v3134_v25 = vmax.f32 %v3096_v39, %v3126_v31  ;;  %v6115_v20 = vrot.slane %v3173_v48, %v5591_v27  ;;  %v3269_v52 = vsel %vm3212_vm9, %v6127_v33, -inf  ;;  %v3251_v22 = vrot.slane %v3250_v18, 2 }
 0x423   :  { %v3265_v37 = vrot.slane %v3264_v49, 2  ;;  %v3216_v35 = vrot.slane %v3215_v43, 2  ;;  %v4740_v57 = vpack.c.bf16 %v4078_v11, %v4077_v36  ;;  %v3258_v58 = vrot.slane %v3257_v40, 2  ;;  %v4088_v36 = vld [vmem:[%s6492_s5 + $0xd8] sm:$0xff] }
 0x424   :  { %v3196_v21 = vrot.slane %v3134_v25, %v5591_v27  ;;  %v3189_v47 = vcombine.high %v6115_v20, %v6115_v20  ;;  %v3220_v26 = vsel %vm3212_vm9, %v3154_v46, -inf  ;;  %v3270_v10 = vrot.slane %v3269_v52, 4 }
 0x425   :  { %v3266_v16 = vmax.f32 %v3264_v49, %v3265_v37  ;;  %v3217_v5 = vmax.f32 %v3215_v43, %v3216_v35  ;;  %v3246_v1 = vrot.slane %v3245_v30, 1  ;;  %v3252_v49 = vmax.f32 %v3250_v18, %v3251_v22  ;;  %v4082_v43 = vld [vmem:[%s6492_s5 + $0xa8] sm:$0xff]  ;;  %v4085_v18 = vld [vmem:[%s6492_s5 + $0xc0] sm:$0xff] }
 0x426   :  { %v3197_v39 = vcombine.high %v3196_v21, %v3196_v21  ;;  %v3290_v41 = vsel %vm3212_vm9, %v3189_v47, -inf  ;;  %v3297_v62 = vsel %vm3212_vm9, %v3196_v21, -inf  ;;  %v3221_v9 = vrot.slane %v3220_v26, 4  ;;  %v4084_v21 = vld [vmem:[%s6492_s5 + $0xb8] sm:$0xff] }
 0x427   :  { %v3267_v19 = vrot.slane %v3266_v16, 1  ;;  %v3218_v32 = vrot.slane %v3217_v5, 1  ;;  %v3291_v44 = vrot.slane %v3290_v41, 4  ;;  %v3298_v28 = vrot.slane %v3297_v62, 4 }
 0x428   :  { %v3304_v6 = vsel %vm3212_vm9, %v3197_v39, -inf  ;;  %v4743_v12 = vpack.c.bf16 %v4080_v8, %v4079_v4  ;;  %v3259_v34 = vmax.f32 %v3257_v40, %v3258_v58  ;;  %v3271_v38 = vmax.f32 %v3269_v52, %v3270_v10  ;;  %v4091_v52 = vld [vmem:[%s6492_s5 + $0xe8] sm:$0xff]  ;;  %v4093_v58 = vld [vmem:[%s6492_s5 + $0xf8] sm:$0xff]  ;;  %v4094_v4 = vld [vmem:[%s6492_s5 + $0x100] sm:$0xff] }
 0x429   :  { %v3268_v24 = vmax.f32 %v3266_v16, %v3267_v19  ;;  %v3219_v53 = vmax.f32 %v3217_v5, %v3218_v32  ;;  %v3305_v50 = vrot.slane %v3304_v6, 4  ;;  %v3292_v2 = vmax.f32 %v3290_v41, %v3291_v44  ;;  %v4086_v41 = vld [vmem:[%s6492_s5 + $0xc8] sm:$0xff]  ;;  %v4087_v44 = vld [vmem:[%s6492_s5 + $0xd0] sm:$0xff] }
 0x42a   :  { %v3299_v54 = vmax.f32 %v3297_v62, %v3298_v28  ;;  %v3247_v35 = vmax.f32 %v3245_v30, %v3246_v1  ;;  %v3222_v25 = vmax.f32 %v3220_v26, %v3221_v9  ;;  %v4746_v19 = vpack.c.bf16 %v4082_v43, %v4081_v59  ;;  %v4090_v30 = vld [vmem:[%s6492_s5 + $0xe0] sm:$0xff]  ;;  %v4095_v8 = vld [vmem:[%s6492_s5 + $0x108] sm:$0xff]  ;;  %v4096_v1 = vld [vmem:[%s6492_s5 + $0x110] sm:$0xff] }
 0x42b   :  { %v3328_v55 = vsel %vm2035_vm1, %v3268_v24, %v3219_v53  ;;  %v3306_v56 = vmax.f32 %v3304_v6, %v3305_v50  ;;  %v3293_v3 = vrot.slane %v3292_v2, 2  ;;  %v3253_v45 = vrot.slane %v3252_v49, 1 }
 0x42c   :  { %4299 = vmatmul.mubr.msk.f32.vlgmr.msra.gmra.mrb[14].mxu1 %vm3329_vm10, %v3328_v55  ;;  %v3300_v23 = vrot.slane %v3299_v54, 2  ;;  %v3260_v14 = vrot.slane %v3259_v34, 1  ;;  %v3272_v32 = vrot.slane %v3271_v38, 2  ;;  %v3223_v42 = vrot.slane %v3222_v25, 2 }
 0x42d   :  { %4738 = vmatpush3.bf16.msra.mxu1 %v4737_v0  ;;  %4329 = vmatprep.mubr.msk.f32.mxu1 %vm5071_vm6, %v6503_v61  ;;  %v3307_v13 = vrot.slane %v3306_v56, 2  ;;  %v3294_v17 = vmax.f32 %v3292_v2, %v3293_v3  ;;  %v3254_v47 = vmax.f32 %v3252_v49, %v3253_v45  ;;  %v4749_v53 = vpack.c.bf16 %v4084_v21, %v4083_v7  ;;  %v4105_v21 = vld [vmem:[%s6492_s5 + $0x150] sm:$0xff] }
 0x42e   :  { %4739 = vmatprep.subr.bf16.mxu1 %v5070_v29  ;;  %v3301_v51 = vmax.f32 %v3299_v54, %v3300_v23  ;;  %v3261_v39 = vmax.f32 %v3259_v34, %v3260_v14  ;;  %v3273_v6 = vmax.f32 %v3271_v38, %v3272_v32  ;;  %v3224_v40 = vmax.f32 %v3222_v25, %v3223_v42  ;;  %v4099_v34 = vld [vmem:[%s6492_s5 + $0x128] sm:$0xff]  ;;  %v4101_v38 = vld [vmem:[%s6492_s5 + $0x138] sm:$0xff]  ;;  %v4102_v25 = vld [vmem:[%s6492_s5 + $0x140] sm:$0xff] }
 0x42f   :  { %v3308_v37 = vmax.f32 %v3306_v56, %v3307_v13  ;;  %v3295_v16 = vrot.slane %v3294_v17, 1  ;;  %v4752_v46 = vpack.c.bf16 %v4086_v41, %v4085_v18  ;;  %v4755_v28 = vpack.c.bf16 %v4088_v36, %v4087_v44  ;;  %v4106_v14 = vld [vmem:[%s6492_s5 + $0x158] sm:$0xff]  ;;  %v4108_v42 = vld [vmem:[%s6492_s5 + $0x168] sm:$0xff] }
 0x430   :  { %v3302_v31 = vrot.slane %v3301_v51, 1  ;;  %v3274_v11 = vrot.slane %v3273_v6, 1  ;;  %v3225_v50 = vrot.slane %v3224_v40, 1  ;;  %v3139_v55 = vcombine.high %v6100_v15, %v6100_v15  ;;  %v4092_v15 = vld [vmem:[%s6492_s5 + $0xf0] sm:$0xff] }
 0x431   :  { %4741 = vmatpush3.bf16.msra.mxu1 %v4740_v57  ;;  %v3296_v48 = vmax.f32 %v3294_v17, %v3295_v16  ;;  %v3309_v63 = vrot.slane %v3308_v37, 1  ;;  %v3188_v22 = vcombine.high %v6127_v33, %v6127_v33  ;;  %v4758_v56 = vpack.c.bf16 %v4091_v52, %v4090_v30  ;;  %v4097_v17 = vld [vmem:[%s6492_s5 + $0x118] sm:$0xff]  ;;  %v4100_v16 = vld [vmem:[%s6492_s5 + $0x130] sm:$0xff] }
 0x432   :  { %4742 = vmatprep.subr.bf16.mxu1 %v5070_v29  ;;  %v3303_v5 = vmax.f32 %v3301_v51, %v3302_v31  ;;  %v3275_v2 = vmax.f32 %v3273_v6, %v3274_v11  ;;  %v3226_v54 = vmax.f32 %v3224_v40, %v3225_v50  ;;  %v6201_v57 = vrot.slane %v3139_v55, %v5591_v27  ;;  %v4109_v40 = vld [vmem:[%s6492_s5 + $0x170] sm:$0xff]  ;;  %v4111_v11 = vld [vmem:[%s6492_s5 + $0x180] sm:$0xff] }
 0x433   :  { %v6167_v60 = vsel %vm2035_vm1, %v3296_v48, %v3247_v35  ;;  %v3310_v24 = vmax.f32 %v3308_v37, %v3309_v63  ;;  %v3276_v33 = vsel %vm3212_vm9, %v3188_v22, -inf  ;;  %v4761_v3 = vpack.c.bf16 %v4093_v58, %v4092_v15  ;;  %v4113_v52 = vld [vmem:[%s6492_s5 + $0x190] sm:$0xff]  ;;  %v4116_v15 = vld [vmem:[%s6492_s5 + $0x1a8] sm:$0xff] }
 0x434   :  { %v6170_v0 = vsel %vm2035_vm1, %v3303_v5, %v3254_v47  ;;  %v3426_v26 = vsel %vm2035_vm1, %v3275_v2, %v3226_v54  ;;  %v3227_v27 = vsel %vm3212_vm9, %v6201_v57, -inf  ;;  %v3277_v10 = vrot.slane %v3276_v33, 4  ;;  %v4114_v2 = vld [vmem:[%s6492_s5 + $0x198] sm:$0xff] }
 0x435   :  { %4744 = vmatpush3.bf16.msra.mxu1 %v4743_v12  ;;  %v6180_v62 = vsel %vm2035_vm1, %v3310_v24, %v3261_v39  ;;  %v3228_v23 = vrot.slane %v3227_v27, 4  ;;  %v4764_v13 = vpack.c.bf16 %v4095_v8, %v4094_v4  ;;  %v4767_v51 = vpack.c.bf16 %v4097_v17, %v4096_v1  ;;  %v4098_v12 = vld [vmem:[%s6492_s5 + $0x120] sm:$0xff] }
 0x436   :  { %4745 = vmatprep.subr.bf16.mxu1 %v5070_v29  ;;  %v3278_v49 = vmax.f32 %v3276_v33, %v3277_v10  ;;  %v4770_v43 = vpack.c.bf16 %v4099_v34, %v4098_v12  ;;  %v4773_v48 = vpack.c.bf16 %v4101_v38, %v4100_v16  ;;  %v4779_v47 = vpack.c.bf16 %v4106_v14, %v4105_v21  ;;  %v4107_v24 = vld [vmem:[%s6492_s5 + $0x160] sm:$0xff]  ;;  %v4126_v16 = vld [vmem:[%s6492_s5 + $0x1f0] sm:$0xff]  ;;  %v4127_v38 = vld [vmem:[%s6492_s5 + $0x1f8] sm:$0xff] }
 0x437   :  { %v3229_v9 = vmax.f32 %v3227_v27, %v3228_v23  ;;  %v3155_v39 = vcombine.high %v6201_v57, %v6201_v57  ;;  %v3283_v18 = vsel %vm3212_vm9, %v6115_v20, -inf  ;;  %v4782_v41 = vpack.c.bf16 %v4108_v42, %v4107_v24  ;;  %v4115_v57 = vld [vmem:[%s6492_s5 + $0x1a0] sm:$0xff]  ;;  %v4118_v27 = vld [vmem:[%s6492_s5 + $0x1b8] sm:$0xff]  ;;  %v4133_v21 = vld [vmem:[%s6492_s5 + $0x228] sm:$0xff] }
 0x438   :  { %v3279_v37 = vrot.slane %v3278_v49, 2  ;;  %v3284_v20 = vrot.slane %v3283_v18, 4  ;;  %v4120_v23 = vld [vmem:[%s6492_s5 + $0x1c0] sm:$0xff]  ;;  %v4138_v24 = vld [vmem:[%s6492_s5 + $0x248] sm:$0xff] }
 0x439   :  { %4747 = vmatpush3.bf16.msra.mxu1 %v4746_v19  ;;  %v3230_v59 = vrot.slane %v3229_v9, 2  ;;  %v4103_v19 = vld [vmem:[%s6492_s5 + $0x148] sm:$0xff]  ;;  %v3234_v6 = vsel %vm3212_vm9, %v3155_v39, -inf  ;;  %v4137_v39 = vld [vmem:[%s6492_s5 + $0x240] sm:$0xff] }
 0x43a   :  { %4748 = vmatprep.subr.bf16.mxu1 %v5070_v29  ;;  %v3280_v31 = vmax.f32 %v3278_v49, %v3279_v37  ;;  %v4776_v5 = vpack.c.bf16 %v4103_v19, %v4102_v25  ;;  %v3235_v44 = vrot.slane %v3234_v6, 4  ;;  %v3285_v50 = vmax.f32 %v3283_v18, %v3284_v20  ;;  %v4124_v37 = vld [vmem:[%s6492_s5 + $0x1e0] sm:$0xff]  ;;  %v4130_v19 = vld [vmem:[%s6492_s5 + $0x210] sm:$0xff]  ;;  %v4140_v18 = vld [vmem:[%s6492_s5 + $0x258] sm:$0xff] }
 0x43b   :  { %v3231_v35 = vmax.f32 %v3229_v9, %v3230_v59  ;;  %v4122_v9 = vld [vmem:[%s6492_s5 + $0x1d0] sm:$0xff]  ;;  %v4125_v59 = vld [vmem:[%s6492_s5 + $0x1e8] sm:$0xff]  ;;  %v4824_v42 = vpack.c.bf16 %v4138_v24, %v4137_v39  ;;  %v4144_v20 = vld [vmem:[%s6492_s5 + $0x278] sm:$0xff] }
 0x43c   :  { %v3281_v45 = vrot.slane %v3280_v31, 1  ;;  %v3236_v55 = vmax.f32 %v3234_v6, %v3235_v44  ;;  %v3286_v22 = vrot.slane %v3285_v50, 2  ;;  %v4142_v6 = vld [vmem:[%s6492_s5 + $0x268] sm:$0xff] }
 0x43d   :  { %4750 = vmatpush3.bf16.msra.mxu1 %v4749_v53  ;;  %v3232_v7 = vrot.slane %v3231_v35, 1 }
 0x43e   :  { %4751 = vmatprep.subr.bf16.mxu1 %v5070_v29  ;;  %v3282_v63 = vmax.f32 %v3280_v31, %v3281_v45  ;;  %v3237_v54 = vrot.slane %v3236_v55, 2  ;;  %v3287_v58 = vmax.f32 %v3285_v50, %v3286_v22  ;;  %v4809_v31 = vpack.c.bf16 %v4127_v38, %v4126_v16  ;;  %v4131_v45 = vld [vmem:[%s6492_s5 + $0x218] sm:$0xff]  ;;  %v4147_v50 = vld [vmem:[%s6492_s5 + $0x290] sm:$0xff] }
 0x43f   :  { %v3233_v32 = vmax.f32 %v3231_v35, %v3232_v7  ;;  %v4128_v35 = vld [vmem:[%s6492_s5 + $0x200] sm:$0xff] }
 0x440   :  { %v3238_v33 = vmax.f32 %v3236_v55, %v3237_v54  ;;  %v3288_v4 = vrot.slane %v3287_v58, 1  ;;  %v4132_v7 = vld [vmem:[%s6492_s5 + $0x220] sm:$0xff]  ;;  %v4148_v55 = vld [vmem:[%s6492_s5 + $0x298] sm:$0xff]  ;;  %v4152_v54 = vld [vmem:[%s6492_s5 + $0x2b0] sm:$0xff] }
 0x441   :  { %4753 = vmatpush3.bf16.msra.mxu1 %v4752_v46  ;;  %v3517_v53 = vsel %vm2035_vm1, %v3282_v63, %v3233_v32  ;;  %v4110_v46 = vld [vmem:[%s6492_s5 + $0x178] sm:$0xff]  ;;  %v4818_v14 = vpack.c.bf16 %v4133_v21, %v4132_v7  ;;  %v4135_v63 = vld [vmem:[%s6492_s5 + $0x230] sm:$0xff] }
 0x442   :  { %4754 = vmatprep.subr.bf16.mxu1 %v5070_v29  ;;  %v4785_v36 = vpack.c.bf16 %v4110_v46, %v4109_v40  ;;  %v3239_v10 = vrot.slane %v3238_v33, 1  ;;  %v3289_v1 = vmax.f32 %v3287_v58, %v3288_v4  ;;  %v4136_v32 = vld [vmem:[%s6492_s5 + $0x238] sm:$0xff]  ;;  %v4143_v46 = vld [vmem:[%s6492_s5 + $0x270] sm:$0xff]  ;;  %v4155_v58 = vld [vmem:[%s6492_s5 + $0x2c8] sm:$0xff] }
 0x443   :  { %v4833_v44 = vpack.c.bf16 %v4144_v20, %v4143_v46 }
 0x444   :  { %v3240_v17 = vmax.f32 %v3238_v33, %v3239_v10  ;;  %v4161_v10 = vld [vmem:[%s6492_s5 + $0x2f8] sm:$0xff] }
 0x445   :  { %4756 = vmatpush3.bf16.msra.mxu1 %v4755_v28  ;;  %v4112_v28 = vld [vmem:[%s6492_s5 + $0x188] sm:$0xff] }
 0x446   :  { %4757 = vmatprep.subr.bf16.mxu1 %v5070_v29  ;;  %v4788_v30 = vpack.c.bf16 %v4112_v28, %v4111_v11  ;;  %v3608_v12 = vsel %vm2035_vm1, %v3289_v1, %v3240_v17  ;;  %v4146_v11 = vld [vmem:[%s6492_s5 + $0x288] sm:$0xff] }
 0x447   :  { %v4163_v1 = vld [vmem:[%s6492_s5 + $0x308] sm:$0xff] }
 0x448   :  { %4330 = vmatmul.mubr.msk.f32.vlgmr.msra.gmra.mrb[14].mxu1 %vm3329_vm10, %v3426_v26  ;;  %v4794_v26 = vpack.c.bf16 %v4116_v15, %v4115_v57  ;;  %v4154_v15 = vld [vmem:[%s6492_s5 + $0x2c0] sm:$0xff] }
 0x449   :  { %4759 = vmatpush3.bf16.msra.mxu1 %v4758_v56  ;;  %4360 = vmatprep.mubr.msk.f32.mxu1 %vm5071_vm6, %v6503_v61  ;;  %v4791_v56 = vpack.c.bf16 %v4114_v2, %v4113_v52  ;;  %v4150_v52 = vld [vmem:[%s6492_s5 + $0x2a0] sm:$0xff]  ;;  %v4151_v2 = vld [vmem:[%s6492_s5 + $0x2a8] sm:$0xff] }
 0x44a   :  { %4760 = vmatprep.subr.bf16.mxu1 %v5070_v29  ;;  %v4842_v22 = vpack.c.bf16 %v4151_v2, %v4150_v52 }
 0x44d   :  { %4762 = vmatpush3.bf16.msra.mxu1 %v4761_v3  ;;  %v4117_v3 = vld [vmem:[%s6492_s5 + $0x1b0] sm:$0xff] }
 0x44e   :  { %4763 = vmatprep.subr.bf16.mxu1 %v5070_v29  ;;  %v4797_v8 = vpack.c.bf16 %v4118_v27, %v4117_v3  ;;  %v4158_v3 = vld [vmem:[%s6492_s5 + $0x2e0] sm:$0xff]  ;;  %v4159_v27 = vld [vmem:[%s6492_s5 + $0x2e8] sm:$0xff] }
 0x44f   :  { %v4854_v4 = vpack.c.bf16 %v4159_v27, %v4158_v3 }
 0x451   :  { %4765 = vmatpush3.bf16.msra.mxu1 %v4764_v13  ;;  %v4121_v13 = vld [vmem:[%s6492_s5 + $0x1c8] sm:$0xff] }
 0x452   :  { %4766 = vmatprep.subr.bf16.mxu1 %v5070_v29  ;;  %v4800_v49 = vpack.c.bf16 %v4121_v13, %v4120_v23  ;;  %v4162_v13 = vld [vmem:[%s6492_s5 + $0x300] sm:$0xff] }
 0x453   :  { %v4860_v17 = vpack.c.bf16 %v4163_v1, %v4162_v13 }
 0x455   :  { %4768 = vmatpush3.bf16.msra.mxu1 %v4767_v51  ;;  %v4123_v51 = vld [vmem:[%s6492_s5 + $0x1d8] sm:$0xff] }
 0x456   :  { %4769 = vmatprep.subr.bf16.mxu1 %v5070_v29  ;;  %v4803_v34 = vpack.c.bf16 %v4123_v51, %v4122_v9 }
 0x459   :  { %4771 = vmatpush3.bf16.msra.mxu1 %v4770_v43  ;;  %v4806_v43 = vpack.c.bf16 %v4125_v59, %v4124_v37 }
 0x45a   :  { %4772 = vmatprep.subr.bf16.mxu1 %v5070_v29 }
 0x45d   :  { %4774 = vmatpush3.bf16.msra.mxu1 %v4773_v48  ;;  %v4129_v48 = vld [vmem:[%s6492_s5 + $0x208] sm:$0xff] }
 0x45e   :  { %4775 = vmatprep.subr.bf16.mxu1 %v5070_v29  ;;  %v4812_v25 = vpack.c.bf16 %v4129_v48, %v4128_v35 }
 0x461   :  { %4777 = vmatpush3.bf16.msra.mxu1 %v4776_v5  ;;  %v4815_v5 = vpack.c.bf16 %v4131_v45, %v4130_v19 }
 0x462   :  { %4778 = vmatprep.subr.bf16.mxu1 %v5070_v29 }
 0x464   :  { %4361 = vmatmul.mubr.msk.f32.vlgmr.msra.gmra.mrb[14].mxu1 %vm3329_vm10, %v3517_v53  ;;  %v4139_v53 = vld [vmem:[%s6492_s5 + $0x250] sm:$0xff] }
 0x465   :  { %4780 = vmatpush3.bf16.msra.mxu1 %v4779_v47  ;;  %4391 = vmatprep.mubr.msk.f32.mxu1 %vm5071_vm6, %v6503_v61  ;;  %v4821_v47 = vpack.c.bf16 %v4136_v32, %v4135_v63 }
 0x466   :  { %4781 = vmatprep.subr.bf16.mxu1 %v5070_v29 }
 0x469   :  { %4783 = vmatpush3.bf16.msra.mxu1 %v4782_v41  ;;  %v4827_v41 = vpack.c.bf16 %v4140_v18, %v4139_v53 }
 0x46a   :  { %4784 = vmatprep.subr.bf16.mxu1 %v5070_v29 }
 0x46d   :  { %4786 = vmatpush3.bf16.msra.mxu1 %v4785_v36  ;;  %v4145_v36 = vld [vmem:[%s6492_s5 + $0x280] sm:$0xff] }
 0x46e   :  { %4787 = vmatprep.subr.bf16.mxu1 %v5070_v29  ;;  %v4836_v28 = vpack.c.bf16 %v4146_v11, %v4145_v36 }
 0x471   :  { %4789 = vmatpush3.bf16.msra.mxu1 %v4788_v30  ;;  %v4839_v30 = vpack.c.bf16 %v4148_v55, %v4147_v50 }
 0x472   :  { %4790 = vmatprep.subr.bf16.mxu1 %v5070_v29 }
 0x475   :  { %4792 = vmatpush3.bf16.msra.mxu1 %v4791_v56  ;;  %v4153_v56 = vld [vmem:[%s6492_s5 + $0x2b8] sm:$0xff] }
 0x476   :  { %4793 = vmatprep.subr.bf16.mxu1 %v5070_v29  ;;  %v4845_v57 = vpack.c.bf16 %v4153_v56, %v4152_v54 }
 0x479   :  { %4795 = vmatpush3.bf16.msra.mxu1 %v4794_v26  ;;  %v4848_v26 = vpack.c.bf16 %v4155_v58, %v4154_v15 }
 0x47a   :  { %4796 = vmatprep.subr.bf16.mxu1 %v5070_v29 }
 0x47d   :  { %4798 = vmatpush3.bf16.msra.mxu1 %v4797_v8  ;;  %v4160_v8 = vld [vmem:[%s6492_s5 + $0x2f0] sm:$0xff] }
 0x47e   :  { %4799 = vmatprep.subr.bf16.mxu1 %v5070_v29  ;;  %v4857_v23 = vpack.c.bf16 %v4161_v10, %v4160_v8 }
 0x480   :  { %4392 = vmatmul.mubr.msk.f32.vlgmr.msra.gmra.mrb[14].mxu1 %vm3329_vm10, %v3608_v12 }
 0x481   :  { %4801 = vmatpush3.bf16.msra.mxu1 %v4800_v49  ;;  %4422 = vmatprep.mubr.msk.f32.mxu1 %vm5071_vm6, %v6503_v61  ;;  %v4074_v49 = vld [vmem:[%s6493_s6] ss:$0 sm:$0xff] }
 0x482   :  { %4802 = vmatprep.subr.bf16.mxu1 %v5070_v29 }
 0x485   :  { %4804 = vmatpush3.bf16.msra.mxu1 %v4803_v34 }
 0x486   :  { %4805 = vmatprep.subr.bf16.mxu1 %v5070_v29 }
 0x489   :  { %4807 = vmatpush3.bf16.msra.mxu1 %v4806_v43 }
 0x48a   :  { %4808 = vmatprep.subr.bf16.mxu1 %v5070_v29 }
 0x48d   :  { %4810 = vmatpush3.bf16.msra.mxu1 %v4809_v31 }
 0x48e   :  { %4811 = vmatprep.subr.bf16.mxu1 %v5070_v29 }
 0x491   :  { %4813 = vmatpush3.bf16.msra.mxu1 %v4812_v25 }
 0x492   :  { %4814 = vmatprep.subr.bf16.mxu1 %v5070_v29 }
 0x495   :  { %4816 = vmatpush3.bf16.msra.mxu1 %v4815_v5 }
 0x496   :  { %4817 = vmatprep.subr.bf16.mxu1 %v5070_v29 }
 0x499   :  { %4819 = vmatpush3.bf16.msra.mxu1 %v4818_v14 }
 0x49a   :  { %4820 = vmatprep.subr.bf16.mxu1 %v5070_v29 }
 0x49c   :  { %4423 = vmatmul.mubr.msk.f32.vlgmr.msra.gmra.mrb[14].mxu1 %vm3329_vm10, %v6167_v60  ;;  %v4141_v60 = vld [vmem:[%s6492_s5 + $0x260] sm:$0xff] }
 0x49d   :  { %4822 = vmatpush3.bf16.msra.mxu1 %v4821_v47  ;;  %4453 = vmatprep.mubr.msk.f32.mxu1 %vm5071_vm6, %v6503_v61  ;;  %v4830_v40 = vpack.c.bf16 %v4142_v6, %v4141_v60 }
 0x49e   :  { %4823 = vmatprep.subr.bf16.mxu1 %v5070_v29 }
 0x4a1   :  { %4825 = vmatpush3.bf16.msra.mxu1 %v4824_v42 }
 0x4a2   :  { %4826 = vmatprep.subr.bf16.mxu1 %v5070_v29 }
 0x4a5   :  { %4828 = vmatpush3.bf16.msra.mxu1 %v4827_v41 }
 0x4a6   :  { %4829 = vmatprep.subr.bf16.mxu1 %v5070_v29 }
 0x4a9   :  { %4831 = vmatpush3.bf16.msra.mxu1 %v4830_v40 }
 0x4aa   :  { %4832 = vmatprep.subr.bf16.mxu1 %v5070_v29 }
 0x4ad   :  { %4834 = vmatpush3.bf16.msra.mxu1 %v4833_v44 }
 0x4ae   :  { %4835 = vmatprep.subr.bf16.mxu1 %v5070_v29 }
 0x4b1   :  { %4837 = vmatpush3.bf16.msra.mxu1 %v4836_v28 }
 0x4b2   :  { %4838 = vmatprep.subr.bf16.mxu1 %v5070_v29 }
 0x4b5   :  { %4840 = vmatpush3.bf16.msra.mxu1 %v4839_v30 }
 0x4b6   :  { %4841 = vmatprep.subr.bf16.mxu1 %v5070_v29 }
 0x4b8   :  { %4454 = vmatmul.mubr.msk.f32.vlgmr.msra.gmra.mrb[14].mxu1 %vm3329_vm10, %v6170_v0  ;;  %v4156_v0 = vld [vmem:[%s6492_s5 + $0x2d0] sm:$0xff] }
 0x4b9   :  { %4843 = vmatpush3.bf16.msra.mxu1 %v4842_v22  ;;  %4484 = vmatprep.mubr.msk.f32.mxu1 %vm5071_vm6, %v6503_v61  ;;  %v4157_v61 = vld [vmem:[%s6492_s5 + $0x2d8] sm:$0xff]  ;;  %s5037_s5 = scalar_lea.vmem %s3964_s3, 32 }
 0x4ba   :  { %4844 = vmatprep.subr.bf16.mxu1 %v5070_v29  ;;  %v4851_v33 = vpack.c.bf16 %v4157_v61, %v4156_v0  ;;  %p5038_p8 = scmp.ne.s32.totalorder %s3964_s3, %s5037_s5  ;;  %p5043_p10 = scmp.lt.s32.totalorder %s5037_s5, %s5037_s5 }
 0x4bc   :  { %p5044_p11 = por %p5043_p10, %p5042_p9 }
 0x4bd   :  { %4846 = vmatpush3.bf16.msra.mxu1 %v4845_v57 }
 0x4be   :  { %4847 = vmatprep.subr.bf16.mxu1 %v5070_v29  ;;  %p5045_p12 = pnand %p5044_p11, %p5038_p8 }
 0x4c1   :  { %4849 = vmatpush3.bf16.msra.mxu1 %v4848_v26 }
 0x4c2   :  { %4850 = vmatprep.subr.bf16.mxu1 %v5070_v29 }
 0x4c5   :  { %4852 = vmatpush3.bf16.msra.mxu1 %v4851_v33 }
 0x4c6   :  { %4853 = vmatprep.subr.bf16.mxu1 %v5070_v29 }
 0x4c9   :  { %4855 = vmatpush3.bf16.msra.mxu1 %v4854_v4 }
 0x4ca   :  { %4856 = vmatprep.subr.bf16.mxu1 %v5070_v29 }
 0x4cd   :  { %4858 = vmatpush3.bf16.msra.mxu1 %v4857_v23 }
 0x4ce   :  { %4859 = vmatprep.subr.bf16.mxu1 %v5070_v29 }
 0x4d1   :  { %4861 = vmatpush3.bf16.msra.mxu1 %v4860_v17 }
 0x4d4   :  { %4485 = vmatmul.mubr.msk.f32.vlgmr.msra.gmra.mrb[14].mxu1 %vm3329_vm10, %v6180_v62 }
 0x5a7   :  { %v3950_v9 = vpop.f32.mrb[14].mxu1 }
 0x5a8   :  { %v4870_v51 = vadd.f32 %v4074_v49, %v3950_v9  ;;  %v4486_v12 = vpop.f32.mrb[15].mxu1 }
 0x5aa   :  { %3956 = vst.msk [vmem:[#allocation7] sm:$0x3] %vm3955_vm11, %v4870_v51 }
 0x5ab   :  { %5048 = shalt.err (!%p5045_p12)
}
 0x5ac   :  { %s5049_s17 = scalar_lea.hbm %s6494_s7, 32 }
 0x5ad   :  { %p5050_p13 = scmp.ne.s32.totalorder %s6494_s7, %s5049_s17  ;;  %p5053_p0 = scmp.lt.u32.totalorder %s5049_s17, %s6494_s7 }
 0x5af   :  { %p5055_p1 = pnand %p5053_p0, %p5050_p13 }
 0x5b1   :  { %5058 = shalt.err (!%p5055_p1)
}
 0x5b2   :  { %3966 = dma.vmem_to_hbm [thread:$0]  %s3964_s3, 32, %s6494_s7, [#allocation6]  }
 0x5b3   :  { %5061 = dma.done.wait [#allocation6], 32  }
 0x5b4   :  { %5062 = vsyncadd [#allocation6], 4294967264 }
 0x5b5   :  { %3970 = vsyncpa [#allocation5], 1 }
 0x5b6   :  { %3971 = vsyncpa [#allocation6], 1 }

</bundles_post_ra>
